<compile_context>
chip_gen: v6e
topology: v6e:2x2x1
jax: 0.10.0
libtpu: 0.0.40
codegen_flags: <defaults>
</compile_context>

<pallas_src>
import numpy as np

import jax
import jax.numpy as jnp
from jax.experimental import pallas as pl
from jax.experimental.pallas import tpu as pltpu

LANE = 128
_VMEM_LIMIT = 48 * 1024 * 1024      # <= v7x physical (64 MiB), headroom on v5e/v6e


def _round_up(x, m):
    return ((x + m - 1) // m) * m


def _cpad(c):
    return max(LANE, _round_up(c, LANE))


# ---------------------------------------------------------------------------
# Fused conv (matmul) kernel: tiled MXU matmul + BN/bias/ReLU/residual epilogue
# with an optional second pre-activated output.
# ---------------------------------------------------------------------------

def _make_conv_kernel(apply_relu, has_residual, dual_output):
    """y = acc*s1 + t1 [+ res]; o = [relu]y; if dual: a = relu(y*s2 + t2)."""

    def kernel(*refs):
        a_ref, b_ref, s1_ref, t1_ref = refs[:4]
        pos = 4
        if dual_output:
            s2_ref, t2_ref = refs[pos], refs[pos + 1]
            pos += 2
        if has_residual:
            r_ref = refs[pos]
            pos += 1
        o_ref = refs[pos]
        pos += 1
        if dual_output:
            act_ref = refs[pos]
            pos += 1
        acc_ref = refs[pos]

        k = pl.program_id(2)

        @pl.when(k == 0)
        def _init():
            acc_ref[...] = jnp.zeros_like(acc_ref)

        acc_ref[...] += jnp.dot(a_ref[...], b_ref[...],
                                preferred_element_type=jnp.float32)

        @pl.when(k == pl.num_programs(2) - 1)
        def _finalize():
            y = acc_ref[...] * s1_ref[...] + t1_ref[...]
            if has_residual:
                y = y + r_ref[...].astype(jnp.float32)
            if apply_relu:
                y = jnp.maximum(y, 0.0)
            o_ref[...] = y.astype(o_ref.dtype)
            if dual_output:
                act = jnp.maximum(y * s2_ref[...] + t2_ref[...], 0.0)
                act_ref[...] = act.astype(act_ref.dtype)

    return kernel


def conv_matmul(col, wmat, scale1, shift1, *, scale2=None, shift2=None,
                residual=None, apply_relu=False, out_dtype=jnp.bfloat16):
    """Tiled matmul with fused epilogue.

    col: (M, K) bf16 dense-K patches; wmat: (K, Np) bf16 (K, Np multiples of
    128); scale/shift: (Np,) f32; residual: (M, Np) bf16 or None.
    If scale2/shift2 are given, a second output relu(y*scale2+shift2) is
    emitted (both outputs bf16).
    """
    M, K = col.shape
    K2, Np = wmat.shape
    assert K == K2 and Np % LANE == 0 and K % LANE == 0
    dual = scale2 is not None

    # Tile sizes.  256-multiple N tiles feed the 2x256x256 MXU (v6e/v7x);
    # K <= 1024 runs as a single reduction step.
    tn = 256 if Np % 256 == 0 else LANE
    if K <= 1024:
        tk = K
    else:
        tk = LANE
        for cand in (512, 384, 256):
            if K % cand == 0:
                tk = cand
                break

    n_par = Np // tn
    tm = min(512, _round_up(M, 8))
    # Keep at least 2 parallel grid blocks when M allows it (v7x has 2 TCs).
    while n_par * ((M + tm - 1) // tm) < 2 and tm > 128:
        tm = max(128, _round_up(tm // 2, 8))

    Mp = _round_up(M, tm)
    if Mp != M:
        col = jnp.pad(col, ((0, Mp - M), (0, 0)))
        if residual is not None:
            residual = jnp.pad(residual, ((0, Mp - M), (0, 0)))

    grid = (Mp // tm, Np // tn, K // tk)

    in_specs = [
        pl.BlockSpec((tm, tk), lambda i, j, k: (i, k)),
        pl.BlockSpec((tk, tn), lambda i, j, k: (k, j)),
        pl.BlockSpec((1, tn), lambda i, j, k: (0, j)),
        pl.BlockSpec((1, tn), lambda i, j, k: (0, j)),
    ]
    operands = [col, wmat,
                scale1.reshape(1, Np).astype(jnp.float32),
                shift1.reshape(1, Np).astype(jnp.float32)]
    if dual:
        in_specs += [pl.BlockSpec((1, tn), lambda i, j, k: (0, j)),
                     pl.BlockSpec((1, tn), lambda i, j, k: (0, j))]
        operands += [scale2.reshape(1, Np).astype(jnp.float32),
                     shift2.reshape(1, Np).astype(jnp.float32)]
    if residual is not None:
        in_specs.append(pl.BlockSpec((tm, tn), lambda i, j, k: (i, j)))
        operands.append(residual)

    out_block = pl.BlockSpec((tm, tn), lambda i, j, k: (i, j))
    if dual:
        out_shape = (jax.ShapeDtypeStruct((Mp, Np), out_dtype),
                     jax.ShapeDtypeStruct((Mp, Np), out_dtype))
        out_specs = (out_block, out_block)
    else:
        out_shape = jax.ShapeDtypeStruct((Mp, Np), out_dtype)
        out_specs = out_block

    n_out = 2 if dual else 1
    in_bytes = sum(int(op.size) * op.dtype.itemsize for op in operands)
    out_bytes = n_out * Mp * Np * np.dtype(out_dtype).itemsize
    cost = pl.CostEstimate(flops=2 * Mp * Np * K, transcendentals=0,
                           bytes_accessed=in_bytes + out_bytes)

    res = pl.pallas_call(
        _make_conv_kernel(apply_relu, residual is not None, dual),
        out_shape=out_shape,
        grid=grid,
        in_specs=in_specs,
        out_specs=out_specs,
        scratch_shapes=[pltpu.VMEM((tm, tn), jnp.float32)],
        compiler_params=pltpu.CompilerParams(
            dimension_semantics=("parallel", "parallel", "arbitrary"),
            vmem_limit_bytes=_VMEM_LIMIT),
        cost_estimate=cost,
    )(*operands)

    if dual:
        o, act = res
        return (o[:M], act[:M]) if Mp != M else (o, act)
    return res[:M] if Mp != M else res


# ---------------------------------------------------------------------------
# Global average pool + classifier (tiled over HW, f32 accumulator)
# ---------------------------------------------------------------------------

def pallas_avgpool_linear(x3d, w, bias):
    """x3d: (N, HW, Cpad) bf16 (already activated); w: (Cpad, NclsPad) f32."""
    N, HW, C = x3d.shape
    Cw, Np = w.shape
    assert Cw == C and C % LANE == 0 and Np % LANE == 0
    inv_hw = 1.0 / float(HW)

    budget = 4 * 1024 * 1024
    t_hw = HW
    for cand in (512, 256, 128, 64, 32, 16, 8):
        if HW % cand == 0 and N * cand * C * x3d.dtype.itemsize <= budget:
            t_hw = cand
            break

    def kernel(x_ref, w_ref, b_ref, o_ref, acc_ref):
        @pl.when(pl.program_id(0) == 0)
        def _init():
            acc_ref[...] = jnp.zeros_like(acc_ref)

        acc_ref[...] += jnp.sum(x_ref[...].astype(jnp.float32), axis=1)

        @pl.when(pl.program_id(0) == pl.num_programs(0) - 1)
        def _finalize():
            pooled = acc_ref[...] * inv_hw
            o_ref[...] = (jnp.dot(pooled, w_ref[...],
                                  preferred_element_type=jnp.float32)
                          + b_ref[...]).astype(o_ref.dtype)

    return pl.pallas_call(
        kernel,
        out_shape=jax.ShapeDtypeStruct((N, Np), jnp.float32),
        grid=(HW // t_hw,),
        in_specs=[pl.BlockSpec((N, t_hw, C), lambda i: (0, i, 0)),
                  pl.BlockSpec((C, Np), lambda i: (0, 0)),
                  pl.BlockSpec((1, Np), lambda i: (0, 0))],
        out_specs=pl.BlockSpec((N, Np), lambda i: (0, 0)),
        scratch_shapes=[pltpu.VMEM((N, C), jnp.float32)],
        compiler_params=pltpu.CompilerParams(
            dimension_semantics=("arbitrary",),
            vmem_limit_bytes=_VMEM_LIMIT),
    )(x3d, w, bias.reshape(1, Np))


# ---------------------------------------------------------------------------
# Glue: dense-K im2col, parameter packing, BN folding
# ---------------------------------------------------------------------------

def _im2col_dense(x, cin, kh, kw, stride, padding):
    """Dense-K im2col: only the first `cin` (real) channels of each tap enter
    K; K is padded once to a multiple of 128.

    TODO(synk): patches are still materialized in HBM by XLA; in-kernel window
    DMA (memory_space=pl.ANY + manual async copies) is not implemented.
    """
    N, H, W, _ = x.shape
    xs = x[..., :cin]
    if padding:
        xs = jnp.pad(xs, ((0, 0), (padding, padding), (padding, padding), (0, 0)))
    Ho = (H + 2 * padding - kh) // stride + 1
    Wo = (W + 2 * padding - kw) // stride + 1
    taps = []
    for i in range(kh):
        for j in range(kw):
            taps.append(xs[:, i:i + (Ho - 1) * stride + 1:stride,
                           j:j + (Wo - 1) * stride + 1:stride, :])
    col = jnp.concatenate(taps, axis=-1) if len(taps) > 1 else taps[0]
    col = col.reshape(N * Ho * Wo, kh * kw * cin)
    k = kh * kw * cin
    k_pad = _round_up(k, LANE)
    if k_pad != k:
        col = jnp.pad(col, ((0, 0), (0, k_pad - k)))
    return col, Ho, Wo


def _prep_conv_dense(w, b, cout_pad):
    """(KH,KW,Cin,Cout) -> dense-K (round_up(KH*KW*Cin,128), Cout_pad) bf16."""
    kh, kw, cin, cout = w.shape
    k = kh * kw * cin
    k_pad = _round_up(k, LANE)
    wm = jnp.zeros((k_pad, cout_pad), jnp.float32)
    wm = wm.at[:k, :cout].set(w.reshape(k, cout))
    bp = jnp.zeros((cout_pad,), jnp.float32).at[:cout].set(b)
    return wm.astype(jnp.bfloat16), bp


def _prep_shortcut(w, b, cin_pad, cout_pad):
    """1x1 shortcut conv weights: K = the (128-padded) stored channel count."""
    cin, cout = w.shape[2], w.shape[3]
    wm = jnp.zeros((cin_pad, cout_pad), jnp.float32).at[:cin, :cout].set(w[0, 0])
    bp = jnp.zeros((cout_pad,), jnp.float32).at[:cout].set(b)
    return wm.astype(jnp.bfloat16), bp


def _bn_scale_shift(bn, c_pad, eps=1e-5):
    """Inference BatchNorm as per-channel scale/shift; padding lanes stay 0."""
    c = bn["gamma"].shape[0]
    inv = 1.0 / jnp.sqrt(bn["var"] + eps)
    s = bn["gamma"] * inv
    t = bn["beta"] - bn["mean"] * s
    sp = jnp.zeros((c_pad,), jnp.float32).at[:c].set(s)
    tp = jnp.zeros((c_pad,), jnp.float32).at[:c].set(t)
    return sp, tp


# ---------------------------------------------------------------------------
# WideResNet forward
# ---------------------------------------------------------------------------

def wide_basic_block(o, a, blk, stride, next_bn):
    """Pre-activation WideBasic block.

    o: raw block input (shortcut source), a: relu(bn1(o)) (residual-branch
    input), both (N,H,W,cin_pad) bf16.  Returns (o_new, a_new) where
    a_new = relu(next_bn(o_new)) is the next block's (or final BN's) input.
    """
    N, H, W, cin_pad = o.shape
    w1, b1 = blk["conv1"]
    cin, cout = w1.shape[2], w1.shape[3]
    cout_pad = _cpad(cout)
    ones = jnp.ones((cout_pad,), jnp.float32)

    # Conv1 (3x3, stride s) with fused BN2+ReLU epilogue: relu(bn2(conv1(a)+b1)).
    col1, Ho, Wo = _im2col_dense(a, cin, 3, 3, stride, 1)
    wm1, bp1 = _prep_conv_dense(w1, b1, cout_pad)
    s2, t2 = _bn_scale_shift(blk["bn2"], cout_pad)
    r2d = conv_matmul(col1, wm1, s2, bp1 * s2 + t2, apply_relu=True,
                      out_dtype=jnp.bfloat16)
    # TODO(synk): Dropout is identity in eval mode (stochastic dropout not implemented).
    r = r2d.reshape(N, Ho, Wo, cout_pad)

    # Shortcut branch (1x1 conv on the raw input when the shape changes).
    if "shortcut" in blk:
        sw, sb = blk["shortcut"]
        wms, bps = _prep_shortcut(sw, sb, cin_pad, cout_pad)
        sc_col = o[:, ::stride, ::stride, :].reshape(N * Ho * Wo, cin_pad)
        sc2d = conv_matmul(sc_col, wms, ones, bps, out_dtype=jnp.bfloat16)
    else:
        sc2d = o.reshape(N * Ho * Wo, cin_pad)

    # Conv2 (3x3, stride 1) with fused residual add; second output is the next
    # BN1+ReLU so no standalone pointwise pass is needed.
    w2, b2 = blk["conv2"]
    col2, _, _ = _im2col_dense(r, cout, 3, 3, 1, 1)
    wm2, bp2 = _prep_conv_dense(w2, b2, cout_pad)
    sn, tn_ = _bn_scale_shift(next_bn, cout_pad)
    o2d, a2d = conv_matmul(col2, wm2, ones, bp2, scale2=sn, shift2=tn_,
                           residual=sc2d, out_dtype=jnp.bfloat16)
    o_new = o2d.reshape(N, Ho, Wo, cout_pad)
    a_new = a2d.reshape(N, Ho, Wo, cout_pad)
    return o_new, a_new


def wideresnet_forward(params, x_nchw):
    x = jnp.transpose(x_nchw, (0, 2, 3, 1)).astype(jnp.bfloat16)   # NCHW -> NHWC
    N, H, W, cin = x.shape

    # Flatten the stage/block structure so every producer conv can fuse the
    # *next* BN1+ReLU into its epilogue.
    blocks = []
    for si, stage in enumerate(params["stages"]):
        stage_stride = 1 if si == 0 else 2
        for bi, blk in enumerate(stage):
            blocks.append((blk, stage_stride if bi == 0 else 1))

    # Initial 3x3 conv; dual output: raw (block-1 shortcut source) and
    # relu(bn1_block1(.)) (block-1 residual-branch input).
    w0, b0 = params["init_conv"]
    cout_pad = _cpad(w0.shape[3])
    col0, H, W = _im2col_dense(x, cin, 3, 3, 1, 1)
    wm0, bp0 = _prep_conv_dense(w0, b0, cout_pad)
    s1, t1 = _bn_scale_shift(blocks[0][0]["bn1"], cout_pad)
    o2d, a2d = conv_matmul(col0, wm0, jnp.ones((cout_pad,), jnp.float32), bp0,
                           scale2=s1, shift2=t1, out_dtype=jnp.bfloat16)
    o = o2d.reshape(N, H, W, cout_pad)
    a = a2d.reshape(N, H, W, cout_pad)

    for idx, (blk, stride) in enumerate(blocks):
        next_bn = blocks[idx + 1][0]["bn1"] if idx + 1 < len(blocks) else params["bn"]
        o, a = wide_basic_block(o, a, blk, stride, next_bn)

    # `a` is already relu(bn_final(o)): global average pool + classifier.
    _, H, W, c_pad = a.shape
    lw, lb = params["linear"]
    ncls = lw.shape[1]
    ncls_pad = _cpad(ncls)
    lwp = jnp.zeros((c_pad, ncls_pad), jnp.float32)
    lwp = lwp.at[:lw.shape[0], :ncls].set(lw)
    lbp = jnp.zeros((ncls_pad,), jnp.float32).at[:ncls].set(lb)
    logits = pallas_avgpool_linear(a.reshape(N, H * W, c_pad), lwp, lbp)
    return logits[:, :ncls]


# ---------------------------------------------------------------------------
# Deterministic parameter construction (PyTorch-like channel counts)
# ---------------------------------------------------------------------------

def init_params(key, *, num_classes=10, depth=10, widen_factor=1):
    k = widen_factor
    l = int((depth - 4) / 6)
    keys = iter(jax.random.split(key, 512))

    def conv_init(kh, kw, cin, cout):
        w = jax.random.normal(next(keys), (kh, kw, cin, cout), jnp.float32)
        w = w * (1.0 / jnp.sqrt(float(kh * kw * cin)))
        b = 0.01 * jax.random.normal(next(keys), (cout,), jnp.float32)
        return (w, b)

    def bn_init(c):
        return {
            "gamma": 1.0 + 0.1 * jax.random.normal(next(keys), (c,), jnp.float32),
            "beta": 0.1 * jax.random.normal(next(keys), (c,), jnp.float32),
            "mean": 0.1 * jax.random.normal(next(keys), (c,), jnp.float32),
            "var": jax.random.uniform(next(keys), (c,), jnp.float32, 0.5, 1.5),
        }

    params = {"init_conv": conv_init(3, 3, 3, 16)}
    in_c = 16
    stages = []
    for out_c, stage_stride in [(16 * k, 1), (32 * k, 2), (64 * k, 2)]:
        blocks = []
        strides = [stage_stride] + [1] * (l - 1)
        for s in strides:
            blk = {
                "bn1": bn_init(in_c),
                "conv1": conv_init(3, 3, in_c, out_c),
                "bn2": bn_init(out_c),
                "conv2": conv_init(3, 3, out_c, out_c),
            }
            if s != 1 or in_c != out_c:
                blk["shortcut"] = conv_init(1, 1, in_c, out_c)
            blocks.append(blk)
            in_c = out_c
        stages.append(blocks)
    params["stages"] = stages
    params["bn"] = bn_init(64 * k)
    lw = jax.random.normal(next(keys), (64 * k, num_classes), jnp.float32)
    lw = lw * (1.0 / jnp.sqrt(float(64 * k)))
    lb = 0.01 * jax.random.normal(next(keys), (num_classes,), jnp.float32)
    params["linear"] = (lw, lb)
    return params


# ---------------------------------------------------------------------------

if __name__ == "__main__":
    key = jax.random.PRNGKey(0)
    k_params, k_x = jax.random.split(key)

    num_classes = 10
    # depth=10 -> one WideBasic block per stage; widen_factor=1 (small, fast).
    params = init_params(k_params, num_classes=num_classes,
                         depth=10, widen_factor=1)

    # Input follows PyTorch NCHW convention: (batch=2, channels=3, 16, 16).
    x = jax.random.normal(k_x, (2, 3, 16, 16), jnp.float32)

    fwd = jax.jit(wideresnet_forward)
    out = jax.block_until_ready(fwd(params, x))

    assert out.shape == (2, num_classes), out.shape
    assert bool(jnp.all(jnp.isfinite(out)))
    print("KERNEL_OK")
</pallas_src>

<mosaic_0001>
module attributes {stable_mosaic.version = 11 : i64} {
  func.func @kernel(%arg0: i32, %arg1: i32, %arg2: i32, %arg3: memref<256x128xbf16, #tpu.memory_space<vmem>>, %arg4: memref<128x128xbf16, #tpu.memory_space<vmem>>, %arg5: memref<1x128xf32, #tpu.memory_space<vmem>>, %arg6: memref<1x128xf32, #tpu.memory_space<vmem>>, %arg7: memref<1x128xf32, #tpu.memory_space<vmem>>, %arg8: memref<1x128xf32, #tpu.memory_space<vmem>>, %arg9: memref<256x128xbf16, #tpu.memory_space<vmem>>, %arg10: memref<256x128xbf16, #tpu.memory_space<vmem>>, %arg11: memref<256x128xf32, #tpu.memory_space<vmem>>) attributes {dimension_semantics = [#tpu.dimension_semantics<parallel>, #tpu.dimension_semantics<parallel>, #tpu.dimension_semantics<arbitrary>], iteration_bounds = array<i64: 2, 1, 1>, scalar_prefetch = 0 : i64, scratch_operands = 1 : i64, tpu.core_type = #tpu.core_type<tc>, window_params = [{transform_indices = @transform_0, window_bounds = array<i64: 256, 128>}, {transform_indices = @transform_1, window_bounds = array<i64: 128, 128>}, {transform_indices = @transform_2, window_bounds = array<i64: 1, 128>}, {transform_indices = @transform_3, window_bounds = array<i64: 1, 128>}, {transform_indices = @transform_4, window_bounds = array<i64: 1, 128>}, {transform_indices = @transform_5, window_bounds = array<i64: 1, 128>}, {transform_indices = @transform_6, window_bounds = array<i64: 256, 128>}, {transform_indices = @transform_7, window_bounds = array<i64: 256, 128>}]} {
    %c0_i32 = arith.constant 0 : i32
    %0 = arith.cmpi eq, %arg2, %c0_i32 : i32
    %1 = arith.extui %0 : i1 to i32
    %c0_i32_0 = arith.constant 0 : i32
    %2 = arith.cmpi ne, %1, %c0_i32_0 : i32
    scf.if %2 {
      %cst_10 = arith.constant 0.000000e+00 : f32
      %12 = vector.broadcast %cst_10 : f32 to vector<256x128xf32>
      %c0_11 = arith.constant 0 : index
      %c0_12 = arith.constant 0 : index
      %13 = vector.load %arg11[%c0_11, %c0_12] : memref<256x128xf32, #tpu.memory_space<vmem>>, vector<256x128xf32>
      tpu.vector_store %arg11[%c0_11, %c0_12], %12 {strides = array<i32>} : memref<256x128xf32, #tpu.memory_space<vmem>>, vector<256x128xf32>,
    } else {
    }
    %c0 = arith.constant 0 : index
    %c0_1 = arith.constant 0 : index
    %3 = vector.load %arg11[%c0, %c0_1] : memref<256x128xf32, #tpu.memory_space<vmem>>, vector<256x128xf32>
    %c0_2 = arith.constant 0 : index
    %c0_3 = arith.constant 0 : index
    %4 = vector.load %arg3[%c0_2, %c0_3] : memref<256x128xbf16, #tpu.memory_space<vmem>>, vector<256x128xbf16>
    %c0_4 = arith.constant 0 : index
    %c0_5 = arith.constant 0 : index
    %5 = vector.load %arg4[%c0_4, %c0_5] : memref<128x128xbf16, #tpu.memory_space<vmem>>, vector<128x128xbf16>
    %cst = arith.constant dense<0.000000e+00> : vector<256x128xf32>
    %6 = tpu.matmul %4, %5, %cst {dimension_numbers = #tpu.dot_dimension_numbers<[1], [0], [0], [1], [0, 0, 1, 1], [], []>} : vector<256x128xbf16>, vector<128x128xbf16>, vector<256x128xf32> -> vector<256x128xf32>
    %7 = arith.addf %3, %6 : vector<256x128xf32>
    %c0_6 = arith.constant 0 : index
    %c0_7 = arith.constant 0 : index
    %8 = vector.load %arg11[%c0_6, %c0_7] : memref<256x128xf32, #tpu.memory_space<vmem>>, vector<256x128xf32>
    tpu.vector_store %arg11[%c0_6, %c0_7], %7 {strides = array<i32>} : memref<256x128xf32, #tpu.memory_space<vmem>>, vector<256x128xf32>,
    %c0_i32_8 = arith.constant 0 : i32
    %9 = arith.cmpi eq, %arg2, %c0_i32_8 : i32
    %10 = arith.extui %9 : i1 to i32
    %c0_i32_9 = arith.constant 0 : i32
    %11 = arith.cmpi ne, %10, %c0_i32_9 : i32
    scf.if %11 {
      %c0_10 = arith.constant 0 : index
      %c0_11 = arith.constant 0 : index
      %12 = vector.load %arg11[%c0_10, %c0_11] : memref<256x128xf32, #tpu.memory_space<vmem>>, vector<256x128xf32>
      %c0_12 = arith.constant 0 : index
      %c0_13 = arith.constant 0 : index
      %13 = vector.load %arg5[%c0_12, %c0_13] : memref<1x128xf32, #tpu.memory_space<vmem>>, vector<1x128xf32>
      %14 = vector.broadcast %13 : vector<1x128xf32> to vector<256x128xf32>
      %15 = arith.mulf %12, %14 : vector<256x128xf32>
      %c0_14 = arith.constant 0 : index
      %c0_15 = arith.constant 0 : index
      %16 = vector.load %arg6[%c0_14, %c0_15] : memref<1x128xf32, #tpu.memory_space<vmem>>, vector<1x128xf32>
      %17 = vector.broadcast %16 : vector<1x128xf32> to vector<256x128xf32>
      %18 = arith.addf %15, %17 : vector<256x128xf32>
      %19 = arith.truncf %18 : vector<256x128xf32> to vector<256x128xbf16>
      %c0_16 = arith.constant 0 : index
      %c0_17 = arith.constant 0 : index
      %20 = vector.load %arg9[%c0_16, %c0_17] : memref<256x128xbf16, #tpu.memory_space<vmem>>, vector<256x128xbf16>
      tpu.vector_store %arg9[%c0_16, %c0_17], %19 {strides = array<i32>} : memref<256x128xbf16, #tpu.memory_space<vmem>>, vector<256x128xbf16>,
      %c0_18 = arith.constant 0 : index
      %c0_19 = arith.constant 0 : index
      %21 = vector.load %arg7[%c0_18, %c0_19] : memref<1x128xf32, #tpu.memory_space<vmem>>, vector<1x128xf32>
      %22 = vector.broadcast %21 : vector<1x128xf32> to vector<256x128xf32>
      %23 = arith.mulf %18, %22 : vector<256x128xf32>
      %c0_20 = arith.constant 0 : index
      %c0_21 = arith.constant 0 : index
      %24 = vector.load %arg8[%c0_20, %c0_21] : memref<1x128xf32, #tpu.memory_space<vmem>>, vector<1x128xf32>
      %25 = vector.broadcast %24 : vector<1x128xf32> to vector<256x128xf32>
      %26 = arith.addf %23, %25 : vector<256x128xf32>
      %cst_22 = arith.constant 0.000000e+00 : f32
      %27 = vector.broadcast %cst_22 : f32 to vector<256x128xf32>
      %28 = arith.maximumf %26, %27 : vector<256x128xf32>
      %29 = arith.truncf %28 : vector<256x128xf32> to vector<256x128xbf16>
      %c0_23 = arith.constant 0 : index
      %c0_24 = arith.constant 0 : index
      %30 = vector.load %arg10[%c0_23, %c0_24] : memref<256x128xbf16, #tpu.memory_space<vmem>>, vector<256x128xbf16>
      tpu.vector_store %arg10[%c0_23, %c0_24], %29 {strides = array<i32>} : memref<256x128xbf16, #tpu.memory_space<vmem>>, vector<256x128xbf16>,
    } else {
    }
    return
  }
  func.func @transform_0(%arg0: i32, %arg1: i32, %arg2: i32) -> (i32, i32) {
    %c0_i32 = arith.constant 0 : i32
    return %arg0, %arg2 : i32, i32
  }
  func.func @transform_1(%arg0: i32, %arg1: i32, %arg2: i32) -> (i32, i32) {
    %c0_i32 = arith.constant 0 : i32
    return %arg2, %arg1 : i32, i32
  }
  func.func @transform_2(%arg0: i32, %arg1: i32, %arg2: i32) -> (i32, i32) {
    %c0_i32 = arith.constant 0 : i32
    %c0_i32_0 = arith.constant 0 : i32
    return %c0_i32, %arg1 : i32, i32
  }
  func.func @transform_3(%arg0: i32, %arg1: i32, %arg2: i32) -> (i32, i32) {
    %c0_i32 = arith.constant 0 : i32
    %c0_i32_0 = arith.constant 0 : i32
    return %c0_i32, %arg1 : i32, i32
  }
  func.func @transform_4(%arg0: i32, %arg1: i32, %arg2: i32) -> (i32, i32) {
    %c0_i32 = arith.constant 0 : i32
    %c0_i32_0 = arith.constant 0 : i32
    return %c0_i32, %arg1 : i32, i32
  }
  func.func @transform_5(%arg0: i32, %arg1: i32, %arg2: i32) -> (i32, i32) {
    %c0_i32 = arith.constant 0 : i32
    %c0_i32_0 = arith.constant 0 : i32
    return %c0_i32, %arg1 : i32, i32
  }
  func.func @transform_6(%arg0: i32, %arg1: i32, %arg2: i32) -> (i32, i32) {
    %c0_i32 = arith.constant 0 : i32
    return %arg0, %arg1 : i32, i32
  }
  func.func @transform_7(%arg0: i32, %arg1: i32, %arg2: i32) -> (i32, i32) {
    %c0_i32 = arith.constant 0 : i32
    return %arg0, %arg1 : i32, i32
  }
}

module attributes {stable_mosaic.version = 11 : i64} {
  func.func @kernel(%arg0: i32, %arg1: i32, %arg2: i32, %arg3: memref<256x256xbf16, #tpu.memory_space<vmem>>, %arg4: memref<256x128xbf16, #tpu.memory_space<vmem>>, %arg5: memref<1x128xf32, #tpu.memory_space<vmem>>, %arg6: memref<1x128xf32, #tpu.memory_space<vmem>>, %arg7: memref<1x128xf32, #tpu.memory_space<vmem>>, %arg8: memref<1x128xf32, #tpu.memory_space<vmem>>, %arg9: memref<256x128xbf16, #tpu.memory_space<vmem>>, %arg10: memref<256x128xbf16, #tpu.memory_space<vmem>>, %arg11: memref<256x128xbf16, #tpu.memory_space<vmem>>, %arg12: memref<256x128xf32, #tpu.memory_space<vmem>>) attributes {dimension_semantics = [#tpu.dimension_semantics<parallel>, #tpu.dimension_semantics<parallel>, #tpu.dimension_semantics<arbitrary>], iteration_bounds = array<i64: 2, 1, 1>, scalar_prefetch = 0 : i64, scratch_operands = 1 : i64, tpu.core_type = #tpu.core_type<tc>, window_params = [{transform_indices = @transform_0, window_bounds = array<i64: 256, 256>}, {transform_indices = @transform_1, window_bounds = array<i64: 256, 128>}, {transform_indices = @transform_2, window_bounds = array<i64: 1, 128>}, {transform_indices = @transform_3, window_bounds = array<i64: 1, 128>}, {transform_indices = @transform_4, window_bounds = array<i64: 1, 128>}, {transform_indices = @transform_5, window_bounds = array<i64: 1, 128>}, {transform_indices = @transform_6, window_bounds = array<i64: 256, 128>}, {transform_indices = @transform_7, window_bounds = array<i64: 256, 128>}, {transform_indices = @transform_8, window_bounds = array<i64: 256, 128>}]} {
    %c0_i32 = arith.constant 0 : i32
    %0 = arith.cmpi eq, %arg2, %c0_i32 : i32
    %1 = arith.extui %0 : i1 to i32
    %c0_i32_0 = arith.constant 0 : i32
    %2 = arith.cmpi ne, %1, %c0_i32_0 : i32
    scf.if %2 {
      %cst_10 = arith.constant 0.000000e+00 : f32
      %12 = vector.broadcast %cst_10 : f32 to vector<256x128xf32>
      %c0_11 = arith.constant 0 : index
      %c0_12 = arith.constant 0 : index
      %13 = vector.load %arg12[%c0_11, %c0_12] : memref<256x128xf32, #tpu.memory_space<vmem>>, vector<256x128xf32>
      tpu.vector_store %arg12[%c0_11, %c0_12], %12 {strides = array<i32>} : memref<256x128xf32, #tpu.memory_space<vmem>>, vector<256x128xf32>,
    } else {
    }
    %c0 = arith.constant 0 : index
    %c0_1 = arith.constant 0 : index
    %3 = vector.load %arg12[%c0, %c0_1] : memref<256x128xf32, #tpu.memory_space<vmem>>, vector<256x128xf32>
    %c0_2 = arith.constant 0 : index
    %c0_3 = arith.constant 0 : index
    %4 = vector.load %arg3[%c0_2, %c0_3] : memref<256x256xbf16, #tpu.memory_space<vmem>>, vector<256x256xbf16>
    %c0_4 = arith.constant 0 : index
    %c0_5 = arith.constant 0 : index
    %5 = vector.load %arg4[%c0_4, %c0_5] : memref<256x128xbf16, #tpu.memory_space<vmem>>, vector<256x128xbf16>
    %cst = arith.constant dense<0.000000e+00> : vector<256x128xf32>
    %6 = tpu.matmul %4, %5, %cst {dimension_numbers = #tpu.dot_dimension_numbers<[1], [0], [0], [1], [0, 0, 1, 1], [], []>} : vector<256x256xbf16>, vector<256x128xbf16>, vector<256x128xf32> -> vector<256x128xf32>
    %7 = arith.addf %3, %6 : vector<256x128xf32>
    %c0_6 = arith.constant 0 : index
    %c0_7 = arith.constant 0 : index
    %8 = vector.load %arg12[%c0_6, %c0_7] : memref<256x128xf32, #tpu.memory_space<vmem>>, vector<256x128xf32>
    tpu.vector_store %arg12[%c0_6, %c0_7], %7 {strides = array<i32>} : memref<256x128xf32, #tpu.memory_space<vmem>>, vector<256x128xf32>,
    %c0_i32_8 = arith.constant 0 : i32
    %9 = arith.cmpi eq, %arg2, %c0_i32_8 : i32
    %10 = arith.extui %9 : i1 to i32
    %c0_i32_9 = arith.constant 0 : i32
    %11 = arith.cmpi ne, %10, %c0_i32_9 : i32
    scf.if %11 {
      %c0_10 = arith.constant 0 : index
      %c0_11 = arith.constant 0 : index
      %12 = vector.load %arg12[%c0_10, %c0_11] : memref<256x128xf32, #tpu.memory_space<vmem>>, vector<256x128xf32>
      %c0_12 = arith.constant 0 : index
      %c0_13 = arith.constant 0 : index
      %13 = vector.load %arg5[%c0_12, %c0_13] : memref<1x128xf32, #tpu.memory_space<vmem>>, vector<1x128xf32>
      %14 = vector.broadcast %13 : vector<1x128xf32> to vector<256x128xf32>
      %15 = arith.mulf %12, %14 : vector<256x128xf32>
      %c0_14 = arith.constant 0 : index
      %c0_15 = arith.constant 0 : index
      %16 = vector.load %arg6[%c0_14, %c0_15] : memref<1x128xf32, #tpu.memory_space<vmem>>, vector<1x128xf32>
      %17 = vector.broadcast %16 : vector<1x128xf32> to vector<256x128xf32>
      %18 = arith.addf %15, %17 : vector<256x128xf32>
      %c0_16 = arith.constant 0 : index
      %c0_17 = arith.constant 0 : index
      %19 = vector.load %arg9[%c0_16, %c0_17] : memref<256x128xbf16, #tpu.memory_space<vmem>>, vector<256x128xbf16>
      %20 = arith.extf %19 : vector<256x128xbf16> to vector<256x128xf32>
      %21 = arith.addf %18, %20 : vector<256x128xf32>
      %22 = arith.truncf %21 : vector<256x128xf32> to vector<256x128xbf16>
      %c0_18 = arith.constant 0 : index
      %c0_19 = arith.constant 0 : index
      %23 = vector.load %arg10[%c0_18, %c0_19] : memref<256x128xbf16, #tpu.memory_space<vmem>>, vector<256x128xbf16>
      tpu.vector_store %arg10[%c0_18, %c0_19], %22 {strides = array<i32>} : memref<256x128xbf16, #tpu.memory_space<vmem>>, vector<256x128xbf16>,
      %c0_20 = arith.constant 0 : index
      %c0_21 = arith.constant 0 : index
      %24 = vector.load %arg7[%c0_20, %c0_21] : memref<1x128xf32, #tpu.memory_space<vmem>>, vector<1x128xf32>
      %25 = vector.broadcast %24 : vector<1x128xf32> to vector<256x128xf32>
      %26 = arith.mulf %21, %25 : vector<256x128xf32>
      %c0_22 = arith.constant 0 : index
      %c0_23 = arith.constant 0 : index
      %27 = vector.load %arg8[%c0_22, %c0_23] : memref<1x128xf32, #tpu.memory_space<vmem>>, vector<1x128xf32>
      %28 = vector.broadcast %27 : vector<1x128xf32> to vector<256x128xf32>
      %29 = arith.addf %26, %28 : vector<256x128xf32>
      %cst_24 = arith.constant 0.000000e+00 : f32
      %30 = vector.broadcast %cst_24 : f32 to vector<256x128xf32>
      %31 = arith.maximumf %29, %30 : vector<256x128xf32>
      %32 = arith.truncf %31 : vector<256x128xf32> to vector<256x128xbf16>
      %c0_25 = arith.constant 0 : index
      %c0_26 = arith.constant 0 : index
      %33 = vector.load %arg11[%c0_25, %c0_26] : memref<256x128xbf16, #tpu.memory_space<vmem>>, vector<256x128xbf16>
      tpu.vector_store %arg11[%c0_25, %c0_26], %32 {strides = array<i32>} : memref<256x128xbf16, #tpu.memory_space<vmem>>, vector<256x128xbf16>,
    } else {
    }
    return
  }
  func.func @transform_0(%arg0: i32, %arg1: i32, %arg2: i32) -> (i32, i32) {
    %c0_i32 = arith.constant 0 : i32
    return %arg0, %arg2 : i32, i32
  }
  func.func @transform_1(%arg0: i32, %arg1: i32, %arg2: i32) -> (i32, i32) {
    %c0_i32 = arith.constant 0 : i32
    return %arg2, %arg1 : i32, i32
  }
  func.func @transform_2(%arg0: i32, %arg1: i32, %arg2: i32) -> (i32, i32) {
    %c0_i32 = arith.constant 0 : i32
    %c0_i32_0 = arith.constant 0 : i32
    return %c0_i32, %arg1 : i32, i32
  }
  func.func @transform_3(%arg0: i32, %arg1: i32, %arg2: i32) -> (i32, i32) {
    %c0_i32 = arith.constant 0 : i32
    %c0_i32_0 = arith.constant 0 : i32
    return %c0_i32, %arg1 : i32, i32
  }
  func.func @transform_4(%arg0: i32, %arg1: i32, %arg2: i32) -> (i32, i32) {
    %c0_i32 = arith.constant 0 : i32
    %c0_i32_0 = arith.constant 0 : i32
    return %c0_i32, %arg1 : i32, i32
  }
  func.func @transform_5(%arg0: i32, %arg1: i32, %arg2: i32) -> (i32, i32) {
    %c0_i32 = arith.constant 0 : i32
    %c0_i32_0 = arith.constant 0 : i32
    return %c0_i32, %arg1 : i32, i32
  }
  func.func @transform_6(%arg0: i32, %arg1: i32, %arg2: i32) -> (i32, i32) {
    %c0_i32 = arith.constant 0 : i32
    return %arg0, %arg1 : i32, i32
  }
  func.func @transform_7(%arg0: i32, %arg1: i32, %arg2: i32) -> (i32, i32) {
    %c0_i32 = arith.constant 0 : i32
    return %arg0, %arg1 : i32, i32
  }
  func.func @transform_8(%arg0: i32, %arg1: i32, %arg2: i32) -> (i32, i32) {
    %c0_i32 = arith.constant 0 : i32
    return %arg0, %arg1 : i32, i32
  }
}

module attributes {stable_mosaic.version = 11 : i64} {
  func.func @kernel(%arg0: i32, %arg1: i32, %arg2: i32, %arg3: memref<256x256xbf16, #tpu.memory_space<vmem>>, %arg4: memref<256x128xbf16, #tpu.memory_space<vmem>>, %arg5: memref<1x128xf32, #tpu.memory_space<vmem>>, %arg6: memref<1x128xf32, #tpu.memory_space<vmem>>, %arg7: memref<256x128xbf16, #tpu.memory_space<vmem>>, %arg8: memref<256x128xf32, #tpu.memory_space<vmem>>) attributes {dimension_semantics = [#tpu.dimension_semantics<parallel>, #tpu.dimension_semantics<parallel>, #tpu.dimension_semantics<arbitrary>], iteration_bounds = array<i64: 2, 1, 1>, scalar_prefetch = 0 : i64, scratch_operands = 1 : i64, tpu.core_type = #tpu.core_type<tc>, window_params = [{transform_indices = @transform_0, window_bounds = array<i64: 256, 256>}, {transform_indices = @transform_1, window_bounds = array<i64: 256, 128>}, {transform_indices = @transform_2, window_bounds = array<i64: 1, 128>}, {transform_indices = @transform_3, window_bounds = array<i64: 1, 128>}, {transform_indices = @transform_4, window_bounds = array<i64: 256, 128>}]} {
    %c0_i32 = arith.constant 0 : i32
    %0 = arith.cmpi eq, %arg2, %c0_i32 : i32
    %1 = arith.extui %0 : i1 to i32
    %c0_i32_0 = arith.constant 0 : i32
    %2 = arith.cmpi ne, %1, %c0_i32_0 : i32
    scf.if %2 {
      %cst_10 = arith.constant 0.000000e+00 : f32
      %12 = vector.broadcast %cst_10 : f32 to vector<256x128xf32>
      %c0_11 = arith.constant 0 : index
      %c0_12 = arith.constant 0 : index
      %13 = vector.load %arg8[%c0_11, %c0_12] : memref<256x128xf32, #tpu.memory_space<vmem>>, vector<256x128xf32>
      tpu.vector_store %arg8[%c0_11, %c0_12], %12 {strides = array<i32>} : memref<256x128xf32, #tpu.memory_space<vmem>>, vector<256x128xf32>,
    } else {
    }
    %c0 = arith.constant 0 : index
    %c0_1 = arith.constant 0 : index
    %3 = vector.load %arg8[%c0, %c0_1] : memref<256x128xf32, #tpu.memory_space<vmem>>, vector<256x128xf32>
    %c0_2 = arith.constant 0 : index
    %c0_3 = arith.constant 0 : index
    %4 = vector.load %arg3[%c0_2, %c0_3] : memref<256x256xbf16, #tpu.memory_space<vmem>>, vector<256x256xbf16>
    %c0_4 = arith.constant 0 : index
    %c0_5 = arith.constant 0 : index
    %5 = vector.load %arg4[%c0_4, %c0_5] : memref<256x128xbf16, #tpu.memory_space<vmem>>, vector<256x128xbf16>
    %cst = arith.constant dense<0.000000e+00> : vector<256x128xf32>
    %6 = tpu.matmul %4, %5, %cst {dimension_numbers = #tpu.dot_dimension_numbers<[1], [0], [0], [1], [0, 0, 1, 1], [], []>} : vector<256x256xbf16>, vector<256x128xbf16>, vector<256x128xf32> -> vector<256x128xf32>
    %7 = arith.addf %3, %6 : vector<256x128xf32>
    %c0_6 = arith.constant 0 : index
    %c0_7 = arith.constant 0 : index
    %8 = vector.load %arg8[%c0_6, %c0_7] : memref<256x128xf32, #tpu.memory_space<vmem>>, vector<256x128xf32>
    tpu.vector_store %arg8[%c0_6, %c0_7], %7 {strides = array<i32>} : memref<256x128xf32, #tpu.memory_space<vmem>>, vector<256x128xf32>,
    %c0_i32_8 = arith.constant 0 : i32
    %9 = arith.cmpi eq, %arg2, %c0_i32_8 : i32
    %10 = arith.extui %9 : i1 to i32
    %c0_i32_9 = arith.constant 0 : i32
    %11 = arith.cmpi ne, %10, %c0_i32_9 : i32
    scf.if %11 {
      %c0_10 = arith.constant 0 : index
      %c0_11 = arith.constant 0 : index
      %12 = vector.load %arg8[%c0_10, %c0_11] : memref<256x128xf32, #tpu.memory_space<vmem>>, vector<256x128xf32>
      %c0_12 = arith.constant 0 : index
      %c0_13 = arith.constant 0 : index
      %13 = vector.load %arg5[%c0_12, %c0_13] : memref<1x128xf32, #tpu.memory_space<vmem>>, vector<1x128xf32>
      %14 = vector.broadcast %13 : vector<1x128xf32> to vector<256x128xf32>
      %15 = arith.mulf %12, %14 : vector<256x128xf32>
      %c0_14 = arith.constant 0 : index
      %c0_15 = arith.constant 0 : index
      %16 = vector.load %arg6[%c0_14, %c0_15] : memref<1x128xf32, #tpu.memory_space<vmem>>, vector<1x128xf32>
      %17 = vector.broadcast %16 : vector<1x128xf32> to vector<256x128xf32>
      %18 = arith.addf %15, %17 : vector<256x128xf32>
      %cst_16 = arith.constant 0.000000e+00 : f32
      %19 = vector.broadcast %cst_16 : f32 to vector<256x128xf32>
      %20 = arith.maximumf %18, %19 : vector<256x128xf32>
      %21 = arith.truncf %20 : vector<256x128xf32> to vector<256x128xbf16>
      %c0_17 = arith.constant 0 : index
      %c0_18 = arith.constant 0 : index
      %22 = vector.load %arg7[%c0_17, %c0_18] : memref<256x128xbf16, #tpu.memory_space<vmem>>, vector<256x128xbf16>
      tpu.vector_store %arg7[%c0_17, %c0_18], %21 {strides = array<i32>} : memref<256x128xbf16, #tpu.memory_space<vmem>>, vector<256x128xbf16>,
    } else {
    }
    return
  }
  func.func @transform_0(%arg0: i32, %arg1: i32, %arg2: i32) -> (i32, i32) {
    %c0_i32 = arith.constant 0 : i32
    return %arg0, %arg2 : i32, i32
  }
  func.func @transform_1(%arg0: i32, %arg1: i32, %arg2: i32) -> (i32, i32) {
    %c0_i32 = arith.constant 0 : i32
    return %arg2, %arg1 : i32, i32
  }
  func.func @transform_2(%arg0: i32, %arg1: i32, %arg2: i32) -> (i32, i32) {
    %c0_i32 = arith.constant 0 : i32
    %c0_i32_0 = arith.constant 0 : i32
    return %c0_i32, %arg1 : i32, i32
  }
  func.func @transform_3(%arg0: i32, %arg1: i32, %arg2: i32) -> (i32, i32) {
    %c0_i32 = arith.constant 0 : i32
    %c0_i32_0 = arith.constant 0 : i32
    return %c0_i32, %arg1 : i32, i32
  }
  func.func @transform_4(%arg0: i32, %arg1: i32, %arg2: i32) -> (i32, i32) {
    %c0_i32 = arith.constant 0 : i32
    return %arg0, %arg1 : i32, i32
  }
}

module attributes {stable_mosaic.version = 11 : i64} {
  func.func @kernel(%arg0: i32, %arg1: i32, %arg2: i32, %arg3: memref<128x256xbf16, #tpu.memory_space<vmem>>, %arg4: memref<256x128xbf16, #tpu.memory_space<vmem>>, %arg5: memref<1x128xf32, #tpu.memory_space<vmem>>, %arg6: memref<1x128xf32, #tpu.memory_space<vmem>>, %arg7: memref<128x128xbf16, #tpu.memory_space<vmem>>, %arg8: memref<128x128xf32, #tpu.memory_space<vmem>>) attributes {dimension_semantics = [#tpu.dimension_semantics<parallel>, #tpu.dimension_semantics<parallel>, #tpu.dimension_semantics<arbitrary>], iteration_bounds = array<i64: 1, 1, 1>, scalar_prefetch = 0 : i64, scratch_operands = 1 : i64, tpu.core_type = #tpu.core_type<tc>, window_params = [{transform_indices = @transform_0, window_bounds = array<i64: 128, 256>}, {transform_indices = @transform_1, window_bounds = array<i64: 256, 128>}, {transform_indices = @transform_2, window_bounds = array<i64: 1, 128>}, {transform_indices = @transform_3, window_bounds = array<i64: 1, 128>}, {transform_indices = @transform_4, window_bounds = array<i64: 128, 128>}]} {
    %c0_i32 = arith.constant 0 : i32
    %0 = arith.cmpi eq, %arg2, %c0_i32 : i32
    %1 = arith.extui %0 : i1 to i32
    %c0_i32_0 = arith.constant 0 : i32
    %2 = arith.cmpi ne, %1, %c0_i32_0 : i32
    scf.if %2 {
      %cst_10 = arith.constant 0.000000e+00 : f32
      %12 = vector.broadcast %cst_10 : f32 to vector<128x128xf32>
      %c0_11 = arith.constant 0 : index
      %c0_12 = arith.constant 0 : index
      %13 = vector.load %arg8[%c0_11, %c0_12] : memref<128x128xf32, #tpu.memory_space<vmem>>, vector<128x128xf32>
      tpu.vector_store %arg8[%c0_11, %c0_12], %12 {strides = array<i32>} : memref<128x128xf32, #tpu.memory_space<vmem>>, vector<128x128xf32>,
    } else {
    }
    %c0 = arith.constant 0 : index
    %c0_1 = arith.constant 0 : index
    %3 = vector.load %arg8[%c0, %c0_1] : memref<128x128xf32, #tpu.memory_space<vmem>>, vector<128x128xf32>
    %c0_2 = arith.constant 0 : index
    %c0_3 = arith.constant 0 : index
    %4 = vector.load %arg3[%c0_2, %c0_3] : memref<128x256xbf16, #tpu.memory_space<vmem>>, vector<128x256xbf16>
    %c0_4 = arith.constant 0 : index
    %c0_5 = arith.constant 0 : index
    %5 = vector.load %arg4[%c0_4, %c0_5] : memref<256x128xbf16, #tpu.memory_space<vmem>>, vector<256x128xbf16>
    %cst = arith.constant dense<0.000000e+00> : vector<128x128xf32>
    %6 = tpu.matmul %4, %5, %cst {dimension_numbers = #tpu.dot_dimension_numbers<[1], [0], [0], [1], [0, 0, 1, 1], [], []>} : vector<128x256xbf16>, vector<256x128xbf16>, vector<128x128xf32> -> vector<128x128xf32>
    %7 = arith.addf %3, %6 : vector<128x128xf32>
    %c0_6 = arith.constant 0 : index
    %c0_7 = arith.constant 0 : index
    %8 = vector.load %arg8[%c0_6, %c0_7] : memref<128x128xf32, #tpu.memory_space<vmem>>, vector<128x128xf32>
    tpu.vector_store %arg8[%c0_6, %c0_7], %7 {strides = array<i32>} : memref<128x128xf32, #tpu.memory_space<vmem>>, vector<128x128xf32>,
    %c0_i32_8 = arith.constant 0 : i32
    %9 = arith.cmpi eq, %arg2, %c0_i32_8 : i32
    %10 = arith.extui %9 : i1 to i32
    %c0_i32_9 = arith.constant 0 : i32
    %11 = arith.cmpi ne, %10, %c0_i32_9 : i32
    scf.if %11 {
      %c0_10 = arith.constant 0 : index
      %c0_11 = arith.constant 0 : index
      %12 = vector.load %arg8[%c0_10, %c0_11] : memref<128x128xf32, #tpu.memory_space<vmem>>, vector<128x128xf32>
      %c0_12 = arith.constant 0 : index
      %c0_13 = arith.constant 0 : index
      %13 = vector.load %arg5[%c0_12, %c0_13] : memref<1x128xf32, #tpu.memory_space<vmem>>, vector<1x128xf32>
      %14 = vector.broadcast %13 : vector<1x128xf32> to vector<128x128xf32>
      %15 = arith.mulf %12, %14 : vector<128x128xf32>
      %c0_14 = arith.constant 0 : index
      %c0_15 = arith.constant 0 : index
      %16 = vector.load %arg6[%c0_14, %c0_15] : memref<1x128xf32, #tpu.memory_space<vmem>>, vector<1x128xf32>
      %17 = vector.broadcast %16 : vector<1x128xf32> to vector<128x128xf32>
      %18 = arith.addf %15, %17 : vector<128x128xf32>
      %cst_16 = arith.constant 0.000000e+00 : f32
      %19 = vector.broadcast %cst_16 : f32 to vector<128x128xf32>
      %20 = arith.maximumf %18, %19 : vector<128x128xf32>
      %21 = arith.truncf %20 : vector<128x128xf32> to vector<128x128xbf16>
      %c0_17 = arith.constant 0 : index
      %c0_18 = arith.constant 0 : index
      %22 = vector.load %arg7[%c0_17, %c0_18] : memref<128x128xbf16, #tpu.memory_space<vmem>>, vector<128x128xbf16>
      tpu.vector_store %arg7[%c0_17, %c0_18], %21 {strides = array<i32>} : memref<128x128xbf16, #tpu.memory_space<vmem>>, vector<128x128xbf16>,
    } else {
    }
    return
  }
  func.func @transform_0(%arg0: i32, %arg1: i32, %arg2: i32) -> (i32, i32) {
    %c0_i32 = arith.constant 0 : i32
    return %arg0, %arg2 : i32, i32
  }
  func.func @transform_1(%arg0: i32, %arg1: i32, %arg2: i32) -> (i32, i32) {
    %c0_i32 = arith.constant 0 : i32
    return %arg2, %arg1 : i32, i32
  }
  func.func @transform_2(%arg0: i32, %arg1: i32, %arg2: i32) -> (i32, i32) {
    %c0_i32 = arith.constant 0 : i32
    %c0_i32_0 = arith.constant 0 : i32
    return %c0_i32, %arg1 : i32, i32
  }
  func.func @transform_3(%arg0: i32, %arg1: i32, %arg2: i32) -> (i32, i32) {
    %c0_i32 = arith.constant 0 : i32
    %c0_i32_0 = arith.constant 0 : i32
    return %c0_i32, %arg1 : i32, i32
  }
  func.func @transform_4(%arg0: i32, %arg1: i32, %arg2: i32) -> (i32, i32) {
    %c0_i32 = arith.constant 0 : i32
    return %arg0, %arg1 : i32, i32
  }
}

module attributes {stable_mosaic.version = 11 : i64} {
  func.func @kernel(%arg0: i32, %arg1: i32, %arg2: i32, %arg3: memref<128x128xbf16, #tpu.memory_space<vmem>>, %arg4: memref<128x128xbf16, #tpu.memory_space<vmem>>, %arg5: memref<1x128xf32, #tpu.memory_space<vmem>>, %arg6: memref<1x128xf32, #tpu.memory_space<vmem>>, %arg7: memref<128x128xbf16, #tpu.memory_space<vmem>>, %arg8: memref<128x128xf32, #tpu.memory_space<vmem>>) attributes {dimension_semantics = [#tpu.dimension_semantics<parallel>, #tpu.dimension_semantics<parallel>, #tpu.dimension_semantics<arbitrary>], iteration_bounds = array<i64: 1, 1, 1>, scalar_prefetch = 0 : i64, scratch_operands = 1 : i64, tpu.core_type = #tpu.core_type<tc>, window_params = [{transform_indices = @transform_0, window_bounds = array<i64: 128, 128>}, {transform_indices = @transform_1, window_bounds = array<i64: 128, 128>}, {transform_indices = @transform_2, window_bounds = array<i64: 1, 128>}, {transform_indices = @transform_3, window_bounds = array<i64: 1, 128>}, {transform_indices = @transform_4, window_bounds = array<i64: 128, 128>}]} {
    %c0_i32 = arith.constant 0 : i32
    %0 = arith.cmpi eq, %arg2, %c0_i32 : i32
    %1 = arith.extui %0 : i1 to i32
    %c0_i32_0 = arith.constant 0 : i32
    %2 = arith.cmpi ne, %1, %c0_i32_0 : i32
    scf.if %2 {
      %cst_10 = arith.constant 0.000000e+00 : f32
      %12 = vector.broadcast %cst_10 : f32 to vector<128x128xf32>
      %c0_11 = arith.constant 0 : index
      %c0_12 = arith.constant 0 : index
      %13 = vector.load %arg8[%c0_11, %c0_12] : memref<128x128xf32, #tpu.memory_space<vmem>>, vector<128x128xf32>
      tpu.vector_store %arg8[%c0_11, %c0_12], %12 {strides = array<i32>} : memref<128x128xf32, #tpu.memory_space<vmem>>, vector<128x128xf32>,
    } else {
    }
    %c0 = arith.constant 0 : index
    %c0_1 = arith.constant 0 : index
    %3 = vector.load %arg8[%c0, %c0_1] : memref<128x128xf32, #tpu.memory_space<vmem>>, vector<128x128xf32>
    %c0_2 = arith.constant 0 : index
    %c0_3 = arith.constant 0 : index
    %4 = vector.load %arg3[%c0_2, %c0_3] : memref<128x128xbf16, #tpu.memory_space<vmem>>, vector<128x128xbf16>
    %c0_4 = arith.constant 0 : index
    %c0_5 = arith.constant 0 : index
    %5 = vector.load %arg4[%c0_4, %c0_5] : memref<128x128xbf16, #tpu.memory_space<vmem>>, vector<128x128xbf16>
    %cst = arith.constant dense<0.000000e+00> : vector<128x128xf32>
    %6 = tpu.matmul %4, %5, %cst {dimension_numbers = #tpu.dot_dimension_numbers<[1], [0], [0], [1], [0, 0, 1, 1], [], []>} : vector<128x128xbf16>, vector<128x128xbf16>, vector<128x128xf32> -> vector<128x128xf32>
    %7 = arith.addf %3, %6 : vector<128x128xf32>
    %c0_6 = arith.constant 0 : index
    %c0_7 = arith.constant 0 : index
    %8 = vector.load %arg8[%c0_6, %c0_7] : memref<128x128xf32, #tpu.memory_space<vmem>>, vector<128x128xf32>
    tpu.vector_store %arg8[%c0_6, %c0_7], %7 {strides = array<i32>} : memref<128x128xf32, #tpu.memory_space<vmem>>, vector<128x128xf32>,
    %c0_i32_8 = arith.constant 0 : i32
    %9 = arith.cmpi eq, %arg2, %c0_i32_8 : i32
    %10 = arith.extui %9 : i1 to i32
    %c0_i32_9 = arith.constant 0 : i32
    %11 = arith.cmpi ne, %10, %c0_i32_9 : i32
    scf.if %11 {
      %c0_10 = arith.constant 0 : index
      %c0_11 = arith.constant 0 : index
      %12 = vector.load %arg8[%c0_10, %c0_11] : memref<128x128xf32, #tpu.memory_space<vmem>>, vector<128x128xf32>
      %c0_12 = arith.constant 0 : index
      %c0_13 = arith.constant 0 : index
      %13 = vector.load %arg5[%c0_12, %c0_13] : memref<1x128xf32, #tpu.memory_space<vmem>>, vector<1x128xf32>
      %14 = vector.broadcast %13 : vector<1x128xf32> to vector<128x128xf32>
      %15 = arith.mulf %12, %14 : vector<128x128xf32>
      %c0_14 = arith.constant 0 : index
      %c0_15 = arith.constant 0 : index
      %16 = vector.load %arg6[%c0_14, %c0_15] : memref<1x128xf32, #tpu.memory_space<vmem>>, vector<1x128xf32>
      %17 = vector.broadcast %16 : vector<1x128xf32> to vector<128x128xf32>
      %18 = arith.addf %15, %17 : vector<128x128xf32>
      %19 = arith.truncf %18 : vector<128x128xf32> to vector<128x128xbf16>
      %c0_16 = arith.constant 0 : index
      %c0_17 = arith.constant 0 : index
      %20 = vector.load %arg7[%c0_16, %c0_17] : memref<128x128xbf16, #tpu.memory_space<vmem>>, vector<128x128xbf16>
      tpu.vector_store %arg7[%c0_16, %c0_17], %19 {strides = array<i32>} : memref<128x128xbf16, #tpu.memory_space<vmem>>, vector<128x128xbf16>,
    } else {
    }
    return
  }
  func.func @transform_0(%arg0: i32, %arg1: i32, %arg2: i32) -> (i32, i32) {
    %c0_i32 = arith.constant 0 : i32
    return %arg0, %arg2 : i32, i32
  }
  func.func @transform_1(%arg0: i32, %arg1: i32, %arg2: i32) -> (i32, i32) {
    %c0_i32 = arith.constant 0 : i32
    return %arg2, %arg1 : i32, i32
  }
  func.func @transform_2(%arg0: i32, %arg1: i32, %arg2: i32) -> (i32, i32) {
    %c0_i32 = arith.constant 0 : i32
    %c0_i32_0 = arith.constant 0 : i32
    return %c0_i32, %arg1 : i32, i32
  }
  func.func @transform_3(%arg0: i32, %arg1: i32, %arg2: i32) -> (i32, i32) {
    %c0_i32 = arith.constant 0 : i32
    %c0_i32_0 = arith.constant 0 : i32
    return %c0_i32, %arg1 : i32, i32
  }
  func.func @transform_4(%arg0: i32, %arg1: i32, %arg2: i32) -> (i32, i32) {
    %c0_i32 = arith.constant 0 : i32
    return %arg0, %arg1 : i32, i32
  }
}

module attributes {stable_mosaic.version = 11 : i64} {
  func.func @kernel(%arg0: i32, %arg1: i32, %arg2: i32, %arg3: memref<128x384xbf16, #tpu.memory_space<vmem>>, %arg4: memref<384x128xbf16, #tpu.memory_space<vmem>>, %arg5: memref<1x128xf32, #tpu.memory_space<vmem>>, %arg6: memref<1x128xf32, #tpu.memory_space<vmem>>, %arg7: memref<1x128xf32, #tpu.memory_space<vmem>>, %arg8: memref<1x128xf32, #tpu.memory_space<vmem>>, %arg9: memref<128x128xbf16, #tpu.memory_space<vmem>>, %arg10: memref<128x128xbf16, #tpu.memory_space<vmem>>, %arg11: memref<128x128xbf16, #tpu.memory_space<vmem>>, %arg12: memref<128x128xf32, #tpu.memory_space<vmem>>) attributes {dimension_semantics = [#tpu.dimension_semantics<parallel>, #tpu.dimension_semantics<parallel>, #tpu.dimension_semantics<arbitrary>], iteration_bounds = array<i64: 1, 1, 1>, scalar_prefetch = 0 : i64, scratch_operands = 1 : i64, tpu.core_type = #tpu.core_type<tc>, window_params = [{transform_indices = @transform_0, window_bounds = array<i64: 128, 384>}, {transform_indices = @transform_1, window_bounds = array<i64: 384, 128>}, {transform_indices = @transform_2, window_bounds = array<i64: 1, 128>}, {transform_indices = @transform_3, window_bounds = array<i64: 1, 128>}, {transform_indices = @transform_4, window_bounds = array<i64: 1, 128>}, {transform_indices = @transform_5, window_bounds = array<i64: 1, 128>}, {transform_indices = @transform_6, window_bounds = array<i64: 128, 128>}, {transform_indices = @transform_7, window_bounds = array<i64: 128, 128>}, {transform_indices = @transform_8, window_bounds = array<i64: 128, 128>}]} {
    %c0_i32 = arith.constant 0 : i32
    %0 = arith.cmpi eq, %arg2, %c0_i32 : i32
    %1 = arith.extui %0 : i1 to i32
    %c0_i32_0 = arith.constant 0 : i32
    %2 = arith.cmpi ne, %1, %c0_i32_0 : i32
    scf.if %2 {
      %cst_10 = arith.constant 0.000000e+00 : f32
      %12 = vector.broadcast %cst_10 : f32 to vector<128x128xf32>
      %c0_11 = arith.constant 0 : index
      %c0_12 = arith.constant 0 : index
      %13 = vector.load %arg12[%c0_11, %c0_12] : memref<128x128xf32, #tpu.memory_space<vmem>>, vector<128x128xf32>
      tpu.vector_store %arg12[%c0_11, %c0_12], %12 {strides = array<i32>} : memref<128x128xf32, #tpu.memory_space<vmem>>, vector<128x128xf32>,
    } else {
    }
    %c0 = arith.constant 0 : index
    %c0_1 = arith.constant 0 : index
    %3 = vector.load %arg12[%c0, %c0_1] : memref<128x128xf32, #tpu.memory_space<vmem>>, vector<128x128xf32>
    %c0_2 = arith.constant 0 : index
    %c0_3 = arith.constant 0 : index
    %4 = vector.load %arg3[%c0_2, %c0_3] : memref<128x384xbf16, #tpu.memory_space<vmem>>, vector<128x384xbf16>
    %c0_4 = arith.constant 0 : index
    %c0_5 = arith.constant 0 : index
    %5 = vector.load %arg4[%c0_4, %c0_5] : memref<384x128xbf16, #tpu.memory_space<vmem>>, vector<384x128xbf16>
    %cst = arith.constant dense<0.000000e+00> : vector<128x128xf32>
    %6 = tpu.matmul %4, %5, %cst {dimension_numbers = #tpu.dot_dimension_numbers<[1], [0], [0], [1], [0, 0, 1, 1], [], []>} : vector<128x384xbf16>, vector<384x128xbf16>, vector<128x128xf32> -> vector<128x128xf32>
    %7 = arith.addf %3, %6 : vector<128x128xf32>
    %c0_6 = arith.constant 0 : index
    %c0_7 = arith.constant 0 : index
    %8 = vector.load %arg12[%c0_6, %c0_7] : memref<128x128xf32, #tpu.memory_space<vmem>>, vector<128x128xf32>
    tpu.vector_store %arg12[%c0_6, %c0_7], %7 {strides = array<i32>} : memref<128x128xf32, #tpu.memory_space<vmem>>, vector<128x128xf32>,
    %c0_i32_8 = arith.constant 0 : i32
    %9 = arith.cmpi eq, %arg2, %c0_i32_8 : i32
    %10 = arith.extui %9 : i1 to i32
    %c0_i32_9 = arith.constant 0 : i32
    %11 = arith.cmpi ne, %10, %c0_i32_9 : i32
    scf.if %11 {
      %c0_10 = arith.constant 0 : index
      %c0_11 = arith.constant 0 : index
      %12 = vector.load %arg12[%c0_10, %c0_11] : memref<128x128xf32, #tpu.memory_space<vmem>>, vector<128x128xf32>
      %c0_12 = arith.constant 0 : index
      %c0_13 = arith.constant 0 : index
      %13 = vector.load %arg5[%c0_12, %c0_13] : memref<1x128xf32, #tpu.memory_space<vmem>>, vector<1x128xf32>
      %14 = vector.broadcast %13 : vector<1x128xf32> to vector<128x128xf32>
      %15 = arith.mulf %12, %14 : vector<128x128xf32>
      %c0_14 = arith.constant 0 : index
      %c0_15 = arith.constant 0 : index
      %16 = vector.load %arg6[%c0_14, %c0_15] : memref<1x128xf32, #tpu.memory_space<vmem>>, vector<1x128xf32>
      %17 = vector.broadcast %16 : vector<1x128xf32> to vector<128x128xf32>
      %18 = arith.addf %15, %17 : vector<128x128xf32>
      %c0_16 = arith.constant 0 : index
      %c0_17 = arith.constant 0 : index
      %19 = vector.load %arg9[%c0_16, %c0_17] : memref<128x128xbf16, #tpu.memory_space<vmem>>, vector<128x128xbf16>
      %20 = arith.extf %19 : vector<128x128xbf16> to vector<128x128xf32>
      %21 = arith.addf %18, %20 : vector<128x128xf32>
      %22 = arith.truncf %21 : vector<128x128xf32> to vector<128x128xbf16>
      %c0_18 = arith.constant 0 : index
      %c0_19 = arith.constant 0 : index
      %23 = vector.load %arg10[%c0_18, %c0_19] : memref<128x128xbf16, #tpu.memory_space<vmem>>, vector<128x128xbf16>
      tpu.vector_store %arg10[%c0_18, %c0_19], %22 {strides = array<i32>} : memref<128x128xbf16, #tpu.memory_space<vmem>>, vector<128x128xbf16>,
      %c0_20 = arith.constant 0 : index
      %c0_21 = arith.constant 0 : index
      %24 = vector.load %arg7[%c0_20, %c0_21] : memref<1x128xf32, #tpu.memory_space<vmem>>, vector<1x128xf32>
      %25 = vector.broadcast %24 : vector<1x128xf32> to vector<128x128xf32>
      %26 = arith.mulf %21, %25 : vector<128x128xf32>
      %c0_22 = arith.constant 0 : index
      %c0_23 = arith.constant 0 : index
      %27 = vector.load %arg8[%c0_22, %c0_23] : memref<1x128xf32, #tpu.memory_space<vmem>>, vector<1x128xf32>
      %28 = vector.broadcast %27 : vector<1x128xf32> to vector<128x128xf32>
      %29 = arith.addf %26, %28 : vector<128x128xf32>
      %cst_24 = arith.constant 0.000000e+00 : f32
      %30 = vector.broadcast %cst_24 : f32 to vector<128x128xf32>
      %31 = arith.maximumf %29, %30 : vector<128x128xf32>
      %32 = arith.truncf %31 : vector<128x128xf32> to vector<128x128xbf16>
      %c0_25 = arith.constant 0 : index
      %c0_26 = arith.constant 0 : index
      %33 = vector.load %arg11[%c0_25, %c0_26] : memref<128x128xbf16, #tpu.memory_space<vmem>>, vector<128x128xbf16>
      tpu.vector_store %arg11[%c0_25, %c0_26], %32 {strides = array<i32>} : memref<128x128xbf16, #tpu.memory_space<vmem>>, vector<128x128xbf16>,
    } else {
    }
    return
  }
  func.func @transform_0(%arg0: i32, %arg1: i32, %arg2: i32) -> (i32, i32) {
    %c0_i32 = arith.constant 0 : i32
    return %arg0, %arg2 : i32, i32
  }
  func.func @transform_1(%arg0: i32, %arg1: i32, %arg2: i32) -> (i32, i32) {
    %c0_i32 = arith.constant 0 : i32
    return %arg2, %arg1 : i32, i32
  }
  func.func @transform_2(%arg0: i32, %arg1: i32, %arg2: i32) -> (i32, i32) {
    %c0_i32 = arith.constant 0 : i32
    %c0_i32_0 = arith.constant 0 : i32
    return %c0_i32, %arg1 : i32, i32
  }
  func.func @transform_3(%arg0: i32, %arg1: i32, %arg2: i32) -> (i32, i32) {
    %c0_i32 = arith.constant 0 : i32
    %c0_i32_0 = arith.constant 0 : i32
    return %c0_i32, %arg1 : i32, i32
  }
  func.func @transform_4(%arg0: i32, %arg1: i32, %arg2: i32) -> (i32, i32) {
    %c0_i32 = arith.constant 0 : i32
    %c0_i32_0 = arith.constant 0 : i32
    return %c0_i32, %arg1 : i32, i32
  }
  func.func @transform_5(%arg0: i32, %arg1: i32, %arg2: i32) -> (i32, i32) {
    %c0_i32 = arith.constant 0 : i32
    %c0_i32_0 = arith.constant 0 : i32
    return %c0_i32, %arg1 : i32, i32
  }
  func.func @transform_6(%arg0: i32, %arg1: i32, %arg2: i32) -> (i32, i32) {
    %c0_i32 = arith.constant 0 : i32
    return %arg0, %arg1 : i32, i32
  }
  func.func @transform_7(%arg0: i32, %arg1: i32, %arg2: i32) -> (i32, i32) {
    %c0_i32 = arith.constant 0 : i32
    return %arg0, %arg1 : i32, i32
  }
  func.func @transform_8(%arg0: i32, %arg1: i32, %arg2: i32) -> (i32, i32) {
    %c0_i32 = arith.constant 0 : i32
    return %arg0, %arg1 : i32, i32
  }
}

module attributes {stable_mosaic.version = 11 : i64} {
  func.func @kernel(%arg0: i32, %arg1: i32, %arg2: i32, %arg3: memref<32x384xbf16, #tpu.memory_space<vmem>>, %arg4: memref<384x128xbf16, #tpu.memory_space<vmem>>, %arg5: memref<1x128xf32, #tpu.memory_space<vmem>>, %arg6: memref<1x128xf32, #tpu.memory_space<vmem>>, %arg7: memref<32x128xbf16, #tpu.memory_space<vmem>>, %arg8: memref<32x128xf32, #tpu.memory_space<vmem>>) attributes {dimension_semantics = [#tpu.dimension_semantics<parallel>, #tpu.dimension_semantics<parallel>, #tpu.dimension_semantics<arbitrary>], iteration_bounds = array<i64: 1, 1, 1>, scalar_prefetch = 0 : i64, scratch_operands = 1 : i64, tpu.core_type = #tpu.core_type<tc>, window_params = [{transform_indices = @transform_0, window_bounds = array<i64: 32, 384>}, {transform_indices = @transform_1, window_bounds = array<i64: 384, 128>}, {transform_indices = @transform_2, window_bounds = array<i64: 1, 128>}, {transform_indices = @transform_3, window_bounds = array<i64: 1, 128>}, {transform_indices = @transform_4, window_bounds = array<i64: 32, 128>}]} {
    %c0_i32 = arith.constant 0 : i32
    %0 = arith.cmpi eq, %arg2, %c0_i32 : i32
    %1 = arith.extui %0 : i1 to i32
    %c0_i32_0 = arith.constant 0 : i32
    %2 = arith.cmpi ne, %1, %c0_i32_0 : i32
    scf.if %2 {
      %cst_10 = arith.constant 0.000000e+00 : f32
      %12 = vector.broadcast %cst_10 : f32 to vector<32x128xf32>
      %c0_11 = arith.constant 0 : index
      %c0_12 = arith.constant 0 : index
      %13 = vector.load %arg8[%c0_11, %c0_12] : memref<32x128xf32, #tpu.memory_space<vmem>>, vector<32x128xf32>
      tpu.vector_store %arg8[%c0_11, %c0_12], %12 {strides = array<i32>} : memref<32x128xf32, #tpu.memory_space<vmem>>, vector<32x128xf32>,
    } else {
    }
    %c0 = arith.constant 0 : index
    %c0_1 = arith.constant 0 : index
    %3 = vector.load %arg8[%c0, %c0_1] : memref<32x128xf32, #tpu.memory_space<vmem>>, vector<32x128xf32>
    %c0_2 = arith.constant 0 : index
    %c0_3 = arith.constant 0 : index
    %4 = vector.load %arg3[%c0_2, %c0_3] : memref<32x384xbf16, #tpu.memory_space<vmem>>, vector<32x384xbf16>
    %c0_4 = arith.constant 0 : index
    %c0_5 = arith.constant 0 : index
    %5 = vector.load %arg4[%c0_4, %c0_5] : memref<384x128xbf16, #tpu.memory_space<vmem>>, vector<384x128xbf16>
    %cst = arith.constant dense<0.000000e+00> : vector<32x128xf32>
    %6 = tpu.matmul %4, %5, %cst {dimension_numbers = #tpu.dot_dimension_numbers<[1], [0], [0], [1], [0, 0, 1, 1], [], []>} : vector<32x384xbf16>, vector<384x128xbf16>, vector<32x128xf32> -> vector<32x128xf32>
    %7 = arith.addf %3, %6 : vector<32x128xf32>
    %c0_6 = arith.constant 0 : index
    %c0_7 = arith.constant 0 : index
    %8 = vector.load %arg8[%c0_6, %c0_7] : memref<32x128xf32, #tpu.memory_space<vmem>>, vector<32x128xf32>
    tpu.vector_store %arg8[%c0_6, %c0_7], %7 {strides = array<i32>} : memref<32x128xf32, #tpu.memory_space<vmem>>, vector<32x128xf32>,
    %c0_i32_8 = arith.constant 0 : i32
    %9 = arith.cmpi eq, %arg2, %c0_i32_8 : i32
    %10 = arith.extui %9 : i1 to i32
    %c0_i32_9 = arith.constant 0 : i32
    %11 = arith.cmpi ne, %10, %c0_i32_9 : i32
    scf.if %11 {
      %c0_10 = arith.constant 0 : index
      %c0_11 = arith.constant 0 : index
      %12 = vector.load %arg8[%c0_10, %c0_11] : memref<32x128xf32, #tpu.memory_space<vmem>>, vector<32x128xf32>
      %c0_12 = arith.constant 0 : index
      %c0_13 = arith.constant 0 : index
      %13 = vector.load %arg5[%c0_12, %c0_13] : memref<1x128xf32, #tpu.memory_space<vmem>>, vector<1x128xf32>
      %14 = vector.broadcast %13 : vector<1x128xf32> to vector<32x128xf32>
      %15 = arith.mulf %12, %14 : vector<32x128xf32>
      %c0_14 = arith.constant 0 : index
      %c0_15 = arith.constant 0 : index
      %16 = vector.load %arg6[%c0_14, %c0_15] : memref<1x128xf32, #tpu.memory_space<vmem>>, vector<1x128xf32>
      %17 = vector.broadcast %16 : vector<1x128xf32> to vector<32x128xf32>
      %18 = arith.addf %15, %17 : vector<32x128xf32>
      %cst_16 = arith.constant 0.000000e+00 : f32
      %19 = vector.broadcast %cst_16 : f32 to vector<32x128xf32>
      %20 = arith.maximumf %18, %19 : vector<32x128xf32>
      %21 = arith.truncf %20 : vector<32x128xf32> to vector<32x128xbf16>
      %c0_17 = arith.constant 0 : index
      %c0_18 = arith.constant 0 : index
      %22 = vector.load %arg7[%c0_17, %c0_18] : memref<32x128xbf16, #tpu.memory_space<vmem>>, vector<32x128xbf16>
      tpu.vector_store %arg7[%c0_17, %c0_18], %21 {strides = array<i32>} : memref<32x128xbf16, #tpu.memory_space<vmem>>, vector<32x128xbf16>,
    } else {
    }
    return
  }
  func.func @transform_0(%arg0: i32, %arg1: i32, %arg2: i32) -> (i32, i32) {
    %c0_i32 = arith.constant 0 : i32
    return %arg0, %arg2 : i32, i32
  }
  func.func @transform_1(%arg0: i32, %arg1: i32, %arg2: i32) -> (i32, i32) {
    %c0_i32 = arith.constant 0 : i32
    return %arg2, %arg1 : i32, i32
  }
  func.func @transform_2(%arg0: i32, %arg1: i32, %arg2: i32) -> (i32, i32) {
    %c0_i32 = arith.constant 0 : i32
    %c0_i32_0 = arith.constant 0 : i32
    return %c0_i32, %arg1 : i32, i32
  }
  func.func @transform_3(%arg0: i32, %arg1: i32, %arg2: i32) -> (i32, i32) {
    %c0_i32 = arith.constant 0 : i32
    %c0_i32_0 = arith.constant 0 : i32
    return %c0_i32, %arg1 : i32, i32
  }
  func.func @transform_4(%arg0: i32, %arg1: i32, %arg2: i32) -> (i32, i32) {
    %c0_i32 = arith.constant 0 : i32
    return %arg0, %arg1 : i32, i32
  }
}

module attributes {stable_mosaic.version = 11 : i64} {
  func.func @kernel(%arg0: i32, %arg1: i32, %arg2: i32, %arg3: memref<32x640xbf16, #tpu.memory_space<vmem>>, %arg4: memref<640x128xbf16, #tpu.memory_space<vmem>>, %arg5: memref<1x128xf32, #tpu.memory_space<vmem>>, %arg6: memref<1x128xf32, #tpu.memory_space<vmem>>, %arg7: memref<1x128xf32, #tpu.memory_space<vmem>>, %arg8: memref<1x128xf32, #tpu.memory_space<vmem>>, %arg9: memref<32x128xbf16, #tpu.memory_space<vmem>>, %arg10: memref<32x128xbf16, #tpu.memory_space<vmem>>, %arg11: memref<32x128xbf16, #tpu.memory_space<vmem>>, %arg12: memref<32x128xf32, #tpu.memory_space<vmem>>) attributes {dimension_semantics = [#tpu.dimension_semantics<parallel>, #tpu.dimension_semantics<parallel>, #tpu.dimension_semantics<arbitrary>], iteration_bounds = array<i64: 1, 1, 1>, scalar_prefetch = 0 : i64, scratch_operands = 1 : i64, tpu.core_type = #tpu.core_type<tc>, window_params = [{transform_indices = @transform_0, window_bounds = array<i64: 32, 640>}, {transform_indices = @transform_1, window_bounds = array<i64: 640, 128>}, {transform_indices = @transform_2, window_bounds = array<i64: 1, 128>}, {transform_indices = @transform_3, window_bounds = array<i64: 1, 128>}, {transform_indices = @transform_4, window_bounds = array<i64: 1, 128>}, {transform_indices = @transform_5, window_bounds = array<i64: 1, 128>}, {transform_indices = @transform_6, window_bounds = array<i64: 32, 128>}, {transform_indices = @transform_7, window_bounds = array<i64: 32, 128>}, {transform_indices = @transform_8, window_bounds = array<i64: 32, 128>}]} {
    %c0_i32 = arith.constant 0 : i32
    %0 = arith.cmpi eq, %arg2, %c0_i32 : i32
    %1 = arith.extui %0 : i1 to i32
    %c0_i32_0 = arith.constant 0 : i32
    %2 = arith.cmpi ne, %1, %c0_i32_0 : i32
    scf.if %2 {
      %cst_10 = arith.constant 0.000000e+00 : f32
      %12 = vector.broadcast %cst_10 : f32 to vector<32x128xf32>
      %c0_11 = arith.constant 0 : index
      %c0_12 = arith.constant 0 : index
      %13 = vector.load %arg12[%c0_11, %c0_12] : memref<32x128xf32, #tpu.memory_space<vmem>>, vector<32x128xf32>
      tpu.vector_store %arg12[%c0_11, %c0_12], %12 {strides = array<i32>} : memref<32x128xf32, #tpu.memory_space<vmem>>, vector<32x128xf32>,
    } else {
    }
    %c0 = arith.constant 0 : index
    %c0_1 = arith.constant 0 : index
    %3 = vector.load %arg12[%c0, %c0_1] : memref<32x128xf32, #tpu.memory_space<vmem>>, vector<32x128xf32>
    %c0_2 = arith.constant 0 : index
    %c0_3 = arith.constant 0 : index
    %4 = vector.load %arg3[%c0_2, %c0_3] : memref<32x640xbf16, #tpu.memory_space<vmem>>, vector<32x640xbf16>
    %c0_4 = arith.constant 0 : index
    %c0_5 = arith.constant 0 : index
    %5 = vector.load %arg4[%c0_4, %c0_5] : memref<640x128xbf16, #tpu.memory_space<vmem>>, vector<640x128xbf16>
    %cst = arith.constant dense<0.000000e+00> : vector<32x128xf32>
    %6 = tpu.matmul %4, %5, %cst {dimension_numbers = #tpu.dot_dimension_numbers<[1], [0], [0], [1], [0, 0, 1, 1], [], []>} : vector<32x640xbf16>, vector<640x128xbf16>, vector<32x128xf32> -> vector<32x128xf32>
    %7 = arith.addf %3, %6 : vector<32x128xf32>
    %c0_6 = arith.constant 0 : index
    %c0_7 = arith.constant 0 : index
    %8 = vector.load %arg12[%c0_6, %c0_7] : memref<32x128xf32, #tpu.memory_space<vmem>>, vector<32x128xf32>
    tpu.vector_store %arg12[%c0_6, %c0_7], %7 {strides = array<i32>} : memref<32x128xf32, #tpu.memory_space<vmem>>, vector<32x128xf32>,
    %c0_i32_8 = arith.constant 0 : i32
    %9 = arith.cmpi eq, %arg2, %c0_i32_8 : i32
    %10 = arith.extui %9 : i1 to i32
    %c0_i32_9 = arith.constant 0 : i32
    %11 = arith.cmpi ne, %10, %c0_i32_9 : i32
    scf.if %11 {
      %c0_10 = arith.constant 0 : index
      %c0_11 = arith.constant 0 : index
      %12 = vector.load %arg12[%c0_10, %c0_11] : memref<32x128xf32, #tpu.memory_space<vmem>>, vector<32x128xf32>
      %c0_12 = arith.constant 0 : index
      %c0_13 = arith.constant 0 : index
      %13 = vector.load %arg5[%c0_12, %c0_13] : memref<1x128xf32, #tpu.memory_space<vmem>>, vector<1x128xf32>
      %14 = vector.broadcast %13 : vector<1x128xf32> to vector<32x128xf32>
      %15 = arith.mulf %12, %14 : vector<32x128xf32>
      %c0_14 = arith.constant 0 : index
      %c0_15 = arith.constant 0 : index
      %16 = vector.load %arg6[%c0_14, %c0_15] : memref<1x128xf32, #tpu.memory_space<vmem>>, vector<1x128xf32>
      %17 = vector.broadcast %16 : vector<1x128xf32> to vector<32x128xf32>
      %18 = arith.addf %15, %17 : vector<32x128xf32>
      %c0_16 = arith.constant 0 : index
      %c0_17 = arith.constant 0 : index
      %19 = vector.load %arg9[%c0_16, %c0_17] : memref<32x128xbf16, #tpu.memory_space<vmem>>, vector<32x128xbf16>
      %20 = arith.extf %19 : vector<32x128xbf16> to vector<32x128xf32>
      %21 = arith.addf %18, %20 : vector<32x128xf32>
      %22 = arith.truncf %21 : vector<32x128xf32> to vector<32x128xbf16>
      %c0_18 = arith.constant 0 : index
      %c0_19 = arith.constant 0 : index
      %23 = vector.load %arg10[%c0_18, %c0_19] : memref<32x128xbf16, #tpu.memory_space<vmem>>, vector<32x128xbf16>
      tpu.vector_store %arg10[%c0_18, %c0_19], %22 {strides = array<i32>} : memref<32x128xbf16, #tpu.memory_space<vmem>>, vector<32x128xbf16>,
      %c0_20 = arith.constant 0 : index
      %c0_21 = arith.constant 0 : index
      %24 = vector.load %arg7[%c0_20, %c0_21] : memref<1x128xf32, #tpu.memory_space<vmem>>, vector<1x128xf32>
      %25 = vector.broadcast %24 : vector<1x128xf32> to vector<32x128xf32>
      %26 = arith.mulf %21, %25 : vector<32x128xf32>
      %c0_22 = arith.constant 0 : index
      %c0_23 = arith.constant 0 : index
      %27 = vector.load %arg8[%c0_22, %c0_23] : memref<1x128xf32, #tpu.memory_space<vmem>>, vector<1x128xf32>
      %28 = vector.broadcast %27 : vector<1x128xf32> to vector<32x128xf32>
      %29 = arith.addf %26, %28 : vector<32x128xf32>
      %cst_24 = arith.constant 0.000000e+00 : f32
      %30 = vector.broadcast %cst_24 : f32 to vector<32x128xf32>
      %31 = arith.maximumf %29, %30 : vector<32x128xf32>
      %32 = arith.truncf %31 : vector<32x128xf32> to vector<32x128xbf16>
      %c0_25 = arith.constant 0 : index
      %c0_26 = arith.constant 0 : index
      %33 = vector.load %arg11[%c0_25, %c0_26] : memref<32x128xbf16, #tpu.memory_space<vmem>>, vector<32x128xbf16>
      tpu.vector_store %arg11[%c0_25, %c0_26], %32 {strides = array<i32>} : memref<32x128xbf16, #tpu.memory_space<vmem>>, vector<32x128xbf16>,
    } else {
    }
    return
  }
  func.func @transform_0(%arg0: i32, %arg1: i32, %arg2: i32) -> (i32, i32) {
    %c0_i32 = arith.constant 0 : i32
    return %arg0, %arg2 : i32, i32
  }
  func.func @transform_1(%arg0: i32, %arg1: i32, %arg2: i32) -> (i32, i32) {
    %c0_i32 = arith.constant 0 : i32
    return %arg2, %arg1 : i32, i32
  }
  func.func @transform_2(%arg0: i32, %arg1: i32, %arg2: i32) -> (i32, i32) {
    %c0_i32 = arith.constant 0 : i32
    %c0_i32_0 = arith.constant 0 : i32
    return %c0_i32, %arg1 : i32, i32
  }
  func.func @transform_3(%arg0: i32, %arg1: i32, %arg2: i32) -> (i32, i32) {
    %c0_i32 = arith.constant 0 : i32
    %c0_i32_0 = arith.constant 0 : i32
    return %c0_i32, %arg1 : i32, i32
  }
  func.func @transform_4(%arg0: i32, %arg1: i32, %arg2: i32) -> (i32, i32) {
    %c0_i32 = arith.constant 0 : i32
    %c0_i32_0 = arith.constant 0 : i32
    return %c0_i32, %arg1 : i32, i32
  }
  func.func @transform_5(%arg0: i32, %arg1: i32, %arg2: i32) -> (i32, i32) {
    %c0_i32 = arith.constant 0 : i32
    %c0_i32_0 = arith.constant 0 : i32
    return %c0_i32, %arg1 : i32, i32
  }
  func.func @transform_6(%arg0: i32, %arg1: i32, %arg2: i32) -> (i32, i32) {
    %c0_i32 = arith.constant 0 : i32
    return %arg0, %arg1 : i32, i32
  }
  func.func @transform_7(%arg0: i32, %arg1: i32, %arg2: i32) -> (i32, i32) {
    %c0_i32 = arith.constant 0 : i32
    return %arg0, %arg1 : i32, i32
  }
  func.func @transform_8(%arg0: i32, %arg1: i32, %arg2: i32) -> (i32, i32) {
    %c0_i32 = arith.constant 0 : i32
    return %arg0, %arg1 : i32, i32
  }
}

module attributes {stable_mosaic.version = 11 : i64} {
  func.func @kernel(%arg0: i32, %arg1: i32, %arg2: i32, %arg3: memref<32x128xbf16, #tpu.memory_space<vmem>>, %arg4: memref<128x128xbf16, #tpu.memory_space<vmem>>, %arg5: memref<1x128xf32, #tpu.memory_space<vmem>>, %arg6: memref<1x128xf32, #tpu.memory_space<vmem>>, %arg7: memref<32x128xbf16, #tpu.memory_space<vmem>>, %arg8: memref<32x128xf32, #tpu.memory_space<vmem>>) attributes {dimension_semantics = [#tpu.dimension_semantics<parallel>, #tpu.dimension_semantics<parallel>, #tpu.dimension_semantics<arbitrary>], iteration_bounds = array<i64: 1, 1, 1>, scalar_prefetch = 0 : i64, scratch_operands = 1 : i64, tpu.core_type = #tpu.core_type<tc>, window_params = [{transform_indices = @transform_0, window_bounds = array<i64: 32, 128>}, {transform_indices = @transform_1, window_bounds = array<i64: 128, 128>}, {transform_indices = @transform_2, window_bounds = array<i64: 1, 128>}, {transform_indices = @transform_3, window_bounds = array<i64: 1, 128>}, {transform_indices = @transform_4, window_bounds = array<i64: 32, 128>}]} {
    %c0_i32 = arith.constant 0 : i32
    %0 = arith.cmpi eq, %arg2, %c0_i32 : i32
    %1 = arith.extui %0 : i1 to i32
    %c0_i32_0 = arith.constant 0 : i32
    %2 = arith.cmpi ne, %1, %c0_i32_0 : i32
    scf.if %2 {
      %cst_10 = arith.constant 0.000000e+00 : f32
      %12 = vector.broadcast %cst_10 : f32 to vector<32x128xf32>
      %c0_11 = arith.constant 0 : index
      %c0_12 = arith.constant 0 : index
      %13 = vector.load %arg8[%c0_11, %c0_12] : memref<32x128xf32, #tpu.memory_space<vmem>>, vector<32x128xf32>
      tpu.vector_store %arg8[%c0_11, %c0_12], %12 {strides = array<i32>} : memref<32x128xf32, #tpu.memory_space<vmem>>, vector<32x128xf32>,
    } else {
    }
    %c0 = arith.constant 0 : index
    %c0_1 = arith.constant 0 : index
    %3 = vector.load %arg8[%c0, %c0_1] : memref<32x128xf32, #tpu.memory_space<vmem>>, vector<32x128xf32>
    %c0_2 = arith.constant 0 : index
    %c0_3 = arith.constant 0 : index
    %4 = vector.load %arg3[%c0_2, %c0_3] : memref<32x128xbf16, #tpu.memory_space<vmem>>, vector<32x128xbf16>
    %c0_4 = arith.constant 0 : index
    %c0_5 = arith.constant 0 : index
    %5 = vector.load %arg4[%c0_4, %c0_5] : memref<128x128xbf16, #tpu.memory_space<vmem>>, vector<128x128xbf16>
    %cst = arith.constant dense<0.000000e+00> : vector<32x128xf32>
    %6 = tpu.matmul %4, %5, %cst {dimension_numbers = #tpu.dot_dimension_numbers<[1], [0], [0], [1], [0, 0, 1, 1], [], []>} : vector<32x128xbf16>, vector<128x128xbf16>, vector<32x128xf32> -> vector<32x128xf32>
    %7 = arith.addf %3, %6 : vector<32x128xf32>
    %c0_6 = arith.constant 0 : index
    %c0_7 = arith.constant 0 : index
    %8 = vector.load %arg8[%c0_6, %c0_7] : memref<32x128xf32, #tpu.memory_space<vmem>>, vector<32x128xf32>
    tpu.vector_store %arg8[%c0_6, %c0_7], %7 {strides = array<i32>} : memref<32x128xf32, #tpu.memory_space<vmem>>, vector<32x128xf32>,
    %c0_i32_8 = arith.constant 0 : i32
    %9 = arith.cmpi eq, %arg2, %c0_i32_8 : i32
    %10 = arith.extui %9 : i1 to i32
    %c0_i32_9 = arith.constant 0 : i32
    %11 = arith.cmpi ne, %10, %c0_i32_9 : i32
    scf.if %11 {
      %c0_10 = arith.constant 0 : index
      %c0_11 = arith.constant 0 : index
      %12 = vector.load %arg8[%c0_10, %c0_11] : memref<32x128xf32, #tpu.memory_space<vmem>>, vector<32x128xf32>
      %c0_12 = arith.constant 0 : index
      %c0_13 = arith.constant 0 : index
      %13 = vector.load %arg5[%c0_12, %c0_13] : memref<1x128xf32, #tpu.memory_space<vmem>>, vector<1x128xf32>
      %14 = vector.broadcast %13 : vector<1x128xf32> to vector<32x128xf32>
      %15 = arith.mulf %12, %14 : vector<32x128xf32>
      %c0_14 = arith.constant 0 : index
      %c0_15 = arith.constant 0 : index
      %16 = vector.load %arg6[%c0_14, %c0_15] : memref<1x128xf32, #tpu.memory_space<vmem>>, vector<1x128xf32>
      %17 = vector.broadcast %16 : vector<1x128xf32> to vector<32x128xf32>
      %18 = arith.addf %15, %17 : vector<32x128xf32>
      %19 = arith.truncf %18 : vector<32x128xf32> to vector<32x128xbf16>
      %c0_16 = arith.constant 0 : index
      %c0_17 = arith.constant 0 : index
      %20 = vector.load %arg7[%c0_16, %c0_17] : memref<32x128xbf16, #tpu.memory_space<vmem>>, vector<32x128xbf16>
      tpu.vector_store %arg7[%c0_16, %c0_17], %19 {strides = array<i32>} : memref<32x128xbf16, #tpu.memory_space<vmem>>, vector<32x128xbf16>,
    } else {
    }
    return
  }
  func.func @transform_0(%arg0: i32, %arg1: i32, %arg2: i32) -> (i32, i32) {
    %c0_i32 = arith.constant 0 : i32
    return %arg0, %arg2 : i32, i32
  }
  func.func @transform_1(%arg0: i32, %arg1: i32, %arg2: i32) -> (i32, i32) {
    %c0_i32 = arith.constant 0 : i32
    return %arg2, %arg1 : i32, i32
  }
  func.func @transform_2(%arg0: i32, %arg1: i32, %arg2: i32) -> (i32, i32) {
    %c0_i32 = arith.constant 0 : i32
    %c0_i32_0 = arith.constant 0 : i32
    return %c0_i32, %arg1 : i32, i32
  }
  func.func @transform_3(%arg0: i32, %arg1: i32, %arg2: i32) -> (i32, i32) {
    %c0_i32 = arith.constant 0 : i32
    %c0_i32_0 = arith.constant 0 : i32
    return %c0_i32, %arg1 : i32, i32
  }
  func.func @transform_4(%arg0: i32, %arg1: i32, %arg2: i32) -> (i32, i32) {
    %c0_i32 = arith.constant 0 : i32
    return %arg0, %arg1 : i32, i32
  }
}

module attributes {stable_mosaic.version = 11 : i64} {
  func.func @kernel(%arg0: i32, %arg1: memref<2x16x128xbf16, #tpu.memory_space<vmem>>, %arg2: memref<128x128xf32, #tpu.memory_space<vmem>>, %arg3: memref<1x128xf32, #tpu.memory_space<vmem>>, %arg4: memref<2x128xf32, #tpu.memory_space<vmem>>, %arg5: memref<2x128xf32, #tpu.memory_space<vmem>>) attributes {dimension_semantics = [#tpu.dimension_semantics<arbitrary>], iteration_bounds = array<i64: 1>, scalar_prefetch = 0 : i64, scratch_operands = 1 : i64, tpu.core_type = #tpu.core_type<tc>, window_params = [{transform_indices = @transform_0, window_bounds = array<i64: 2, 16, 128>}, {pipeline_mode = #tpu.pipeline_mode<synchronous>, transform_indices = @transform_1, window_bounds = array<i64: 128, 128>}, {pipeline_mode = #tpu.pipeline_mode<synchronous>, transform_indices = @transform_2, window_bounds = array<i64: 1, 128>}, {pipeline_mode = #tpu.pipeline_mode<synchronous>, transform_indices = @transform_3, window_bounds = array<i64: 2, 128>}]} {
    %c0_i32 = arith.constant 0 : i32
    %0 = arith.cmpi eq, %arg0, %c0_i32 : i32
    %1 = arith.extui %0 : i1 to i32
    %c0_i32_0 = arith.constant 0 : i32
    %2 = arith.cmpi ne, %1, %c0_i32_0 : i32
    scf.if %2 {
      %cst_9 = arith.constant 0.000000e+00 : f32
      %12 = vector.broadcast %cst_9 : f32 to vector<2x128xf32>
      %c0_10 = arith.constant 0 : index
      %c0_11 = arith.constant 0 : index
      %13 = vector.load %arg5[%c0_10, %c0_11] : memref<2x128xf32, #tpu.memory_space<vmem>>, vector<2x128xf32>
      tpu.vector_store %arg5[%c0_10, %c0_11], %12 {strides = array<i32>} : memref<2x128xf32, #tpu.memory_space<vmem>>, vector<2x128xf32>,
    } else {
    }
    %c0 = arith.constant 0 : index
    %c0_1 = arith.constant 0 : index
    %3 = vector.load %arg5[%c0, %c0_1] : memref<2x128xf32, #tpu.memory_space<vmem>>, vector<2x128xf32>
    %c0_2 = arith.constant 0 : index
    %c0_3 = arith.constant 0 : index
    %c0_4 = arith.constant 0 : index
    %4 = vector.load %arg1[%c0_2, %c0_3, %c0_4] : memref<2x16x128xbf16, #tpu.memory_space<vmem>>, vector<2x16x128xbf16>
    %5 = arith.extf %4 : vector<2x16x128xbf16> to vector<2x16x128xf32>
    %cst = arith.constant dense<0.000000e+00> : vector<2x128xf32>
    %6 = vector.multi_reduction <add>, %5, %cst [1] : vector<2x16x128xf32> to vector<2x128xf32>
    %7 = arith.addf %3, %6 : vector<2x128xf32>
    %c0_5 = arith.constant 0 : index
    %c0_6 = arith.constant 0 : index
    %8 = vector.load %arg5[%c0_5, %c0_6] : memref<2x128xf32, #tpu.memory_space<vmem>>, vector<2x128xf32>
    tpu.vector_store %arg5[%c0_5, %c0_6], %7 {strides = array<i32>} : memref<2x128xf32, #tpu.memory_space<vmem>>, vector<2x128xf32>,
    %c0_i32_7 = arith.constant 0 : i32
    %9 = arith.cmpi eq, %arg0, %c0_i32_7 : i32
    %10 = arith.extui %9 : i1 to i32
    %c0_i32_8 = arith.constant 0 : i32
    %11 = arith.cmpi ne, %10, %c0_i32_8 : i32
    scf.if %11 {
      %c0_9 = arith.constant 0 : index
      %c0_10 = arith.constant 0 : index
      %12 = vector.load %arg5[%c0_9, %c0_10] : memref<2x128xf32, #tpu.memory_space<vmem>>, vector<2x128xf32>
      %cst_11 = arith.constant 6.250000e-02 : f32
      %13 = vector.broadcast %cst_11 : f32 to vector<2x128xf32>
      %14 = arith.mulf %12, %13 : vector<2x128xf32>
      %c0_12 = arith.constant 0 : index
      %c0_13 = arith.constant 0 : index
      %15 = vector.load %arg2[%c0_12, %c0_13] : memref<128x128xf32, #tpu.memory_space<vmem>>, vector<128x128xf32>
      %cst_14 = arith.constant dense<0.000000e+00> : vector<2x128xf32>
      %16 = tpu.matmul %14, %15, %cst_14 {dimension_numbers = #tpu.dot_dimension_numbers<[1], [0], [0], [1], [0, 0, 1, 1], [], []>} : vector<2x128xf32>, vector<128x128xf32>, vector<2x128xf32> -> vector<2x128xf32>
      %c0_15 = arith.constant 0 : index
      %c0_16 = arith.constant 0 : index
      %17 = vector.load %arg3[%c0_15, %c0_16] : memref<1x128xf32, #tpu.memory_space<vmem>>, vector<1x128xf32>
      %18 = vector.broadcast %17 : vector<1x128xf32> to vector<2x128xf32>
      %19 = arith.addf %16, %18 : vector<2x128xf32>
      %c0_17 = arith.constant 0 : index
      %c0_18 = arith.constant 0 : index
      %20 = vector.load %arg4[%c0_17, %c0_18] : memref<2x128xf32, #tpu.memory_space<vmem>>, vector<2x128xf32>
      tpu.vector_store %arg4[%c0_17, %c0_18], %19 {strides = array<i32>} : memref<2x128xf32, #tpu.memory_space<vmem>>, vector<2x128xf32>,
    } else {
    }
    return
  }
  func.func @transform_0(%arg0: i32) -> (i32, i32, i32) {
    %c0_i32 = arith.constant 0 : i32
    %c0_i32_0 = arith.constant 0 : i32
    %c0_i32_1 = arith.constant 0 : i32
    return %c0_i32, %arg0, %c0_i32_0 : i32, i32, i32
  }
  func.func @transform_1(%arg0: i32) -> (i32, i32) {
    %c0_i32 = arith.constant 0 : i32
    %c0_i32_0 = arith.constant 0 : i32
    %c0_i32_1 = arith.constant 0 : i32
    return %c0_i32, %c0_i32_0 : i32, i32
  }
  func.func @transform_2(%arg0: i32) -> (i32, i32) {
    %c0_i32 = arith.constant 0 : i32
    %c0_i32_0 = arith.constant 0 : i32
    %c0_i32_1 = arith.constant 0 : i32
    return %c0_i32, %c0_i32_0 : i32, i32
  }
  func.func @transform_3(%arg0: i32) -> (i32, i32) {
    %c0_i32 = arith.constant 0 : i32
    %c0_i32_0 = arith.constant 0 : i32
    %c0_i32_1 = arith.constant 0 : i32
    return %c0_i32, %c0_i32_0 : i32, i32
  }
}

</mosaic_0001>

<bundles_post_ra>
// kernel: wideresnet_forward.10
= control target key start
LH: loop header
LB: loop body
LE: loop exit
PB: predicated region body
PF: predicated region fallthrough
CT: control target
= control target key end

     0   :  { %s2215_s24 = smov 0   ;;  %s2217_s25 = smov 0   ;;  %s2482_s0 = inlined_call_operand.vmem [shape: bf16[512,128], index: 0, kind: input, shape index: {}]   ;;  %s2483_s1 = inlined_call_operand.vmem [shape: bf16[128,128], index: 1, kind: input, shape index: {}]   ;;  %s2484_s2 = inlined_call_operand.vmem [shape: f32[1,128], index: 2, kind: input, shape index: {}]   ;;  %s2485_s3 = inlined_call_operand.vmem [shape: f32[1,128], index: 3, kind: input, shape index: {}]   ;;  %s2486_s4 = inlined_call_operand.vmem [shape: f32[1,128], index: 4, kind: input, shape index: {}]   ;;  %s2487_s5 = inlined_call_operand.vmem [shape: f32[1,128], index: 5, kind: input, shape index: {}]   ;;  %s2488_s6 = inlined_call_operand.vmem [shape: bf16[512,128], index: 6, kind: output, shape index: {0}]   ;;  %s2489_s7 = inlined_call_operand.vmem [shape: bf16[512,128], index: 7, kind: output, shape index: {1}]  }
   0x1   :  { %s2219_s26 = smov 0  }
   0x2 LB: > { %s37_s27 = sadd.s32 1, %s2169_s25  ;;  %p1660_p0 = scmp.ge.s32.totalorder %s2173_s26, 1  ;;  %s2173_s26 = sphi %s2219_s26, %s18_s26   ;;  %s2169_s25 = sphi %s2217_s25, %s2491_s25   ;;  %s2165_s24 = sphi %s2215_s24, %s2490_s24  }
   0x3   : > { %p39_p1 = scmp.ge.s32.totalorder %s37_s27, 2  ;;  %p317_p2 = scmp.lt.s32.totalorder %s2173_s26, 3 }
   0x5   : > { %s2493_s27 = smov (%p39_p1, %s37_s27), 0  ;;  %p318_p3 = pnand %p1660_p0, %p317_p2 }
   0x6   : > { %s1661_s30 = sshll.u32 (!%p318_p3), %s2165_s24, 5 }
   0x7   : > { %321 = sbr.rel (%p318_p3) target bundleno = 295 (0x127), region = 44  ;;  %p384_p4 = scmp.lt.s32.totalorder (!%p318_p3), %s1661_s30, 63 }
   0xc   : > { %v2127_v0 = vld [vmem:[%s2483_s1 + $0x38] sm:$0xff]   ;;  %v2128_v1 = vld [vmem:[%s2483_s1 + $0x30] sm:$0xff]   ;;  %s2495_s30 = smov (!%p384_p4, %s1661_s30), 63  ;;  %v2129_v2 = vld [vmem:[%s2483_s1 + $0x28] sm:$0xff]  }
   0xd   : > { %2039 = vmatprep.subr.bf16.mxu0 %v2127_v0  ;;  %2087 = vmatprep.subr.bf16.mxu1 %v2127_v0  ;;  %s2242_s12 = sshll.u32 %s2495_s30, 2  ;;  %v2130_v3 = vld [vmem:[%s2483_s1 + $0x20] sm:$0xff]   ;;  %v2131_v6 = vld [vmem:[%s2483_s1 + $0x18] sm:$0xff]   ;;  %v2132_v7 = vld [vmem:[%s2483_s1 + $0x10] sm:$0xff]  }
   0xe   : > { %2040 = vmatpush3.bf16.msra.mxu0 %v2127_v0  ;;  %2095 = vmatpush3.bf16.msra.mxu1 %v2127_v0  ;;  %s2248_s15 = scalar_lea.vmem %s2482_s0, %s2242_s12  ;;  %v2133_v8 = vld [vmem:[%s2483_s1 + $0x8] sm:$0xff]   ;;  %v2134_v9 = vld [vmem:[%s2483_s1] sm:$0xff]   ;;  %s2327_s17 = scalar_lea.vmem %s2488_s6, %s2242_s12 }
   0xf   : > { %2041 = vmatprep.subr.bf16.mxu0 %v2128_v1  ;;  %2088 = vmatprep.subr.bf16.mxu1 %v2128_v1  ;;  %v2135_v4 = vld [vmem:[%s2248_s15] sm:$0xff]   ;;  %v2137_v10 = vld [vmem:[%s2248_s15 + $0x8] sm:$0xff]   ;;  %v2139_v12 = vld [vmem:[%s2248_s15 + $0x10] sm:$0xff]   ;;  %s2347_s20 = scalar_lea.vmem %s2489_s7, %s2242_s12 }
  0x10   : > { %v2136_v5 = vld [vmem:[%s2248_s15 + $0x40] sm:$0xff]   ;;  %2055 = vmatprep.mubr.bf16.mxu0 %v2135_v4  ;;  %v2138_v11 = vld [vmem:[%s2248_s15 + $0x48] sm:$0xff]   ;;  %v2140_v13 = vld [vmem:[%s2248_s15 + $0x50] sm:$0xff]  }
  0x11   : > { %2071 = vmatprep.mubr.bf16.mxu1 %v2136_v5  ;;  %v2141_v14 = vld [vmem:[%s2248_s15 + $0x18] sm:$0xff]   ;;  %v2143_v16 = vld [vmem:[%s2248_s15 + $0x20] sm:$0xff]   ;;  %v2145_v18 = vld [vmem:[%s2248_s15 + $0x28] sm:$0xff]  }
  0x12   : > { %2042 = vmatpush3.bf16.msra.mxu0 %v2128_v1  ;;  %2096 = vmatpush3.bf16.msra.mxu1 %v2128_v1  ;;  %v2142_v15 = vld [vmem:[%s2248_s15 + $0x58] sm:$0xff]   ;;  %v2144_v17 = vld [vmem:[%s2248_s15 + $0x60] sm:$0xff]   ;;  %v2146_v19 = vld [vmem:[%s2248_s15 + $0x68] sm:$0xff]  }
  0x13   : > { %2043 = vmatprep.subr.bf16.mxu0 %v2129_v2  ;;  %2089 = vmatprep.subr.bf16.mxu1 %v2129_v2  ;;  %v2147_v20 = vld [vmem:[%s2248_s15 + $0x30] sm:$0xff]   ;;  %v2149_v22 = vld [vmem:[%s2248_s15 + $0x38] sm:$0xff]   ;;  %v2284_v24 = vld [vmem:[%s2484_s2] ss:$0 sm:$0xff] }
  0x14   : > { %v2148_v21 = vld [vmem:[%s2248_s15 + $0x70] sm:$0xff]   ;;  %v2150_v23 = vld [vmem:[%s2248_s15 + $0x78] sm:$0xff]   ;;  %v2289_v26 = vld [vmem:[%s2485_s3] ss:$0 sm:$0xff] }
  0x15   : > { %v2296_v30 = vld [vmem:[%s2486_s4] ss:$0 sm:$0xff] }
  0x16   : > { %2044 = vmatpush3.bf16.msra.mxu0 %v2129_v2  ;;  %2097 = vmatpush3.bf16.msra.mxu1 %v2129_v2  ;;  %v2305_v37 = vld [vmem:[%s2487_s5] ss:$0 sm:$0xff] }
  0x17   : > { %2045 = vmatprep.subr.bf16.mxu0 %v2130_v3  ;;  %2090 = vmatprep.subr.bf16.mxu1 %v2130_v3 }
  0x1a   : > { %2046 = vmatpush3.bf16.msra.mxu0 %v2130_v3  ;;  %2098 = vmatpush3.bf16.msra.mxu1 %v2130_v3 }
  0x1b   : > { %2047 = vmatprep.subr.bf16.mxu0 %v2131_v6  ;;  %2091 = vmatprep.subr.bf16.mxu1 %v2131_v6 }
  0x1e   : > { %2048 = vmatpush3.bf16.msra.mxu0 %v2131_v6  ;;  %2099 = vmatpush3.bf16.msra.mxu1 %v2131_v6 }
  0x1f   : > { %2049 = vmatprep.subr.bf16.mxu0 %v2132_v7  ;;  %2092 = vmatprep.subr.bf16.mxu1 %v2132_v7 }
  0x22   : > { %2050 = vmatpush3.bf16.msra.mxu0 %v2132_v7  ;;  %2100 = vmatpush3.bf16.msra.mxu1 %v2132_v7 }
  0x23   : > { %2051 = vmatprep.subr.bf16.mxu0 %v2133_v8  ;;  %2093 = vmatprep.subr.bf16.mxu1 %v2133_v8 }
  0x26   : > { %2052 = vmatpush3.bf16.msra.mxu0 %v2133_v8  ;;  %2101 = vmatpush3.bf16.msra.mxu1 %v2133_v8 }
  0x27   : > { %2053 = vmatprep.subr.bf16.mxu0 %v2134_v9  ;;  %2094 = vmatprep.subr.bf16.mxu1 %v2134_v9 }
  0x2a   : > { %2054 = vmatpush3.bf16.msra.mxu0 %v2134_v9  ;;  %2102 = vmatpush3.bf16.msra.mxu1 %v2134_v9 }
  0x2d   : > { %2056 = vmatmul.mubr.bf16.vlgmr.msra.gmra.mxu0 %v2137_v10  ;;  %2072 = vmatmul.mubr.bf16.vlgmr.msra.gmra.mxu1 %v2138_v11 }
  0x2e   : > { %2059 = vmatprep.mubr.bf16.mxu0 %v2139_v12  ;;  %2075 = vmatprep.mubr.bf16.mxu1 %v2140_v13 }
  0x35   : > { %2060 = vmatmul.mubr.bf16.gmra.mxu0 %v2141_v14  ;;  %2076 = vmatmul.mubr.bf16.gmra.mxu1 %v2142_v15 }
  0x36   : > { %2063 = vmatprep.mubr.bf16.mxu0 %v2143_v16  ;;  %2079 = vmatprep.mubr.bf16.mxu1 %v2144_v17 }
  0x3d   : > { %2064 = vmatmul.mubr.bf16.gmra.mxu0 %v2145_v18  ;;  %2080 = vmatmul.mubr.bf16.gmra.mxu1 %v2146_v19 }
  0x3e   : > { %2067 = vmatprep.mubr.bf16.mxu0 %v2147_v20  ;;  %2083 = vmatprep.mubr.bf16.mxu1 %v2148_v21 }
  0x45   : > { %2068 = vmatmul.mubr.bf16.gmra.mxu0 %v2149_v22  ;;  %2084 = vmatmul.mubr.bf16.gmra.mxu1 %v2150_v23 }
  0xed   : > { %v2057_v25 = vpop.f32.mrf.mxu0  ;;  %v2073_v27 = vpop.f32.mrf.mxu1 }
  0xee   : > { %v961_v28 = vmul.f32 %v2057_v25, %v2284_v24  ;;  %v977_v29 = vmul.f32 %v2073_v27, %v2284_v24 }
  0xef   : > { %v726_v31 = vpop.f32.mrf.mxu0  ;;  %v790_v32 = vpop.f32.mrf.mxu1 }
  0xf0   : > { %v1000_v33 = vadd.f32 %v2289_v26, %v961_v28  ;;  %v1016_v34 = vadd.f32 %v2289_v26, %v977_v29  ;;  %v959_v35 = vmul.f32 %v2284_v24, %v726_v31  ;;  %v975_v36 = vmul.f32 %v2284_v24, %v790_v32 }
  0xf1   : > { %v2058_v38 = vpop.f32.mrf.mxu0  ;;  %v2074_v39 = vpop.f32.mrf.mxu1 }
  0xf2   : > { %v1199_v40 = vmul.f32 %v2296_v30, %v1000_v33  ;;  %v1215_v41 = vmul.f32 %v2296_v30, %v1016_v34  ;;  %v998_v42 = vadd.f32 %v2289_v26, %v959_v35  ;;  %v1014_v43 = vadd.f32 %v2289_v26, %v975_v36 }
  0xf3   : > { %v962_v44 = vmul.f32 %v2058_v38, %v2284_v24  ;;  %v978_v45 = vmul.f32 %v2074_v39, %v2284_v24  ;;  %v729_v46 = vpop.f32.mrf.mxu0  ;;  %v793_v47 = vpop.f32.mrf.mxu1 }
  0xf4   : > { %v1238_v48 = vadd.f32 %v2305_v37, %v1199_v40  ;;  %v1254_v49 = vadd.f32 %v2305_v37, %v1215_v41  ;;  %v1197_v50 = vmul.f32 %v2296_v30, %v998_v42  ;;  %v1213_v51 = vmul.f32 %v2296_v30, %v1014_v43 }
  0xf5   : > { %v1001_v52 = vadd.f32 %v2289_v26, %v962_v44  ;;  %v1017_v53 = vadd.f32 %v2289_v26, %v978_v45  ;;  %v960_v54 = vmul.f32 %v2284_v24, %v729_v46  ;;  %v976_v55 = vmul.f32 %v2284_v24, %v793_v47  ;;  %v2061_v56 = vpop.f32.mrf.mxu0  ;;  %v2077_v57 = vpop.f32.mrf.mxu1 }
  0xf6   : > { %v1270_v58 = vmax.f32 %v1238_v48, 0.0  ;;  %v1286_v59 = vmax.f32 %v1254_v49, 0.0  ;;  %v1236_v60 = vadd.f32 %v2305_v37, %v1197_v50  ;;  %v1252_v61 = vadd.f32 %v2305_v37, %v1213_v51 }
  0xf7   : > { %v1833_v62 = vpack.c.bf16 %v1001_v52, %v1000_v33  ;;  %v1200_v63 = vmul.f32 %v2296_v30, %v1001_v52  ;;  %v1873_v0 = vpack.c.bf16 %v1017_v53, %v1016_v34  ;;  %v1216_v1 = vmul.f32 %v2296_v30, %v1017_v53  ;;  %v742_v2 = vpop.f32.mrf.mxu0  ;;  %v806_v3 = vpop.f32.mrf.mxu1 }
  0xf8   : > { %v1268_v4 = vmax.f32 %v1236_v60, 0.0  ;;  %v1284_v5 = vmax.f32 %v1252_v61, 0.0  ;;  %v999_v6 = vadd.f32 %v2289_v26, %v960_v54  ;;  %v1015_v7 = vadd.f32 %v2289_v26, %v976_v55 }
  0xf9   : > { %1985 = vst [vmem:[%s2327_s17 + $0x8] sm:$0xff] %v1833_v62   ;;  %v1239_v8 = vadd.f32 %v2305_v37, %v1200_v63  ;;  %1993 = vst [vmem:[%s2327_s17 + $0x48] sm:$0xff] %v1873_v0   ;;  %v1255_v9 = vadd.f32 %v2305_v37, %v1216_v1  ;;  %v965_v10 = vmul.f32 %v2061_v56, %v2284_v24  ;;  %v2062_v12 = vpop.f32.mrf.mxu0  ;;  %v2078_v13 = vpop.f32.mrf.mxu1 }
  0xfa   : > { %v981_v11 = vmul.f32 %v2077_v57, %v2284_v24  ;;  %v1828_v14 = vpack.c.bf16 %v999_v6, %v998_v42  ;;  %v1198_v15 = vmul.f32 %v2296_v30, %v999_v6  ;;  %v1868_v16 = vpack.c.bf16 %v1015_v7, %v1014_v43 }
  0xfb   : > { %v1214_v17 = vmul.f32 %v2296_v30, %v1015_v7  ;;  %v1271_v18 = vmax.f32 %v1239_v8, 0.0  ;;  %v1287_v19 = vmax.f32 %v1255_v9, 0.0  ;;  %v1004_v20 = vadd.f32 %v2289_v26, %v965_v10  ;;  %v745_v22 = vpop.f32.mrf.mxu0  ;;  %v809_v23 = vpop.f32.mrf.mxu1 }
  0xfc   : > { %v1020_v21 = vadd.f32 %v2289_v26, %v981_v11  ;;  %1829 = vst [vmem:[%s2327_s17] sm:$0xff] %v1828_v14   ;;  %v1237_v25 = vadd.f32 %v2305_v37, %v1198_v15  ;;  %1992 = vst [vmem:[%s2327_s17 + $0x40] sm:$0xff] %v1868_v16   ;;  %v963_v28 = vmul.f32 %v2284_v24, %v742_v2 }
  0xfd   : > { %v1253_v27 = vadd.f32 %v2305_v37, %v1214_v17  ;;  %v979_v29 = vmul.f32 %v2284_v24, %v806_v3  ;;  %v1913_v31 = vpack.c.bf16 %v1271_v18, %v1270_v58  ;;  %v1953_v32 = vpack.c.bf16 %v1287_v19, %v1286_v59  ;;  %v2065_v35 = vpop.f32.mrf.mxu0  ;;  %v2081_v36 = vpop.f32.mrf.mxu1 }
  0xfe   : > { %v1203_v33 = vmul.f32 %v2296_v30, %v1004_v20  ;;  %v1219_v34 = vmul.f32 %v2296_v30, %v1020_v21  ;;  %v1269_v38 = vmax.f32 %v1237_v25, 0.0  ;;  %v1002_v40 = vadd.f32 %v2289_v26, %v963_v28 }
  0xff   : > { %v1285_v39 = vmax.f32 %v1253_v27, 0.0  ;;  %v1018_v41 = vadd.f32 %v2289_v26, %v979_v29  ;;  %2000 = vst [vmem:[%s2347_s20 + $0x8] sm:$0xff] %v1913_v31   ;;  %2008 = vst [vmem:[%s2347_s20 + $0x48] sm:$0xff] %v1953_v32   ;;  %v966_v44 = vmul.f32 %v2062_v12, %v2284_v24  ;;  %v982_v45 = vmul.f32 %v2078_v13, %v2284_v24  ;;  %v758_v46 = vpop.f32.mrf.mxu0  ;;  %v822_v47 = vpop.f32.mrf.mxu1 }
 0x100   : > { %v1242_v42 = vadd.f32 %v2305_v37, %v1203_v33  ;;  %v1258_v43 = vadd.f32 %v2305_v37, %v1219_v34  ;;  %v1908_v48 = vpack.c.bf16 %v1269_v38, %v1268_v4  ;;  %v1201_v50 = vmul.f32 %v2296_v30, %v1002_v40 }
 0x101   : > { %v1948_v49 = vpack.c.bf16 %v1285_v39, %v1284_v5  ;;  %v1217_v51 = vmul.f32 %v2296_v30, %v1018_v41  ;;  %v1005_v54 = vadd.f32 %v2289_v26, %v966_v44  ;;  %v1021_v55 = vadd.f32 %v2289_v26, %v982_v45  ;;  %v2066_v0 = vpop.f32.mrf.mxu0  ;;  %v2082_v1 = vpop.f32.mrf.mxu1 }
 0x102   : > { %v1274_v52 = vmax.f32 %v1242_v42, 0.0  ;;  %v1290_v53 = vmax.f32 %v1258_v43, 0.0  ;;  %1909 = vst [vmem:[%s2347_s20] sm:$0xff] %v1908_v48   ;;  %v1240_v56 = vadd.f32 %v2305_v37, %v1201_v50  ;;  %v964_v58 = vmul.f32 %v2284_v24, %v745_v22 }
 0x103   : > { %2007 = vst [vmem:[%s2347_s20 + $0x40] sm:$0xff] %v1948_v49   ;;  %v1256_v57 = vadd.f32 %v2305_v37, %v1217_v51  ;;  %v980_v59 = vmul.f32 %v2284_v24, %v809_v23  ;;  %v1843_v60 = vpack.c.bf16 %v1005_v54, %v1004_v20  ;;  %v1204_v61 = vmul.f32 %v2296_v30, %v1005_v54  ;;  %v761_v18 = vpop.f32.mrf.mxu0  ;;  %v825_v19 = vpop.f32.mrf.mxu1 }
 0x104   : > { %v1883_v62 = vpack.c.bf16 %v1021_v55, %v1020_v21  ;;  %v1220_v63 = vmul.f32 %v2296_v30, %v1021_v55  ;;  %v1272_v2 = vmax.f32 %v1240_v56, 0.0  ;;  %v1003_v4 = vadd.f32 %v2289_v26, %v964_v58 }
 0x105   : > { %v1288_v3 = vmax.f32 %v1256_v57, 0.0  ;;  %v1019_v5 = vadd.f32 %v2289_v26, %v980_v59  ;;  %1987 = vst [vmem:[%s2327_s17 + $0x18] sm:$0xff] %v1843_v60   ;;  %v1243_v6 = vadd.f32 %v2305_v37, %v1204_v61  ;;  %v969_v8 = vmul.f32 %v2065_v35, %v2284_v24 }
 0x106   : > { %1995 = vst [vmem:[%s2327_s17 + $0x58] sm:$0xff] %v1883_v62   ;;  %v1259_v7 = vadd.f32 %v2305_v37, %v1220_v63  ;;  %v985_v9 = vmul.f32 %v2081_v36, %v2284_v24  ;;  %v1838_v10 = vpack.c.bf16 %v1003_v4, %v1002_v40  ;;  %v1202_v11 = vmul.f32 %v2296_v30, %v1003_v4  ;;  %v2069_v40 = vpop.f32.mrf.mxu0 }
 0x107   : > { %v1878_v12 = vpack.c.bf16 %v1019_v5, %v1018_v41  ;;  %v1218_v13 = vmul.f32 %v2296_v30, %v1019_v5  ;;  %v1275_v14 = vmax.f32 %v1243_v6, 0.0  ;;  %v1008_v16 = vadd.f32 %v2289_v26, %v969_v8  ;;  %v2085_v41 = vpop.f32.mrf.mxu1 }
 0x108   : > { %v1291_v15 = vmax.f32 %v1259_v7, 0.0  ;;  %v1024_v17 = vadd.f32 %v2289_v26, %v985_v9  ;;  %1986 = vst [vmem:[%s2327_s17 + $0x10] sm:$0xff] %v1838_v10   ;;  %v1241_v20 = vadd.f32 %v2305_v37, %v1202_v11  ;;  %v967_v22 = vmul.f32 %v2284_v24, %v758_v46  ;;  %v774_v58 = vpop.f32.mrf.mxu0 }
 0x109   : > { %1994 = vst [vmem:[%s2327_s17 + $0x50] sm:$0xff] %v1878_v12   ;;  %v1257_v21 = vadd.f32 %v2305_v37, %v1218_v13  ;;  %v983_v23 = vmul.f32 %v2284_v24, %v822_v47  ;;  %v1923_v25 = vpack.c.bf16 %v1275_v14, %v1274_v52  ;;  %v1207_v28 = vmul.f32 %v2296_v30, %v1008_v16  ;;  %v838_v59 = vpop.f32.mrf.mxu1 }
 0x10a   : > { %v1963_v27 = vpack.c.bf16 %v1291_v15, %v1290_v53  ;;  %v1223_v29 = vmul.f32 %v2296_v30, %v1024_v17  ;;  %v1273_v31 = vmax.f32 %v1241_v20, 0.0  ;;  %v1006_v33 = vadd.f32 %v2289_v26, %v967_v22  ;;  %v2070_v12 = vpop.f32.mrf.mxu0 }
 0x10b   : > { %v1289_v32 = vmax.f32 %v1257_v21, 0.0  ;;  %v1022_v34 = vadd.f32 %v2289_v26, %v983_v23  ;;  %2002 = vst [vmem:[%s2347_s20 + $0x18] sm:$0xff] %v1923_v25   ;;  %v1246_v35 = vadd.f32 %v2305_v37, %v1207_v28  ;;  %v970_v38 = vmul.f32 %v2066_v0, %v2284_v24  ;;  %v2086_v13 = vpop.f32.mrf.mxu1 }
 0x10c   : > { %2010 = vst [vmem:[%s2347_s20 + $0x58] sm:$0xff] %v1963_v27   ;;  %v1262_v36 = vadd.f32 %v2305_v37, %v1223_v29  ;;  %v986_v39 = vmul.f32 %v2082_v1, %v2284_v24  ;;  %v1918_v42 = vpack.c.bf16 %v1273_v31, %v1272_v2  ;;  %v1205_v44 = vmul.f32 %v2296_v30, %v1006_v33  ;;  %v777_v31 = vpop.f32.mrf.mxu0 }
 0x10d   : > { %v1958_v43 = vpack.c.bf16 %v1289_v32, %v1288_v3  ;;  %v1221_v45 = vmul.f32 %v2296_v30, %v1022_v34  ;;  %v1278_v46 = vmax.f32 %v1246_v35, 0.0  ;;  %v1009_v48 = vadd.f32 %v2289_v26, %v970_v38  ;;  %v841_v32 = vpop.f32.mrf.mxu1 }
 0x10e   : > { %v1294_v47 = vmax.f32 %v1262_v36, 0.0  ;;  %v1025_v49 = vadd.f32 %v2289_v26, %v986_v39  ;;  %2001 = vst [vmem:[%s2347_s20 + $0x10] sm:$0xff] %v1918_v42   ;;  %v1244_v50 = vadd.f32 %v2305_v37, %v1205_v44  ;;  %v968_v52 = vmul.f32 %v2284_v24, %v761_v18 }
 0x10f   : > { %2009 = vst [vmem:[%s2347_s20 + $0x50] sm:$0xff] %v1958_v43   ;;  %v1260_v51 = vadd.f32 %v2305_v37, %v1221_v45  ;;  %v984_v53 = vmul.f32 %v2284_v24, %v825_v19  ;;  %v1853_v54 = vpack.c.bf16 %v1009_v48, %v1008_v16  ;;  %v1208_v55 = vmul.f32 %v2296_v30, %v1009_v48 }
 0x110   : > { %v1893_v56 = vpack.c.bf16 %v1025_v49, %v1024_v17  ;;  %v1224_v57 = vmul.f32 %v2296_v30, %v1025_v49  ;;  %v1276_v60 = vmax.f32 %v1244_v50, 0.0  ;;  %v1007_v62 = vadd.f32 %v2289_v26, %v968_v52 }
 0x111   : > { %v1292_v61 = vmax.f32 %v1260_v51, 0.0  ;;  %v1023_v63 = vadd.f32 %v2289_v26, %v984_v53  ;;  %1989 = vst [vmem:[%s2327_s17 + $0x28] sm:$0xff] %v1853_v54   ;;  %v1247_v0 = vadd.f32 %v2305_v37, %v1208_v55  ;;  %v973_v2 = vmul.f32 %v2069_v40, %v2284_v24 }
 0x112   : > { %1997 = vst [vmem:[%s2327_s17 + $0x68] sm:$0xff] %v1893_v56   ;;  %v1263_v1 = vadd.f32 %v2305_v37, %v1224_v57  ;;  %v989_v3 = vmul.f32 %v2085_v41, %v2284_v24  ;;  %v1848_v4 = vpack.c.bf16 %v1007_v62, %v1006_v33  ;;  %v1206_v5 = vmul.f32 %v2296_v30, %v1007_v62 }
 0x113   : > { %v1888_v6 = vpack.c.bf16 %v1023_v63, %v1022_v34  ;;  %v1222_v7 = vmul.f32 %v2296_v30, %v1023_v63  ;;  %v1279_v8 = vmax.f32 %v1247_v0, 0.0  ;;  %v1012_v10 = vadd.f32 %v2289_v26, %v973_v2 }
 0x114   : > { %v1295_v9 = vmax.f32 %v1263_v1, 0.0  ;;  %v1028_v11 = vadd.f32 %v2289_v26, %v989_v3  ;;  %1988 = vst [vmem:[%s2327_s17 + $0x20] sm:$0xff] %v1848_v4   ;;  %v1245_v14 = vadd.f32 %v2305_v37, %v1206_v5  ;;  %v971_v16 = vmul.f32 %v2284_v24, %v774_v58 }
 0x115   : > { %1996 = vst [vmem:[%s2327_s17 + $0x60] sm:$0xff] %v1888_v6   ;;  %v1261_v15 = vadd.f32 %v2305_v37, %v1222_v7  ;;  %v987_v17 = vmul.f32 %v2284_v24, %v838_v59  ;;  %v1933_v18 = vpack.c.bf16 %v1279_v8, %v1278_v46  ;;  %v1211_v20 = vmul.f32 %v2296_v30, %v1012_v10 }
 0x116   : > { %v1973_v19 = vpack.c.bf16 %v1295_v9, %v1294_v47  ;;  %v1227_v21 = vmul.f32 %v2296_v30, %v1028_v11  ;;  %v1277_v22 = vmax.f32 %v1245_v14, 0.0  ;;  %v1010_v25 = vadd.f32 %v2289_v26, %v971_v16 }
 0x117   : > { %v1293_v23 = vmax.f32 %v1261_v15, 0.0  ;;  %v1026_v27 = vadd.f32 %v2289_v26, %v987_v17  ;;  %2004 = vst [vmem:[%s2347_s20 + $0x28] sm:$0xff] %v1933_v18   ;;  %v974_v28 = vmul.f32 %v2070_v12, %v2284_v24  ;;  %v990_v29 = vmul.f32 %v2086_v13, %v2284_v24 }
 0x118   : > { %2012 = vst [vmem:[%s2347_s20 + $0x68] sm:$0xff] %v1973_v19   ;;  %v1928_v33 = vpack.c.bf16 %v1277_v22, %v1276_v60  ;;  %v1209_v35 = vmul.f32 %v2296_v30, %v1010_v25  ;;  %v1250_v40 = vadd.f32 %v2305_v37, %v1211_v20  ;;  %v1266_v41 = vadd.f32 %v2305_v37, %v1227_v21 }
 0x119   : > { %v1968_v34 = vpack.c.bf16 %v1293_v23, %v1292_v61  ;;  %v1225_v36 = vmul.f32 %v2296_v30, %v1026_v27  ;;  %v1013_v38 = vadd.f32 %v2289_v26, %v974_v28  ;;  %v1029_v39 = vadd.f32 %v2289_v26, %v990_v29 }
 0x11a   : > { %2003 = vst [vmem:[%s2347_s20 + $0x20] sm:$0xff] %v1928_v33   ;;  %v972_v42 = vmul.f32 %v2284_v24, %v777_v31  ;;  %v988_v43 = vmul.f32 %v2284_v24, %v841_v32  ;;  %v1248_v50 = vadd.f32 %v2305_v37, %v1209_v35  ;;  %v1298_v57 = vmax.f32 %v1266_v41, 0.0 }
 0x11b   : > { %2011 = vst [vmem:[%s2347_s20 + $0x60] sm:$0xff] %v1968_v34   ;;  %v1863_v44 = vpack.c.bf16 %v1013_v38, %v1012_v10  ;;  %v1212_v45 = vmul.f32 %v2296_v30, %v1013_v38  ;;  %v1903_v46 = vpack.c.bf16 %v1029_v39, %v1028_v11  ;;  %v1228_v47 = vmul.f32 %v2296_v30, %v1029_v39 }
 0x11c   : > { %v1011_v48 = vadd.f32 %v2289_v26, %v972_v42  ;;  %v1027_v49 = vadd.f32 %v2289_v26, %v988_v43  ;;  %v1264_v51 = vadd.f32 %v2305_v37, %v1225_v36  ;;  %v1282_v26 = vmax.f32 %v1250_v40, 0.0 }
 0x11d   : > { %1991 = vst [vmem:[%s2327_s17 + $0x38] sm:$0xff] %v1863_v44   ;;  %v1251_v52 = vadd.f32 %v2305_v37, %v1212_v45  ;;  %1999 = vst [vmem:[%s2327_s17 + $0x78] sm:$0xff] %v1903_v46   ;;  %v1267_v24 = vadd.f32 %v2305_v37, %v1228_v47  ;;  %v1280_v0 = vmax.f32 %v1248_v50, 0.0 }
 0x11e   : > { %v1858_v53 = vpack.c.bf16 %v1011_v48, %v1010_v25  ;;  %v1210_v54 = vmul.f32 %v2296_v30, %v1011_v48  ;;  %v1898_v55 = vpack.c.bf16 %v1027_v49, %v1026_v27  ;;  %v1226_v56 = vmul.f32 %v2296_v30, %v1027_v49 }
 0x11f   : > { %v1283_v58 = vmax.f32 %v1251_v52, 0.0  ;;  %v1299_v59 = vmax.f32 %v1267_v24, 0.0  ;;  %v1296_v1 = vmax.f32 %v1264_v51, 0.0 }
 0x120   : > { %1990 = vst [vmem:[%s2327_s17 + $0x30] sm:$0xff] %v1858_v53   ;;  %v1249_v60 = vadd.f32 %v2305_v37, %v1210_v54  ;;  %1998 = vst [vmem:[%s2327_s17 + $0x70] sm:$0xff] %v1898_v55   ;;  %v1265_v61 = vadd.f32 %v2305_v37, %v1226_v56 }
 0x121   : > { %v1943_v62 = vpack.c.bf16 %v1283_v58, %v1282_v26  ;;  %v1983_v63 = vpack.c.bf16 %v1299_v59, %v1298_v57 }
 0x122   : > { %v1281_v2 = vmax.f32 %v1249_v60, 0.0  ;;  %v1297_v3 = vmax.f32 %v1265_v61, 0.0 }
 0x123   : > { %2006 = vst [vmem:[%s2347_s20 + $0x38] sm:$0xff] %v1943_v62   ;;  %2014 = vst [vmem:[%s2347_s20 + $0x78] sm:$0xff] %v1983_v63  }
 0x124   : > { %v1938_v30 = vpack.c.bf16 %v1281_v2, %v1280_v0  ;;  %v1978_v4 = vpack.c.bf16 %v1297_v3, %v1296_v1 }
 0x126   : > { %2005 = vst [vmem:[%s2347_s20 + $0x30] sm:$0xff] %v1938_v30   ;;  %2013 = vst [vmem:[%s2347_s20 + $0x70] sm:$0xff] %v1978_v4  }
 0x127 PF: > { %s18_s26 = sadd.s32 1, %s2173_s26   ;;  %s2490_s24 = smov %s2169_s25 }
 0x128   : > { %p15_p5 = scmp.ge.s32.totalorder %s18_s26, 4   ;;  %s2491_s25 = smov %s2493_s27 }
 0x12a   :  { %17 = sbr.rel (!%p15_p5) target bundleno = 2 (0x2), region = 109 }

// kernel: wideresnet_forward.11
= control target key start
LH: loop header
LB: loop body
LE: loop exit
PB: predicated region body
PF: predicated region fallthrough
CT: control target
= control target key end

     0   :  { %s1843_s15 = smov 0   ;;  %s1845_s16 = smov 0   ;;  %s2054_s0 = inlined_call_operand.vmem [shape: bf16[512,256], index: 0, kind: input, shape index: {}]   ;;  %s2055_s1 = inlined_call_operand.vmem [shape: bf16[256,128], index: 1, kind: input, shape index: {}]   ;;  %s2056_s2 = inlined_call_operand.vmem [shape: f32[1,128], index: 2, kind: input, shape index: {}]   ;;  %s2057_s3 = inlined_call_operand.vmem [shape: f32[1,128], index: 3, kind: input, shape index: {}]   ;;  %s2058_s4 = inlined_call_operand.vmem [shape: bf16[512,128], index: 4, kind: output, shape index: {}]  }
   0x1   :  { %s1847_s17 = smov 0  }
   0x2 LB: > { %s33_s18 = sadd.s32 1, %s1812_s16  ;;  %p1360_p0 = scmp.ge.s32.totalorder %s1816_s17, 1  ;;  %s1816_s17 = sphi %s1847_s17, %s14_s17   ;;  %s1812_s16 = sphi %s1845_s16, %s2060_s16   ;;  %s1808_s15 = sphi %s1843_s15, %s2059_s15  }
   0x3   : > { %p35_p1 = scmp.ge.s32.totalorder %s33_s18, 2  ;;  %p224_p2 = scmp.lt.s32.totalorder %s1816_s17, 3 }
   0x5   : > { %s2062_s18 = smov (%p35_p1, %s33_s18), 0  ;;  %p225_p3 = pnand %p1360_p0, %p224_p2 }
   0x6   : > { %s1361_s21 = sshll.u32 (!%p225_p3), %s1808_s15, 5 }
   0x7   : > { %228 = sbr.rel (%p225_p3) target bundleno = 311 (0x137), region = 36  ;;  %p274_p4 = scmp.lt.s32.totalorder (!%p225_p3), %s1361_s21, 63 }
   0xc   : > { %v1730_v0 = vld [vmem:[%s2055_s1 + $0x78] sm:$0xff]   ;;  %v1732_v2 = vld [vmem:[%s2055_s1 + $0x70] sm:$0xff]   ;;  %v1734_v4 = vld [vmem:[%s2055_s1 + $0x68] sm:$0xff]   ;;  %s2064_s21 = smov (!%p274_p4, %s1361_s21), 63 }
   0xd   : > { %v1731_v1 = vld [vmem:[%s2055_s1 + $0x38] sm:$0xff]   ;;  %1578 = vmatprep.subr.bf16.mxu0 %v1730_v0  ;;  %1690 = vmatprep.subr.bf16.mxu1 %v1730_v0  ;;  %v1733_v3 = vld [vmem:[%s2055_s1 + $0x30] sm:$0xff]   ;;  %v1735_v5 = vld [vmem:[%s2055_s1 + $0x28] sm:$0xff]   ;;  %s1450_s10 = sshll.u32 %s2064_s21, 3  ;;  %s1365_s12 = sshll.u32 %s2064_s21, 2 }
   0xe   : > { %1579 = vmatpush3.bf16.msra.mxu0 %v1731_v1  ;;  %1698 = vmatpush3.bf16.msra.mxu1 %v1731_v1  ;;  %v1736_v6 = vld [vmem:[%s2055_s1 + $0x60] sm:$0xff]   ;;  %v1738_v8 = vld [vmem:[%s2055_s1 + $0x58] sm:$0xff]   ;;  %s1894_s15 = scalar_lea.vmem %s2054_s0, %s1450_s10  ;;  %v1740_v10 = vld [vmem:[%s2055_s1 + $0x50] sm:$0xff]  }
   0xf   : > { %1580 = vmatprep.subr.bf16.mxu0 %v1732_v2  ;;  %1691 = vmatprep.subr.bf16.mxu1 %v1732_v2  ;;  %v1737_v7 = vld [vmem:[%s2055_s1 + $0x20] sm:$0xff]   ;;  %v1739_v9 = vld [vmem:[%s2055_s1 + $0x18] sm:$0xff]   ;;  %v1741_v13 = vld [vmem:[%s2055_s1 + $0x10] sm:$0xff]  }
  0x10   : > { %v1748_v11 = vld [vmem:[%s1894_s15 + $0x4] ss:$8 sps:$4 sm:$0xff]   ;;  %v1746_v18 = vld [vmem:[%s1894_s15] ss:$8 sps:$4 sm:$0xff]   ;;  %v1752_v20 = vld [vmem:[%s1894_s15 + $0x14] ss:$8 sps:$4 sm:$0xff]  }
  0x11   : > { %v1751_v12 = vld [vmem:[%s1894_s15 + $0x84] ss:$8 sps:$4 sm:$0xff]   ;;  %729 = vmatprep.mubr.bf16.mxu0 %v1748_v11  ;;  %v1749_v19 = vld [vmem:[%s1894_s15 + $0x80] ss:$8 sps:$4 sm:$0xff]   ;;  %v1754_v21 = vld [vmem:[%s1894_s15 + $0x94] ss:$8 sps:$4 sm:$0xff]  }
  0x12   : > { %1581 = vmatpush3.bf16.msra.mxu0 %v1733_v3  ;;  %1699 = vmatpush3.bf16.msra.mxu1 %v1733_v3  ;;  %v1742_v14 = vld [vmem:[%s2055_s1 + $0x48] sm:$0xff]   ;;  %v1744_v16 = vld [vmem:[%s2055_s1 + $0x40] sm:$0xff]   ;;  %v1756_v22 = vld [vmem:[%s1894_s15 + $0x10] ss:$8 sps:$4 sm:$0xff]  }
  0x13   : > { %1582 = vmatprep.subr.bf16.mxu0 %v1734_v4  ;;  %1692 = vmatprep.subr.bf16.mxu1 %v1734_v4  ;;  %v1743_v15 = vld [vmem:[%s2055_s1 + $0x8] sm:$0xff]   ;;  %v1745_v17 = vld [vmem:[%s2055_s1] sm:$0xff]   ;;  %v1757_v23 = vld [vmem:[%s1894_s15 + $0x90] ss:$8 sps:$4 sm:$0xff]  }
  0x14   : > { %793 = vmatprep.mubr.bf16.mxu1 %v1751_v12  ;;  %v1758_v24 = vld [vmem:[%s1894_s15 + $0x24] ss:$8 sps:$4 sm:$0xff]   ;;  %v1762_v26 = vld [vmem:[%s1894_s15 + $0x20] ss:$8 sps:$4 sm:$0xff]   ;;  %v1764_v28 = vld [vmem:[%s1894_s15 + $0x34] ss:$8 sps:$4 sm:$0xff]  }
  0x15   : > { %v1760_v25 = vld [vmem:[%s1894_s15 + $0xa4] ss:$8 sps:$4 sm:$0xff]   ;;  %v1763_v27 = vld [vmem:[%s1894_s15 + $0xa0] ss:$8 sps:$4 sm:$0xff]   ;;  %v1766_v29 = vld [vmem:[%s1894_s15 + $0xb4] ss:$8 sps:$4 sm:$0xff]  }
  0x16   : > { %1583 = vmatpush3.bf16.msra.mxu0 %v1735_v5  ;;  %1700 = vmatpush3.bf16.msra.mxu1 %v1735_v5  ;;  %v1768_v30 = vld [vmem:[%s1894_s15 + $0x30] ss:$8 sps:$4 sm:$0xff]   ;;  %v1770_v32 = vld [vmem:[%s1894_s15 + $0x44] ss:$8 sps:$4 sm:$0xff]   ;;  %v1774_v34 = vld [vmem:[%s1894_s15 + $0x40] ss:$8 sps:$4 sm:$0xff]  }
  0x17   : > { %1584 = vmatprep.subr.bf16.mxu0 %v1736_v6  ;;  %1693 = vmatprep.subr.bf16.mxu1 %v1736_v6  ;;  %v1769_v31 = vld [vmem:[%s1894_s15 + $0xb0] ss:$8 sps:$4 sm:$0xff]   ;;  %v1772_v33 = vld [vmem:[%s1894_s15 + $0xc4] ss:$8 sps:$4 sm:$0xff]   ;;  %v1775_v35 = vld [vmem:[%s1894_s15 + $0xc0] ss:$8 sps:$4 sm:$0xff]  }
  0x18   : > { %v1776_v36 = vld [vmem:[%s1894_s15 + $0x54] ss:$8 sps:$4 sm:$0xff]   ;;  %v1780_v38 = vld [vmem:[%s1894_s15 + $0x50] ss:$8 sps:$4 sm:$0xff]   ;;  %v1782_v40 = vld [vmem:[%s1894_s15 + $0x64] ss:$8 sps:$4 sm:$0xff]  }
  0x19   : > { %v1778_v37 = vld [vmem:[%s1894_s15 + $0xd4] ss:$8 sps:$4 sm:$0xff]   ;;  %v1781_v39 = vld [vmem:[%s1894_s15 + $0xd0] ss:$8 sps:$4 sm:$0xff]   ;;  %v1784_v41 = vld [vmem:[%s1894_s15 + $0xe4] ss:$8 sps:$4 sm:$0xff]  }
  0x1a   : > { %1585 = vmatpush3.bf16.msra.mxu0 %v1737_v7  ;;  %1701 = vmatpush3.bf16.msra.mxu1 %v1737_v7  ;;  %v1786_v42 = vld [vmem:[%s1894_s15 + $0x60] ss:$8 sps:$4 sm:$0xff]   ;;  %v1788_v44 = vld [vmem:[%s1894_s15 + $0x74] ss:$8 sps:$4 sm:$0xff]   ;;  %v1792_v46 = vld [vmem:[%s1894_s15 + $0x70] ss:$8 sps:$4 sm:$0xff]  }
  0x1b   : > { %1586 = vmatprep.subr.bf16.mxu0 %v1738_v8  ;;  %1694 = vmatprep.subr.bf16.mxu1 %v1738_v8  ;;  %v1787_v43 = vld [vmem:[%s1894_s15 + $0xe0] ss:$8 sps:$4 sm:$0xff]   ;;  %v1790_v45 = vld [vmem:[%s1894_s15 + $0xf4] ss:$8 sps:$4 sm:$0xff]   ;;  %v1793_v47 = vld [vmem:[%s1894_s15 + $0xf0] ss:$8 sps:$4 sm:$0xff]   ;;  %s1971_s15 = scalar_lea.vmem %s2058_s4, %s1365_s12 }
  0x1c   : > { %v1952_v51 = vld [vmem:[%s2056_s2] ss:$0 sm:$0xff] }
  0x1d   : > { %v1959_v59 = vld [vmem:[%s2057_s3] ss:$0 sm:$0xff] }
  0x1e   : > { %1587 = vmatpush3.bf16.msra.mxu0 %v1739_v9  ;;  %1702 = vmatpush3.bf16.msra.mxu1 %v1739_v9 }
  0x1f   : > { %1588 = vmatprep.subr.bf16.mxu0 %v1740_v10  ;;  %1695 = vmatprep.subr.bf16.mxu1 %v1740_v10 }
  0x22   : > { %1589 = vmatpush3.bf16.msra.mxu0 %v1741_v13  ;;  %1703 = vmatpush3.bf16.msra.mxu1 %v1741_v13 }
  0x23   : > { %1590 = vmatprep.subr.bf16.mxu0 %v1742_v14  ;;  %1696 = vmatprep.subr.bf16.mxu1 %v1742_v14 }
  0x26   : > { %1591 = vmatpush3.bf16.msra.mxu0 %v1743_v15  ;;  %1704 = vmatpush3.bf16.msra.mxu1 %v1743_v15 }
  0x27   : > { %1592 = vmatprep.subr.bf16.mxu0 %v1744_v16  ;;  %1697 = vmatprep.subr.bf16.mxu1 %v1744_v16 }
  0x2a   : > { %1593 = vmatpush3.bf16.msra.mxu0 %v1745_v17  ;;  %1705 = vmatpush3.bf16.msra.mxu1 %v1745_v17 }
  0x2d   : > { %730 = vmatmul.mubr.bf16.vlgmr.msra.gmra.mxu0 %v1746_v18  ;;  %794 = vmatmul.mubr.bf16.vlgmr.msra.gmra.mxu1 %v1749_v19 }
  0x2e   : > { %737 = vmatprep.mubr.bf16.mxu0 %v1752_v20  ;;  %801 = vmatprep.mubr.bf16.mxu1 %v1754_v21 }
  0x35   : > { %738 = vmatmul.mubr.bf16.gmra.mxu0 %v1756_v22  ;;  %802 = vmatmul.mubr.bf16.gmra.mxu1 %v1757_v23 }
  0x36   : > { %745 = vmatprep.mubr.bf16.mxu0 %v1758_v24  ;;  %809 = vmatprep.mubr.bf16.mxu1 %v1760_v25 }
  0x3d   : > { %746 = vmatmul.mubr.bf16.gmra.mxu0 %v1762_v26  ;;  %810 = vmatmul.mubr.bf16.gmra.mxu1 %v1763_v27 }
  0x3e   : > { %753 = vmatprep.mubr.bf16.mxu0 %v1764_v28  ;;  %817 = vmatprep.mubr.bf16.mxu1 %v1766_v29 }
  0x45   : > { %754 = vmatmul.mubr.bf16.gmra.mxu0 %v1768_v30  ;;  %818 = vmatmul.mubr.bf16.gmra.mxu1 %v1769_v31 }
  0x46   : > { %761 = vmatprep.mubr.bf16.mxu0 %v1770_v32  ;;  %825 = vmatprep.mubr.bf16.mxu1 %v1772_v33 }
  0x4d   : > { %762 = vmatmul.mubr.bf16.gmra.mxu0 %v1774_v34  ;;  %826 = vmatmul.mubr.bf16.gmra.mxu1 %v1775_v35 }
  0x4e   : > { %769 = vmatprep.mubr.bf16.mxu0 %v1776_v36  ;;  %833 = vmatprep.mubr.bf16.mxu1 %v1778_v37 }
  0x55   : > { %770 = vmatmul.mubr.bf16.gmra.mxu0 %v1780_v38  ;;  %834 = vmatmul.mubr.bf16.gmra.mxu1 %v1781_v39 }
  0x56   : > { %777 = vmatprep.mubr.bf16.mxu0 %v1782_v40  ;;  %841 = vmatprep.mubr.bf16.mxu1 %v1784_v41 }
  0x5d   : > { %778 = vmatmul.mubr.bf16.gmra.mxu0 %v1786_v42  ;;  %842 = vmatmul.mubr.bf16.gmra.mxu1 %v1787_v43 }
  0x5e   : > { %785 = vmatprep.mubr.bf16.mxu0 %v1788_v44  ;;  %849 = vmatprep.mubr.bf16.mxu1 %v1790_v45 }
  0x65   : > { %786 = vmatmul.mubr.bf16.gmra.mxu0 %v1792_v46  ;;  %850 = vmatmul.mubr.bf16.gmra.mxu1 %v1793_v47 }
  0xed   : > { %v1594_v48 = vpop.f32.mrf.mxu0  ;;  %v1642_v49 = vpop.f32.mrf.mxu1 }
  0xef   : > { %v1595_v50 = vpop.f32.mrf.mxu0  ;;  %v1643_v52 = vpop.f32.mrf.mxu1 }
  0xf0   : > { %v1596_v53 = vadd.f32 %v1595_v50, %v1594_v48  ;;  %v1644_v54 = vadd.f32 %v1643_v52, %v1642_v49 }
  0xf1   : > { %v1597_v55 = vpop.f32.mrf.mxu0  ;;  %v1645_v56 = vpop.f32.mrf.mxu1 }
  0xf2   : > { %v964_v57 = vmul.f32 %v1596_v53, %v1952_v51  ;;  %v980_v58 = vmul.f32 %v1644_v54, %v1952_v51 }
  0xf3   : > { %v1598_v60 = vpop.f32.mrf.mxu0  ;;  %v1646_v61 = vpop.f32.mrf.mxu1 }
  0xf4   : > { %v1599_v62 = vadd.f32 %v1598_v60, %v1597_v55  ;;  %v1647_v63 = vadd.f32 %v1646_v61, %v1645_v56  ;;  %v1003_v2 = vadd.f32 %v1959_v59, %v964_v57  ;;  %v1019_v3 = vadd.f32 %v1959_v59, %v980_v58 }
  0xf5   : > { %v1600_v0 = vpop.f32.mrf.mxu0  ;;  %v1648_v1 = vpop.f32.mrf.mxu1 }
  0xf6   : > { %v965_v4 = vmul.f32 %v1599_v62, %v1952_v51  ;;  %v981_v5 = vmul.f32 %v1647_v63, %v1952_v51  ;;  %v1035_v14 = vmax.f32 %v1003_v2, 0.0  ;;  %v1051_v15 = vmax.f32 %v1019_v3, 0.0 }
  0xf7   : > { %v1601_v6 = vpop.f32.mrf.mxu0  ;;  %v1649_v7 = vpop.f32.mrf.mxu1 }
  0xf8   : > { %v1004_v8 = vadd.f32 %v1959_v59, %v965_v4  ;;  %v1020_v9 = vadd.f32 %v1959_v59, %v981_v5  ;;  %v1602_v10 = vadd.f32 %v1601_v6, %v1600_v0  ;;  %v1650_v11 = vadd.f32 %v1649_v7, %v1648_v1 }
  0xf9   : > { %v1603_v12 = vpop.f32.mrf.mxu0  ;;  %v1651_v13 = vpop.f32.mrf.mxu1 }
  0xfa   : > { %v1036_v16 = vmax.f32 %v1004_v8, 0.0  ;;  %v1052_v17 = vmax.f32 %v1020_v9, 0.0  ;;  %v966_v18 = vmul.f32 %v1602_v10, %v1952_v51  ;;  %v982_v19 = vmul.f32 %v1650_v11, %v1952_v51 }
  0xfb   : > { %v1604_v20 = vpop.f32.mrf.mxu0  ;;  %v1652_v21 = vpop.f32.mrf.mxu1 }
  0xfc   : > { %v1486_v22 = vpack.c.bf16 %v1036_v16, %v1035_v14  ;;  %v1526_v23 = vpack.c.bf16 %v1052_v17, %v1051_v15  ;;  %v1605_v24 = vadd.f32 %v1604_v20, %v1603_v12  ;;  %v1653_v25 = vadd.f32 %v1652_v21, %v1651_v13 }
  0xfd   : > { %v1606_v26 = vpop.f32.mrf.mxu0  ;;  %v1654_v27 = vpop.f32.mrf.mxu1  ;;  %v1005_v28 = vadd.f32 %v1959_v59, %v966_v18  ;;  %v1021_v29 = vadd.f32 %v1959_v59, %v982_v19 }
  0xfe   : > { %1487 = vst [vmem:[%s1971_s15] sm:$0xff] %v1486_v22   ;;  %1570 = vst [vmem:[%s1971_s15 + $0x40] sm:$0xff] %v1526_v23   ;;  %v967_v30 = vmul.f32 %v1605_v24, %v1952_v51  ;;  %v983_v31 = vmul.f32 %v1653_v25, %v1952_v51 }
  0xff   : > { %v1607_v32 = vpop.f32.mrf.mxu0  ;;  %v1655_v33 = vpop.f32.mrf.mxu1  ;;  %v1037_v42 = vmax.f32 %v1005_v28, 0.0  ;;  %v1053_v43 = vmax.f32 %v1021_v29, 0.0 }
 0x100   : > { %v1608_v34 = vadd.f32 %v1607_v32, %v1606_v26  ;;  %v1656_v35 = vadd.f32 %v1655_v33, %v1654_v27  ;;  %v1006_v36 = vadd.f32 %v1959_v59, %v967_v30  ;;  %v1022_v37 = vadd.f32 %v1959_v59, %v983_v31 }
 0x101   : > { %v1609_v38 = vpop.f32.mrf.mxu0  ;;  %v1657_v39 = vpop.f32.mrf.mxu1 }
 0x102   : > { %v968_v40 = vmul.f32 %v1608_v34, %v1952_v51  ;;  %v984_v41 = vmul.f32 %v1656_v35, %v1952_v51  ;;  %v1038_v44 = vmax.f32 %v1006_v36, 0.0  ;;  %v1054_v45 = vmax.f32 %v1022_v37, 0.0 }
 0x103   : > { %v1610_v46 = vpop.f32.mrf.mxu0  ;;  %v1658_v47 = vpop.f32.mrf.mxu1 }
 0x104   : > { %v1611_v48 = vadd.f32 %v1610_v46, %v1609_v38  ;;  %v1659_v49 = vadd.f32 %v1658_v47, %v1657_v39  ;;  %v1491_v50 = vpack.c.bf16 %v1038_v44, %v1037_v42  ;;  %v1531_v52 = vpack.c.bf16 %v1054_v45, %v1053_v43 }
 0x105   : > { %v1612_v53 = vpop.f32.mrf.mxu0  ;;  %v1660_v54 = vpop.f32.mrf.mxu1  ;;  %v1007_v55 = vadd.f32 %v1959_v59, %v968_v40  ;;  %v1023_v56 = vadd.f32 %v1959_v59, %v984_v41 }
 0x106   : > { %v969_v57 = vmul.f32 %v1611_v48, %v1952_v51  ;;  %v985_v58 = vmul.f32 %v1659_v49, %v1952_v51  ;;  %1563 = vst [vmem:[%s1971_s15 + $0x8] sm:$0xff] %v1491_v50   ;;  %1571 = vst [vmem:[%s1971_s15 + $0x48] sm:$0xff] %v1531_v52  }
 0x107   : > { %v1613_v60 = vpop.f32.mrf.mxu0  ;;  %v1661_v61 = vpop.f32.mrf.mxu1  ;;  %v1039_v4 = vmax.f32 %v1007_v55, 0.0  ;;  %v1055_v5 = vmax.f32 %v1023_v56, 0.0 }
 0x108   : > { %v1008_v62 = vadd.f32 %v1959_v59, %v969_v57  ;;  %v1024_v63 = vadd.f32 %v1959_v59, %v985_v58  ;;  %v1614_v0 = vadd.f32 %v1613_v60, %v1612_v53  ;;  %v1662_v1 = vadd.f32 %v1661_v61, %v1660_v54 }
 0x109   : > { %v1615_v2 = vpop.f32.mrf.mxu0  ;;  %v1663_v3 = vpop.f32.mrf.mxu1 }
 0x10a   : > { %v1040_v6 = vmax.f32 %v1008_v62, 0.0  ;;  %v1056_v7 = vmax.f32 %v1024_v63, 0.0  ;;  %v970_v8 = vmul.f32 %v1614_v0, %v1952_v51  ;;  %v986_v9 = vmul.f32 %v1662_v1, %v1952_v51 }
 0x10b   : > { %v1616_v10 = vpop.f32.mrf.mxu0  ;;  %v1664_v11 = vpop.f32.mrf.mxu1 }
 0x10c   : > { %v1496_v12 = vpack.c.bf16 %v1040_v6, %v1039_v4  ;;  %v1536_v13 = vpack.c.bf16 %v1056_v7, %v1055_v5  ;;  %v1617_v14 = vadd.f32 %v1616_v10, %v1615_v2  ;;  %v1665_v15 = vadd.f32 %v1664_v11, %v1663_v3 }
 0x10d   : > { %v1618_v16 = vpop.f32.mrf.mxu0  ;;  %v1666_v17 = vpop.f32.mrf.mxu1  ;;  %v1009_v18 = vadd.f32 %v1959_v59, %v970_v8  ;;  %v1025_v19 = vadd.f32 %v1959_v59, %v986_v9 }
 0x10e   : > { %1564 = vst [vmem:[%s1971_s15 + $0x10] sm:$0xff] %v1496_v12   ;;  %1572 = vst [vmem:[%s1971_s15 + $0x50] sm:$0xff] %v1536_v13   ;;  %v971_v20 = vmul.f32 %v1617_v14, %v1952_v51  ;;  %v987_v21 = vmul.f32 %v1665_v15, %v1952_v51 }
 0x10f   : > { %v1619_v22 = vpop.f32.mrf.mxu0  ;;  %v1667_v23 = vpop.f32.mrf.mxu1  ;;  %v1041_v32 = vmax.f32 %v1009_v18, 0.0  ;;  %v1057_v33 = vmax.f32 %v1025_v19, 0.0 }
 0x110   : > { %v1620_v24 = vadd.f32 %v1619_v22, %v1618_v16  ;;  %v1668_v25 = vadd.f32 %v1667_v23, %v1666_v17  ;;  %v1010_v26 = vadd.f32 %v1959_v59, %v971_v20  ;;  %v1026_v27 = vadd.f32 %v1959_v59, %v987_v21 }
 0x111   : > { %v1621_v28 = vpop.f32.mrf.mxu0  ;;  %v1669_v29 = vpop.f32.mrf.mxu1 }
 0x112   : > { %v972_v30 = vmul.f32 %v1620_v24, %v1952_v51  ;;  %v988_v31 = vmul.f32 %v1668_v25, %v1952_v51  ;;  %v1042_v34 = vmax.f32 %v1010_v26, 0.0  ;;  %v1058_v35 = vmax.f32 %v1026_v27, 0.0 }
 0x113   : > { %v1622_v36 = vpop.f32.mrf.mxu0  ;;  %v1670_v37 = vpop.f32.mrf.mxu1 }
 0x114   : > { %v1623_v38 = vadd.f32 %v1622_v36, %v1621_v28  ;;  %v1671_v39 = vadd.f32 %v1670_v37, %v1669_v29  ;;  %v1501_v40 = vpack.c.bf16 %v1042_v34, %v1041_v32  ;;  %v1541_v41 = vpack.c.bf16 %v1058_v35, %v1057_v33 }
 0x115   : > { %v1624_v42 = vpop.f32.mrf.mxu0  ;;  %v1672_v43 = vpop.f32.mrf.mxu1  ;;  %v1011_v44 = vadd.f32 %v1959_v59, %v972_v30  ;;  %v1027_v45 = vadd.f32 %v1959_v59, %v988_v31 }
 0x116   : > { %v973_v46 = vmul.f32 %v1623_v38, %v1952_v51  ;;  %v989_v47 = vmul.f32 %v1671_v39, %v1952_v51  ;;  %1565 = vst [vmem:[%s1971_s15 + $0x18] sm:$0xff] %v1501_v40   ;;  %1573 = vst [vmem:[%s1971_s15 + $0x58] sm:$0xff] %v1541_v41  }
 0x117   : > { %v1625_v48 = vpop.f32.mrf.mxu0  ;;  %v1673_v49 = vpop.f32.mrf.mxu1  ;;  %v1043_v57 = vmax.f32 %v1011_v44, 0.0  ;;  %v1059_v58 = vmax.f32 %v1027_v45, 0.0 }
 0x118   : > { %v1012_v50 = vadd.f32 %v1959_v59, %v973_v46  ;;  %v1028_v52 = vadd.f32 %v1959_v59, %v989_v47  ;;  %v1626_v53 = vadd.f32 %v1625_v48, %v1624_v42  ;;  %v1674_v54 = vadd.f32 %v1673_v49, %v1672_v43 }
 0x119   : > { %v1627_v55 = vpop.f32.mrf.mxu0  ;;  %v1675_v56 = vpop.f32.mrf.mxu1 }
 0x11a   : > { %v1044_v60 = vmax.f32 %v1012_v50, 0.0  ;;  %v1060_v61 = vmax.f32 %v1028_v52, 0.0  ;;  %v974_v62 = vmul.f32 %v1626_v53, %v1952_v51  ;;  %v990_v63 = vmul.f32 %v1674_v54, %v1952_v51 }
 0x11b   : > { %v1628_v0 = vpop.f32.mrf.mxu0  ;;  %v1676_v1 = vpop.f32.mrf.mxu1 }
 0x11c   : > { %v1506_v2 = vpack.c.bf16 %v1044_v60, %v1043_v57  ;;  %v1546_v3 = vpack.c.bf16 %v1060_v61, %v1059_v58  ;;  %v1629_v4 = vadd.f32 %v1628_v0, %v1627_v55  ;;  %v1677_v5 = vadd.f32 %v1676_v1, %v1675_v56 }
 0x11d   : > { %v1630_v6 = vpop.f32.mrf.mxu0  ;;  %v1678_v7 = vpop.f32.mrf.mxu1  ;;  %v1013_v8 = vadd.f32 %v1959_v59, %v974_v62  ;;  %v1029_v9 = vadd.f32 %v1959_v59, %v990_v63 }
 0x11e   : > { %1566 = vst [vmem:[%s1971_s15 + $0x20] sm:$0xff] %v1506_v2   ;;  %1574 = vst [vmem:[%s1971_s15 + $0x60] sm:$0xff] %v1546_v3   ;;  %v975_v10 = vmul.f32 %v1629_v4, %v1952_v51  ;;  %v991_v11 = vmul.f32 %v1677_v5, %v1952_v51 }
 0x11f   : > { %v1631_v12 = vpop.f32.mrf.mxu0  ;;  %v1679_v13 = vpop.f32.mrf.mxu1  ;;  %v1045_v22 = vmax.f32 %v1013_v8, 0.0  ;;  %v1061_v23 = vmax.f32 %v1029_v9, 0.0 }
 0x120   : > { %v1632_v14 = vadd.f32 %v1631_v12, %v1630_v6  ;;  %v1680_v15 = vadd.f32 %v1679_v13, %v1678_v7  ;;  %v1014_v16 = vadd.f32 %v1959_v59, %v975_v10  ;;  %v1030_v17 = vadd.f32 %v1959_v59, %v991_v11 }
 0x121   : > { %v1633_v18 = vpop.f32.mrf.mxu0  ;;  %v1681_v19 = vpop.f32.mrf.mxu1 }
 0x122   : > { %v976_v20 = vmul.f32 %v1632_v14, %v1952_v51  ;;  %v992_v21 = vmul.f32 %v1680_v15, %v1952_v51  ;;  %v1046_v24 = vmax.f32 %v1014_v16, 0.0  ;;  %v1062_v25 = vmax.f32 %v1030_v17, 0.0 }
 0x123   : > { %v1634_v26 = vpop.f32.mrf.mxu0  ;;  %v1682_v27 = vpop.f32.mrf.mxu1 }
 0x124   : > { %v1635_v28 = vadd.f32 %v1634_v26, %v1633_v18  ;;  %v1683_v29 = vadd.f32 %v1682_v27, %v1681_v19  ;;  %v1511_v30 = vpack.c.bf16 %v1046_v24, %v1045_v22  ;;  %v1551_v31 = vpack.c.bf16 %v1062_v25, %v1061_v23 }
 0x125   : > { %v1636_v32 = vpop.f32.mrf.mxu0  ;;  %v1684_v33 = vpop.f32.mrf.mxu1  ;;  %v1015_v34 = vadd.f32 %v1959_v59, %v976_v20  ;;  %v1031_v35 = vadd.f32 %v1959_v59, %v992_v21 }
 0x126   : > { %v977_v36 = vmul.f32 %v1635_v28, %v1952_v51  ;;  %v993_v37 = vmul.f32 %v1683_v29, %v1952_v51  ;;  %1567 = vst [vmem:[%s1971_s15 + $0x28] sm:$0xff] %v1511_v30   ;;  %1575 = vst [vmem:[%s1971_s15 + $0x68] sm:$0xff] %v1551_v31  }
 0x127   : > { %v1637_v38 = vpop.f32.mrf.mxu0  ;;  %v1685_v39 = vpop.f32.mrf.mxu1  ;;  %v1047_v46 = vmax.f32 %v1015_v34, 0.0  ;;  %v1063_v47 = vmax.f32 %v1031_v35, 0.0 }
 0x128   : > { %v1016_v40 = vadd.f32 %v1959_v59, %v977_v36  ;;  %v1032_v41 = vadd.f32 %v1959_v59, %v993_v37  ;;  %v1638_v42 = vadd.f32 %v1637_v38, %v1636_v32  ;;  %v1686_v43 = vadd.f32 %v1685_v39, %v1684_v33 }
 0x129   : > { %v1639_v44 = vpop.f32.mrf.mxu0  ;;  %v1687_v45 = vpop.f32.mrf.mxu1 }
 0x12a   : > { %v1048_v48 = vmax.f32 %v1016_v40, 0.0  ;;  %v1064_v49 = vmax.f32 %v1032_v41, 0.0  ;;  %v978_v50 = vmul.f32 %v1638_v42, %v1952_v51  ;;  %v994_v52 = vmul.f32 %v1686_v43, %v1952_v51 }
 0x12b   : > { %v1640_v53 = vpop.f32.mrf.mxu0  ;;  %v1688_v54 = vpop.f32.mrf.mxu1 }
 0x12c   : > { %v1516_v55 = vpack.c.bf16 %v1048_v48, %v1047_v46  ;;  %v1556_v56 = vpack.c.bf16 %v1064_v49, %v1063_v47  ;;  %v1641_v57 = vadd.f32 %v1640_v53, %v1639_v44  ;;  %v1689_v58 = vadd.f32 %v1688_v54, %v1687_v45 }
 0x12d   : > { %v1017_v60 = vadd.f32 %v1959_v59, %v978_v50  ;;  %v1033_v61 = vadd.f32 %v1959_v59, %v994_v52 }
 0x12e   : > { %1568 = vst [vmem:[%s1971_s15 + $0x30] sm:$0xff] %v1516_v55   ;;  %1576 = vst [vmem:[%s1971_s15 + $0x70] sm:$0xff] %v1556_v56   ;;  %v979_v62 = vmul.f32 %v1641_v57, %v1952_v51  ;;  %v995_v63 = vmul.f32 %v1689_v58, %v1952_v51 }
 0x12f   : > { %v1049_v2 = vmax.f32 %v1017_v60, 0.0  ;;  %v1065_v3 = vmax.f32 %v1033_v61, 0.0 }
 0x130   : > { %v1018_v0 = vadd.f32 %v1959_v59, %v979_v62  ;;  %v1034_v1 = vadd.f32 %v1959_v59, %v995_v63 }
 0x132   : > { %v1050_v4 = vmax.f32 %v1018_v0, 0.0  ;;  %v1066_v5 = vmax.f32 %v1034_v1, 0.0 }
 0x134   : > { %v1521_v6 = vpack.c.bf16 %v1050_v4, %v1049_v2  ;;  %v1561_v7 = vpack.c.bf16 %v1066_v5, %v1065_v3 }
 0x136   : > { %1569 = vst [vmem:[%s1971_s15 + $0x38] sm:$0xff] %v1521_v6   ;;  %1577 = vst [vmem:[%s1971_s15 + $0x78] sm:$0xff] %v1561_v7  }
 0x137 PF: > { %s14_s17 = sadd.s32 1, %s1816_s17   ;;  %s2059_s15 = smov %s1812_s16 }
 0x138   : > { %p11_p5 = scmp.ge.s32.totalorder %s14_s17, 4   ;;  %s2060_s16 = smov %s2062_s18 }
 0x13a   :  { %13 = sbr.rel (!%p11_p5) target bundleno = 2 (0x2), region = 83 }

// kernel: wideresnet_forward.12
= control target key start
LH: loop header
LB: loop body
LE: loop exit
PB: predicated region body
PF: predicated region fallthrough
CT: control target
= control target key end

     0   :  { %s2717_s27 = smov 0   ;;  %s2719_s28 = smov 0   ;;  %s3167_s0 = inlined_call_operand.vmem [shape: bf16[512,256], index: 0, kind: input, shape index: {}]   ;;  %s3168_s1 = inlined_call_operand.vmem [shape: bf16[256,128], index: 1, kind: input, shape index: {}]   ;;  %s3169_s2 = inlined_call_operand.vmem [shape: f32[1,128], index: 2, kind: input, shape index: {}]   ;;  %s3170_s3 = inlined_call_operand.vmem [shape: f32[1,128], index: 3, kind: input, shape index: {}]   ;;  %s3171_s4 = inlined_call_operand.vmem [shape: f32[1,128], index: 4, kind: input, shape index: {}]   ;;  %s3172_s5 = inlined_call_operand.vmem [shape: f32[1,128], index: 5, kind: input, shape index: {}]   ;;  %s3173_s6 = inlined_call_operand.vmem [shape: bf16[512,128], index: 6, kind: input, shape index: {}]   ;;  %s3174_s7 = inlined_call_operand.vmem [shape: bf16[512,128], index: 7, kind: output, shape index: {0}]   ;;  %s3175_s8 = inlined_call_operand.vmem [shape: bf16[512,128], index: 8, kind: output, shape index: {1}]  }
   0x1   :  { %s2721_s29 = smov 0  }
   0x2 LB: > { %s38_s30 = sadd.s32 1, %s2666_s28  ;;  %p1970_p0 = scmp.ge.s32.totalorder %s2670_s29, 1  ;;  %s2670_s29 = sphi %s2721_s29, %s19_s29   ;;  %s2666_s28 = sphi %s2719_s28, %s3177_s28   ;;  %s2662_s27 = sphi %s2717_s27, %s3176_s27  }
   0x3   : > { %p40_p1 = scmp.ge.s32.totalorder %s38_s30, 2  ;;  %p361_p2 = scmp.lt.s32.totalorder %s2670_s29, 3 }
   0x5   : > { %s3179_s30 = smov (%p40_p1, %s38_s30), 0  ;;  %p362_p3 = pnand %p1970_p0, %p361_p2 }
   0x6   : > { %s1971_s11 = sshll.u32 (!%p362_p3), %s2662_s27, 5 }
   0x7   : > { %365 = sbr.rel (%p362_p3) target bundleno = 320 (0x140), region = 48  ;;  %p441_p4 = scmp.lt.s32.totalorder (!%p362_p3), %s1971_s11, 63 }
   0xc   : > { %v2584_v0 = vld [vmem:[%s3168_s1 + $0x78] sm:$0xff]   ;;  %v2586_v2 = vld [vmem:[%s3168_s1 + $0x70] sm:$0xff]   ;;  %v2588_v4 = vld [vmem:[%s3168_s1 + $0x68] sm:$0xff]   ;;  %s3181_s11 = smov (!%p441_p4, %s1971_s11), 63 }
   0xd   : > { %v2585_v1 = vld [vmem:[%s3168_s1 + $0x38] sm:$0xff]   ;;  %2432 = vmatprep.subr.bf16.mxu0 %v2584_v0  ;;  %2544 = vmatprep.subr.bf16.mxu1 %v2584_v0  ;;  %v2587_v3 = vld [vmem:[%s3168_s1 + $0x30] sm:$0xff]   ;;  %v2589_v5 = vld [vmem:[%s3168_s1 + $0x28] sm:$0xff]   ;;  %s2098_s26 = sshll.u32 %s3181_s11, 3  ;;  %s2824_s9 = sshll.u32 %s3181_s11, 2 }
   0xe   : > { %2433 = vmatpush3.bf16.msra.mxu0 %v2585_v1  ;;  %2552 = vmatpush3.bf16.msra.mxu1 %v2585_v1  ;;  %v2590_v6 = vld [vmem:[%s3168_s1 + $0x60] sm:$0xff]   ;;  %v2592_v8 = vld [vmem:[%s3168_s1 + $0x58] sm:$0xff]   ;;  %s2768_s13 = scalar_lea.vmem %s3167_s0, %s2098_s26  ;;  %v2594_v10 = vld [vmem:[%s3168_s1 + $0x50] sm:$0xff]   ;;  %s2830_s14 = scalar_lea.vmem %s3173_s6, %s2824_s9 }
   0xf   : > { %2434 = vmatprep.subr.bf16.mxu0 %v2586_v2  ;;  %2545 = vmatprep.subr.bf16.mxu1 %v2586_v2  ;;  %v2591_v7 = vld [vmem:[%s3168_s1 + $0x20] sm:$0xff]   ;;  %v2593_v9 = vld [vmem:[%s3168_s1 + $0x18] sm:$0xff]   ;;  %v2595_v13 = vld [vmem:[%s3168_s1 + $0x10] sm:$0xff]   ;;  %s2933_s23 = scalar_lea.vmem %s3174_s7, %s2824_s9  ;;  %s2958_s26 = scalar_lea.vmem %s3175_s8, %s2824_s9 }
  0x10   : > { %v2602_v11 = vld [vmem:[%s2768_s13 + $0x4] ss:$8 sps:$4 sm:$0xff]   ;;  %v2600_v18 = vld [vmem:[%s2768_s13] ss:$8 sps:$4 sm:$0xff]   ;;  %v2606_v20 = vld [vmem:[%s2768_s13 + $0x14] ss:$8 sps:$4 sm:$0xff]  }
  0x11   : > { %v2605_v12 = vld [vmem:[%s2768_s13 + $0x84] ss:$8 sps:$4 sm:$0xff]   ;;  %920 = vmatprep.mubr.bf16.mxu0 %v2602_v11  ;;  %v2603_v19 = vld [vmem:[%s2768_s13 + $0x80] ss:$8 sps:$4 sm:$0xff]   ;;  %v2608_v21 = vld [vmem:[%s2768_s13 + $0x94] ss:$8 sps:$4 sm:$0xff]  }
  0x12   : > { %2435 = vmatpush3.bf16.msra.mxu0 %v2587_v3  ;;  %2553 = vmatpush3.bf16.msra.mxu1 %v2587_v3  ;;  %v2596_v14 = vld [vmem:[%s3168_s1 + $0x48] sm:$0xff]   ;;  %v2598_v16 = vld [vmem:[%s3168_s1 + $0x40] sm:$0xff]   ;;  %v2610_v22 = vld [vmem:[%s2768_s13 + $0x10] ss:$8 sps:$4 sm:$0xff]  }
  0x13   : > { %2436 = vmatprep.subr.bf16.mxu0 %v2588_v4  ;;  %2546 = vmatprep.subr.bf16.mxu1 %v2588_v4  ;;  %v2597_v15 = vld [vmem:[%s3168_s1 + $0x8] sm:$0xff]   ;;  %v2599_v17 = vld [vmem:[%s3168_s1] sm:$0xff]   ;;  %v2611_v23 = vld [vmem:[%s2768_s13 + $0x90] ss:$8 sps:$4 sm:$0xff]  }
  0x14   : > { %984 = vmatprep.mubr.bf16.mxu1 %v2605_v12  ;;  %v2612_v24 = vld [vmem:[%s2768_s13 + $0x24] ss:$8 sps:$4 sm:$0xff]   ;;  %v2616_v26 = vld [vmem:[%s2768_s13 + $0x20] ss:$8 sps:$4 sm:$0xff]   ;;  %v2618_v28 = vld [vmem:[%s2768_s13 + $0x34] ss:$8 sps:$4 sm:$0xff]  }
  0x15   : > { %v2614_v25 = vld [vmem:[%s2768_s13 + $0xa4] ss:$8 sps:$4 sm:$0xff]   ;;  %v2617_v27 = vld [vmem:[%s2768_s13 + $0xa0] ss:$8 sps:$4 sm:$0xff]   ;;  %v2620_v29 = vld [vmem:[%s2768_s13 + $0xb4] ss:$8 sps:$4 sm:$0xff]  }
  0x16   : > { %2437 = vmatpush3.bf16.msra.mxu0 %v2589_v5  ;;  %2554 = vmatpush3.bf16.msra.mxu1 %v2589_v5  ;;  %v2622_v30 = vld [vmem:[%s2768_s13 + $0x30] ss:$8 sps:$4 sm:$0xff]   ;;  %v2624_v32 = vld [vmem:[%s2768_s13 + $0x44] ss:$8 sps:$4 sm:$0xff]   ;;  %v2628_v34 = vld [vmem:[%s2768_s13 + $0x40] ss:$8 sps:$4 sm:$0xff]  }
  0x17   : > { %2438 = vmatprep.subr.bf16.mxu0 %v2590_v6  ;;  %2547 = vmatprep.subr.bf16.mxu1 %v2590_v6  ;;  %v2623_v31 = vld [vmem:[%s2768_s13 + $0xb0] ss:$8 sps:$4 sm:$0xff]   ;;  %v2626_v33 = vld [vmem:[%s2768_s13 + $0xc4] ss:$8 sps:$4 sm:$0xff]   ;;  %v2629_v35 = vld [vmem:[%s2768_s13 + $0xc0] ss:$8 sps:$4 sm:$0xff]  }
  0x18   : > { %v2630_v36 = vld [vmem:[%s2768_s13 + $0x54] ss:$8 sps:$4 sm:$0xff]   ;;  %v2634_v38 = vld [vmem:[%s2768_s13 + $0x50] ss:$8 sps:$4 sm:$0xff]   ;;  %v2636_v40 = vld [vmem:[%s2768_s13 + $0x64] ss:$8 sps:$4 sm:$0xff]  }
  0x19   : > { %v2632_v37 = vld [vmem:[%s2768_s13 + $0xd4] ss:$8 sps:$4 sm:$0xff]   ;;  %v2635_v39 = vld [vmem:[%s2768_s13 + $0xd0] ss:$8 sps:$4 sm:$0xff]   ;;  %v2638_v41 = vld [vmem:[%s2768_s13 + $0xe4] ss:$8 sps:$4 sm:$0xff]  }
  0x1a   : > { %2439 = vmatpush3.bf16.msra.mxu0 %v2591_v7  ;;  %2555 = vmatpush3.bf16.msra.mxu1 %v2591_v7  ;;  %v2640_v42 = vld [vmem:[%s2768_s13 + $0x60] ss:$8 sps:$4 sm:$0xff]   ;;  %v2642_v44 = vld [vmem:[%s2768_s13 + $0x74] ss:$8 sps:$4 sm:$0xff]   ;;  %v2646_v46 = vld [vmem:[%s2768_s13 + $0x70] ss:$8 sps:$4 sm:$0xff]  }
  0x1b   : > { %2440 = vmatprep.subr.bf16.mxu0 %v2592_v8  ;;  %2548 = vmatprep.subr.bf16.mxu1 %v2592_v8  ;;  %v2641_v43 = vld [vmem:[%s2768_s13 + $0xe0] ss:$8 sps:$4 sm:$0xff]   ;;  %v2644_v45 = vld [vmem:[%s2768_s13 + $0xf4] ss:$8 sps:$4 sm:$0xff]   ;;  %v2647_v47 = vld [vmem:[%s2768_s13 + $0xf0] ss:$8 sps:$4 sm:$0xff]  }
  0x1c   : > { %v2833_v50 = vld [vmem:[%s2830_s14] sm:$0xff]   ;;  %v2839_v52 = vld [vmem:[%s2830_s14 + $0x8] sm:$0xff]   ;;  %v2852_v61 = vld [vmem:[%s2830_s14 + $0x10] sm:$0xff]  }
  0x1d   : > { %v2836_v51 = vld [vmem:[%s2830_s14 + $0x40] sm:$0xff]   ;;  %v2842_v53 = vld [vmem:[%s2830_s14 + $0x48] sm:$0xff]   ;;  %v2165_v58 = vunpack.c.l.bf16 %v2833_v50  ;;  %v2855_v62 = vld [vmem:[%s2830_s14 + $0x50] sm:$0xff]   ;;  %v2166_v2 = vunpack.c.h.bf16 %v2833_v50  ;;  %v2169_v4 = vunpack.c.l.bf16 %v2839_v52  ;;  %v2170_v8 = vunpack.c.h.bf16 %v2839_v52 }
  0x1e   : > { %2441 = vmatpush3.bf16.msra.mxu0 %v2593_v9  ;;  %2556 = vmatpush3.bf16.msra.mxu1 %v2593_v9  ;;  %v2847_v55 = vld [vmem:[%s3169_s2] ss:$0 sm:$0xff]  ;;  %v2197_v60 = vunpack.c.l.bf16 %v2836_v51  ;;  %v2198_v3 = vunpack.c.h.bf16 %v2836_v51  ;;  %v2201_v5 = vunpack.c.l.bf16 %v2842_v53  ;;  %v2202_v9 = vunpack.c.h.bf16 %v2842_v53  ;;  %v2874_v11 = vld [vmem:[%s2830_s14 + $0x58] sm:$0xff]  }
  0x1f   : > { %2442 = vmatprep.subr.bf16.mxu0 %v2594_v10  ;;  %2549 = vmatprep.subr.bf16.mxu1 %v2594_v10  ;;  %v2860_v63 = vld [vmem:[%s3170_s3] ss:$0 sm:$0xff]  ;;  %v2871_v10 = vld [vmem:[%s2830_s14 + $0x18] sm:$0xff]  }
  0x22   : > { %2443 = vmatpush3.bf16.msra.mxu0 %v2595_v13  ;;  %2557 = vmatpush3.bf16.msra.mxu1 %v2595_v13 }
  0x23   : > { %2444 = vmatprep.subr.bf16.mxu0 %v2596_v14  ;;  %2550 = vmatprep.subr.bf16.mxu1 %v2596_v14  ;;  %v2173_v14 = vunpack.c.l.bf16 %v2852_v61 }
  0x26   : > { %2445 = vmatpush3.bf16.msra.mxu0 %v2597_v15  ;;  %2558 = vmatpush3.bf16.msra.mxu1 %v2597_v15  ;;  %v2205_v15 = vunpack.c.l.bf16 %v2855_v62 }
  0x27   : > { %2446 = vmatprep.subr.bf16.mxu0 %v2598_v16  ;;  %2551 = vmatprep.subr.bf16.mxu1 %v2598_v16  ;;  %v2174_v16 = vunpack.c.h.bf16 %v2852_v61 }
  0x2a   : > { %2447 = vmatpush3.bf16.msra.mxu0 %v2599_v17  ;;  %2559 = vmatpush3.bf16.msra.mxu1 %v2599_v17  ;;  %v2206_v17 = vunpack.c.h.bf16 %v2855_v62 }
  0x2d   : > { %921 = vmatmul.mubr.bf16.vlgmr.msra.gmra.mxu0 %v2600_v18  ;;  %985 = vmatmul.mubr.bf16.vlgmr.msra.gmra.mxu1 %v2603_v19 }
  0x2e   : > { %928 = vmatprep.mubr.bf16.mxu0 %v2606_v20  ;;  %992 = vmatprep.mubr.bf16.mxu1 %v2608_v21 }
  0x35   : > { %929 = vmatmul.mubr.bf16.gmra.mxu0 %v2610_v22  ;;  %993 = vmatmul.mubr.bf16.gmra.mxu1 %v2611_v23  ;;  %v2883_v22 = vld [vmem:[%s2830_s14 + $0x20] sm:$0xff]  }
  0x36   : > { %936 = vmatprep.mubr.bf16.mxu0 %v2612_v24  ;;  %1000 = vmatprep.mubr.bf16.mxu1 %v2614_v25  ;;  %v2886_v23 = vld [vmem:[%s2830_s14 + $0x60] sm:$0xff]  }
  0x37   : > { %v2891_v24 = vld [vmem:[%s3171_s4] ss:$0 sm:$0xff] }
  0x3d   : > { %937 = vmatmul.mubr.bf16.gmra.mxu0 %v2616_v26  ;;  %1001 = vmatmul.mubr.bf16.gmra.mxu1 %v2617_v27  ;;  %v2177_v27 = vunpack.c.l.bf16 %v2871_v10 }
  0x3e   : > { %944 = vmatprep.mubr.bf16.mxu0 %v2618_v28  ;;  %1008 = vmatprep.mubr.bf16.mxu1 %v2620_v29  ;;  %v2209_v28 = vunpack.c.l.bf16 %v2874_v11  ;;  %v2178_v29 = vunpack.c.h.bf16 %v2871_v10 }
  0x45   : > { %945 = vmatmul.mubr.bf16.gmra.mxu0 %v2622_v30  ;;  %1009 = vmatmul.mubr.bf16.gmra.mxu1 %v2623_v31  ;;  %v2210_v30 = vunpack.c.h.bf16 %v2874_v11 }
  0x46   : > { %952 = vmatprep.mubr.bf16.mxu0 %v2624_v32  ;;  %1016 = vmatprep.mubr.bf16.mxu1 %v2626_v33 }
  0x4d   : > { %953 = vmatmul.mubr.bf16.gmra.mxu0 %v2628_v34  ;;  %1017 = vmatmul.mubr.bf16.gmra.mxu1 %v2629_v35  ;;  %v2900_v35 = vld [vmem:[%s2830_s14 + $0x28] sm:$0xff]  }
  0x4e   : > { %960 = vmatprep.mubr.bf16.mxu0 %v2630_v36  ;;  %1024 = vmatprep.mubr.bf16.mxu1 %v2632_v37  ;;  %v2903_v36 = vld [vmem:[%s2830_s14 + $0x68] sm:$0xff]   ;;  %v2908_v37 = vld [vmem:[%s3172_s5] ss:$0 sm:$0xff] }
  0x55   : > { %961 = vmatmul.mubr.bf16.gmra.mxu0 %v2634_v38  ;;  %1025 = vmatmul.mubr.bf16.gmra.mxu1 %v2635_v39 }
  0x56   : > { %968 = vmatprep.mubr.bf16.mxu0 %v2636_v40  ;;  %1032 = vmatprep.mubr.bf16.mxu1 %v2638_v41  ;;  %v2181_v40 = vunpack.c.l.bf16 %v2883_v22  ;;  %v2213_v41 = vunpack.c.l.bf16 %v2886_v23 }
  0x5d   : > { %969 = vmatmul.mubr.bf16.gmra.mxu0 %v2640_v42  ;;  %1033 = vmatmul.mubr.bf16.gmra.mxu1 %v2641_v43  ;;  %v2182_v42 = vunpack.c.h.bf16 %v2883_v22  ;;  %v2214_v43 = vunpack.c.h.bf16 %v2886_v23 }
  0x5e   : > { %976 = vmatprep.mubr.bf16.mxu0 %v2642_v44  ;;  %1040 = vmatprep.mubr.bf16.mxu1 %v2644_v45 }
  0x65   : > { %977 = vmatmul.mubr.bf16.gmra.mxu0 %v2646_v46  ;;  %1041 = vmatmul.mubr.bf16.gmra.mxu1 %v2647_v47 }
  0xed   : > { %v2448_v48 = vpop.f32.mrf.mxu0  ;;  %v2496_v49 = vpop.f32.mrf.mxu1 }
  0xef   : > { %v2449_v54 = vpop.f32.mrf.mxu0  ;;  %v2497_v56 = vpop.f32.mrf.mxu1 }
  0xf0   : > { %v2450_v57 = vadd.f32 %v2449_v54, %v2448_v48  ;;  %v2498_v59 = vadd.f32 %v2497_v56, %v2496_v49  ;;  %v2185_v54 = vunpack.c.l.bf16 %v2900_v35  ;;  %v2217_v56 = vunpack.c.l.bf16 %v2903_v36 }
  0xf1   : > { %v2451_v0 = vpop.f32.mrf.mxu0  ;;  %v2499_v1 = vpop.f32.mrf.mxu1 }
  0xf2   : > { %v1155_v6 = vmul.f32 %v2450_v57, %v2847_v55  ;;  %v1171_v7 = vmul.f32 %v2498_v59, %v2847_v55  ;;  %v2921_v57 = vld [vmem:[%s2830_s14 + $0x30] sm:$0xff]  }
  0xf3   : > { %v2452_v12 = vpop.f32.mrf.mxu0  ;;  %v2500_v13 = vpop.f32.mrf.mxu1 }
  0xf4   : > { %v1194_v18 = vadd.f32 %v2860_v63, %v1155_v6  ;;  %v1210_v19 = vadd.f32 %v2860_v63, %v1171_v7  ;;  %v2453_v20 = vadd.f32 %v2452_v12, %v2451_v0  ;;  %v2501_v21 = vadd.f32 %v2500_v13, %v2499_v1 }
  0xf5   : > { %v2454_v25 = vpop.f32.mrf.mxu0  ;;  %v2502_v26 = vpop.f32.mrf.mxu1  ;;  %v2186_v1 = vunpack.c.h.bf16 %v2900_v35 }
  0xf6   : > { %v1290_v31 = vadd.f32 %v2165_v58, %v1194_v18  ;;  %v1306_v32 = vadd.f32 %v2197_v60, %v1210_v19  ;;  %v1156_v33 = vmul.f32 %v2453_v20, %v2847_v55  ;;  %v1172_v34 = vmul.f32 %v2501_v21, %v2847_v55  ;;  %v2924_v58 = vld [vmem:[%s2830_s14 + $0x70] sm:$0xff]  }
  0xf7   : > { %v2455_v38 = vpop.f32.mrf.mxu0  ;;  %v2503_v39 = vpop.f32.mrf.mxu1  ;;  %v2218_v19 = vunpack.c.h.bf16 %v2903_v36  ;;  %v2189_v20 = vunpack.c.l.bf16 %v2921_v57  ;;  %v2221_v21 = vunpack.c.l.bf16 %v2924_v58 }
  0xf8   : > { %v1489_v44 = vmul.f32 %v2891_v24, %v1290_v31  ;;  %v1505_v45 = vmul.f32 %v2891_v24, %v1306_v32  ;;  %v1195_v46 = vadd.f32 %v2860_v63, %v1156_v33  ;;  %v1211_v47 = vadd.f32 %v2860_v63, %v1172_v34 }
  0xf9   : > { %v2456_v48 = vadd.f32 %v2455_v38, %v2454_v25  ;;  %v2504_v49 = vadd.f32 %v2503_v39, %v2502_v26  ;;  %v2457_v50 = vpop.f32.mrf.mxu0  ;;  %v2505_v51 = vpop.f32.mrf.mxu1 }
  0xfa   : > { %v1528_v59 = vadd.f32 %v2908_v37, %v1489_v44  ;;  %v1291_v60 = vadd.f32 %v2166_v2, %v1195_v46  ;;  %v1307_v0 = vadd.f32 %v2198_v3, %v1211_v47  ;;  %v1544_v6 = vadd.f32 %v2908_v37, %v1505_v45 }
  0xfb   : > { %v1157_v7 = vmul.f32 %v2456_v48, %v2847_v55  ;;  %v1173_v12 = vmul.f32 %v2504_v49, %v2847_v55  ;;  %v2458_v13 = vpop.f32.mrf.mxu0  ;;  %v2506_v18 = vpop.f32.mrf.mxu1 }
  0xfc   : > { %v2230_v2 = vpack.c.bf16 %v1291_v60, %v1290_v31  ;;  %v1490_v3 = vmul.f32 %v2891_v24, %v1291_v60  ;;  %v2270_v25 = vpack.c.bf16 %v1307_v0, %v1306_v32  ;;  %v1506_v26 = vmul.f32 %v2891_v24, %v1307_v0 }
  0xfd   : > { %v1196_v33 = vadd.f32 %v2860_v63, %v1157_v7  ;;  %v1212_v34 = vadd.f32 %v2860_v63, %v1173_v12  ;;  %v2460_v38 = vpop.f32.mrf.mxu0  ;;  %v2508_v39 = vpop.f32.mrf.mxu1  ;;  %v1560_v44 = vmax.f32 %v1528_v59, 0.0  ;;  %v2459_v45 = vadd.f32 %v2458_v13, %v2457_v50 }
  0xfe   : > { %2231 = vst [vmem:[%s2933_s23] sm:$0xff] %v2230_v2   ;;  %v1529_v31 = vadd.f32 %v2908_v37, %v1490_v3  ;;  %v2507_v46 = vadd.f32 %v2506_v18, %v2505_v51  ;;  %v1576_v47 = vmax.f32 %v1544_v6, 0.0  ;;  %2409 = vst [vmem:[%s2933_s23 + $0x40] sm:$0xff] %v2270_v25   ;;  %v1545_v48 = vadd.f32 %v2908_v37, %v1506_v26 }
  0xff   : > { %v1292_v32 = vadd.f32 %v2169_v4, %v1196_v33  ;;  %v1308_v49 = vadd.f32 %v2201_v5, %v1212_v34  ;;  %v2461_v60 = vpop.f32.mrf.mxu0  ;;  %v2509_v0 = vpop.f32.mrf.mxu1  ;;  %v1158_v59 = vmul.f32 %v2459_v45, %v2847_v55 }
 0x100   : > { %v1561_v7 = vmax.f32 %v1529_v31, 0.0  ;;  %v1174_v12 = vmul.f32 %v2507_v46, %v2847_v55  ;;  %v2462_v2 = vadd.f32 %v2461_v60, %v2460_v38  ;;  %v1577_v50 = vmax.f32 %v1545_v48, 0.0 }
 0x101   : > { %v1491_v4 = vmul.f32 %v2891_v24, %v1292_v32  ;;  %v1507_v51 = vmul.f32 %v2891_v24, %v1308_v49  ;;  %v2510_v5 = vadd.f32 %v2509_v0, %v2508_v39  ;;  %v2463_v6 = vpop.f32.mrf.mxu0  ;;  %v2511_v13 = vpop.f32.mrf.mxu1  ;;  %v1197_v3 = vadd.f32 %v2860_v63, %v1158_v59 }
 0x102   : > { %v2310_v18 = vpack.c.bf16 %v1561_v7, %v1560_v44  ;;  %v1213_v25 = vadd.f32 %v2860_v63, %v1174_v12  ;;  %v1159_v26 = vmul.f32 %v2462_v2, %v2847_v55  ;;  %v2350_v33 = vpack.c.bf16 %v1577_v50, %v1576_v47 }
 0x103   : > { %v1530_v34 = vadd.f32 %v2908_v37, %v1491_v4  ;;  %v1546_v38 = vadd.f32 %v2908_v37, %v1507_v51  ;;  %v1175_v31 = vmul.f32 %v2510_v5, %v2847_v55  ;;  %v2464_v45 = vpop.f32.mrf.mxu0  ;;  %v2512_v46 = vpop.f32.mrf.mxu1  ;;  %v1293_v39 = vadd.f32 %v2170_v8, %v1197_v3 }
 0x104   : > { %2311 = vst [vmem:[%s2958_s26] sm:$0xff] %v2310_v18   ;;  %v1309_v44 = vadd.f32 %v2202_v9, %v1213_v25  ;;  %v1198_v48 = vadd.f32 %v2860_v63, %v1159_v26  ;;  %v2465_v60 = vadd.f32 %v2464_v45, %v2463_v6  ;;  %2424 = vst [vmem:[%s2958_s26 + $0x40] sm:$0xff] %v2350_v33  }
 0x105   : > { %v1562_v47 = vmax.f32 %v1530_v34, 0.0  ;;  %v1578_v0 = vmax.f32 %v1546_v38, 0.0  ;;  %v1214_v7 = vadd.f32 %v2860_v63, %v1175_v31  ;;  %v2513_v59 = vadd.f32 %v2512_v46, %v2511_v13  ;;  %v2466_v12 = vpop.f32.mrf.mxu0  ;;  %v2514_v2 = vpop.f32.mrf.mxu1 }
 0x106   : > { %v2235_v50 = vpack.c.bf16 %v1293_v39, %v1292_v32  ;;  %v1492_v52 = vmul.f32 %v2891_v24, %v1293_v39  ;;  %v2275_v8 = vpack.c.bf16 %v1309_v44, %v1308_v49  ;;  %v1508_v53 = vmul.f32 %v2891_v24, %v1309_v44 }
 0x107   : > { %v1294_v9 = vadd.f32 %v2173_v14, %v1198_v48  ;;  %v1310_v4 = vadd.f32 %v2205_v15, %v1214_v7  ;;  %v1160_v51 = vmul.f32 %v2465_v60, %v2847_v55  ;;  %v1176_v5 = vmul.f32 %v2513_v59, %v2847_v55  ;;  %v2467_v6 = vpop.f32.mrf.mxu0  ;;  %v2515_v13 = vpop.f32.mrf.mxu1 }
 0x108   : > { %2402 = vst [vmem:[%s2933_s23 + $0x8] sm:$0xff] %v2235_v50   ;;  %v1531_v32 = vadd.f32 %v2908_v37, %v1492_v52  ;;  %2410 = vst [vmem:[%s2933_s23 + $0x48] sm:$0xff] %v2275_v8   ;;  %v1547_v49 = vadd.f32 %v2908_v37, %v1508_v53  ;;  %v2468_v18 = vadd.f32 %v2467_v6, %v2466_v12 }
 0x109   : > { %v2516_v3 = vadd.f32 %v2515_v13, %v2514_v2  ;;  %v1493_v25 = vmul.f32 %v2891_v24, %v1294_v9  ;;  %v1509_v14 = vmul.f32 %v2891_v24, %v1310_v4  ;;  %v1199_v15 = vadd.f32 %v2860_v63, %v1160_v51  ;;  %v2469_v33 = vpop.f32.mrf.mxu0  ;;  %v2517_v34 = vpop.f32.mrf.mxu1 }
 0x10a   : > { %v1215_v26 = vadd.f32 %v2860_v63, %v1176_v5  ;;  %v1563_v38 = vmax.f32 %v1531_v32, 0.0  ;;  %v1579_v31 = vmax.f32 %v1547_v49, 0.0  ;;  %v1161_v45 = vmul.f32 %v2468_v18, %v2847_v55 }
 0x10b   : > { %v1177_v46 = vmul.f32 %v2516_v3, %v2847_v55  ;;  %v1532_v39 = vadd.f32 %v2908_v37, %v1493_v25  ;;  %v1548_v44 = vadd.f32 %v2908_v37, %v1509_v14  ;;  %v1295_v48 = vadd.f32 %v2174_v16, %v1199_v15  ;;  %v2470_v7 = vpop.f32.mrf.mxu0  ;;  %v2518_v59 = vpop.f32.mrf.mxu1 }
 0x10c   : > { %v1311_v60 = vadd.f32 %v2206_v17, %v1215_v26  ;;  %v2315_v12 = vpack.c.bf16 %v1563_v38, %v1562_v47  ;;  %v2355_v2 = vpack.c.bf16 %v1579_v31, %v1578_v0  ;;  %v1200_v50 = vadd.f32 %v2860_v63, %v1161_v45 }
 0x10d   : > { %v1216_v52 = vadd.f32 %v2860_v63, %v1177_v46  ;;  %v1564_v8 = vmax.f32 %v1532_v39, 0.0  ;;  %v2240_v53 = vpack.c.bf16 %v1295_v48, %v1294_v9  ;;  %v1494_v51 = vmul.f32 %v2891_v24, %v1295_v48  ;;  %v2472_v5 = vpop.f32.mrf.mxu0  ;;  %v2520_v61 = vpop.f32.mrf.mxu1 }
 0x10e   : > { %v2190_v16 = vunpack.c.h.bf16 %v2921_v57  ;;  %2417 = vst [vmem:[%s2958_s26 + $0x8] sm:$0xff] %v2315_v12   ;;  %2425 = vst [vmem:[%s2958_s26 + $0x48] sm:$0xff] %v2355_v2   ;;  %v2280_v62 = vpack.c.bf16 %v1311_v60, %v1310_v4  ;;  %v1510_v17 = vmul.f32 %v2891_v24, %v1311_v60  ;;  %v1296_v47 = vadd.f32 %v2177_v27, %v1200_v50 }
 0x10f   : > { %v1312_v0 = vadd.f32 %v2209_v28, %v1216_v52  ;;  %v1580_v6 = vmax.f32 %v1548_v44, 0.0  ;;  %2403 = vst [vmem:[%s2933_s23 + $0x10] sm:$0xff] %v2240_v53   ;;  %v1533_v9 = vadd.f32 %v2908_v37, %v1494_v51  ;;  %v2471_v13 = vadd.f32 %v2470_v7, %v2469_v33  ;;  %v2473_v49 = vpop.f32.mrf.mxu0  ;;  %v2521_v18 = vpop.f32.mrf.mxu1  ;;  %v3020_v33 = vld [vmem:[%s2830_s14 + $0x38] sm:$0xff]  }
 0x110   : > { %v2519_v32 = vadd.f32 %v2518_v59, %v2517_v34  ;;  %2411 = vst [vmem:[%s2933_s23 + $0x50] sm:$0xff] %v2280_v62   ;;  %v1549_v4 = vadd.f32 %v2908_v37, %v1510_v17  ;;  %v1495_v3 = vmul.f32 %v2891_v24, %v1296_v47  ;;  %v2474_v27 = vadd.f32 %v2473_v49, %v2472_v5 }
 0x111   : > { %v1511_v25 = vmul.f32 %v2891_v24, %v1312_v0  ;;  %v1565_v14 = vmax.f32 %v1533_v9, 0.0  ;;  %v1162_v28 = vmul.f32 %v2471_v13, %v2847_v55  ;;  %v2522_v26 = vadd.f32 %v2521_v18, %v2520_v61  ;;  %v2475_v38 = vpop.f32.mrf.mxu0  ;;  %v2523_v31 = vpop.f32.mrf.mxu1 }
 0x112   : > { %v1178_v15 = vmul.f32 %v2519_v32, %v2847_v55  ;;  %v1581_v34 = vmax.f32 %v1549_v4, 0.0  ;;  %v1534_v45 = vadd.f32 %v2908_v37, %v1495_v3  ;;  %v1163_v39 = vmul.f32 %v2474_v27, %v2847_v55 }
 0x113   : > { %v1550_v46 = vadd.f32 %v2908_v37, %v1511_v25  ;;  %v2320_v44 = vpack.c.bf16 %v1565_v14, %v1564_v8  ;;  %v1201_v48 = vadd.f32 %v2860_v63, %v1162_v28  ;;  %v1179_v7 = vmul.f32 %v2522_v26, %v2847_v55  ;;  %v2476_v59 = vpop.f32.mrf.mxu0  ;;  %v2524_v12 = vpop.f32.mrf.mxu1  ;;  %v3052_v26 = vld [vmem:[%s2830_s14 + $0x78] sm:$0xff]  }
 0x114   : > { %v1217_v60 = vadd.f32 %v2860_v63, %v1178_v15  ;;  %v2360_v2 = vpack.c.bf16 %v1581_v34, %v1580_v6  ;;  %v1202_v50 = vadd.f32 %v2860_v63, %v1163_v39  ;;  %v2222_v52 = vunpack.c.h.bf16 %v2924_v58 }
 0x115   : > { %v2193_v53 = vunpack.c.l.bf16 %v3020_v33  ;;  %2418 = vst [vmem:[%s2958_s26 + $0x10] sm:$0xff] %v2320_v44   ;;  %v1297_v8 = vadd.f32 %v2178_v29, %v1201_v48  ;;  %v1218_v5 = vadd.f32 %v2860_v63, %v1179_v7  ;;  %v2477_v61 = vadd.f32 %v2476_v59, %v2475_v38  ;;  %v2478_v62 = vpop.f32.mrf.mxu0  ;;  %v2526_v17 = vpop.f32.mrf.mxu1 }
 0x116   : > { %v1313_v51 = vadd.f32 %v2210_v30, %v1217_v60  ;;  %2426 = vst [vmem:[%s2958_s26 + $0x50] sm:$0xff] %v2360_v2   ;;  %v1566_v6 = vmax.f32 %v1534_v45, 0.0  ;;  %v1582_v9 = vmax.f32 %v1550_v46, 0.0  ;;  %v1298_v13 = vadd.f32 %v2181_v40, %v1202_v50 }
 0x117   : > { %v2525_v32 = vadd.f32 %v2524_v12, %v2523_v31  ;;  %v2245_v49 = vpack.c.bf16 %v1297_v8, %v1296_v47  ;;  %v1496_v10 = vmul.f32 %v2891_v24, %v1297_v8  ;;  %v2479_v30 = vpop.f32.mrf.mxu0  ;;  %v2527_v18 = vpop.f32.mrf.mxu1  ;;  %v1314_v3 = vadd.f32 %v2213_v41, %v1218_v5 }
 0x118   : > { %v2285_v29 = vpack.c.bf16 %v1313_v51, %v1312_v0  ;;  %v1512_v11 = vmul.f32 %v2891_v24, %v1313_v51  ;;  %v1497_v4 = vmul.f32 %v2891_v24, %v1298_v13  ;;  %v1164_v25 = vmul.f32 %v2477_v61, %v2847_v55 }
 0x119   : > { %v1180_v27 = vmul.f32 %v2525_v32, %v2847_v55  ;;  %2404 = vst [vmem:[%s2933_s23 + $0x18] sm:$0xff] %v2245_v49   ;;  %v1535_v40 = vadd.f32 %v2908_v37, %v1496_v10  ;;  %v2480_v0 = vadd.f32 %v2479_v30, %v2478_v62  ;;  %v2528_v14 = vadd.f32 %v2527_v18, %v2526_v17  ;;  %v2481_v28 = vpop.f32.mrf.mxu0  ;;  %v2529_v15 = vpop.f32.mrf.mxu1 }
 0x11a   : > { %2412 = vst [vmem:[%s2933_s23 + $0x58] sm:$0xff] %v2285_v29   ;;  %v1551_v47 = vadd.f32 %v2908_v37, %v1512_v11  ;;  %v1536_v38 = vadd.f32 %v2908_v37, %v1497_v4  ;;  %v1513_v41 = vmul.f32 %v2891_v24, %v1314_v3  ;;  %v1203_v31 = vadd.f32 %v2860_v63, %v1164_v25 }
 0x11b   : > { %v1219_v34 = vadd.f32 %v2860_v63, %v1180_v27  ;;  %v1567_v45 = vmax.f32 %v1535_v40, 0.0  ;;  %v1165_v39 = vmul.f32 %v2480_v0, %v2847_v55  ;;  %v1181_v44 = vmul.f32 %v2528_v14, %v2847_v55  ;;  %v2482_v48 = vpop.f32.mrf.mxu0  ;;  %v2530_v60 = vpop.f32.mrf.mxu1 }
 0x11c   : > { %v1583_v46 = vmax.f32 %v1551_v47, 0.0  ;;  %v1568_v7 = vmax.f32 %v1536_v38, 0.0  ;;  %v1299_v59 = vadd.f32 %v2182_v42, %v1203_v31  ;;  %v2225_v2 = vunpack.c.l.bf16 %v3052_v26 }
 0x11d   : > { %v1315_v12 = vadd.f32 %v2214_v43, %v1219_v34  ;;  %v2325_v50 = vpack.c.bf16 %v1567_v45, %v1566_v6  ;;  %v1204_v51 = vadd.f32 %v2860_v63, %v1165_v39  ;;  %v1220_v5 = vadd.f32 %v2860_v63, %v1181_v44  ;;  %v2484_v61 = vpop.f32.mrf.mxu0  ;;  %v2532_v62 = vpop.f32.mrf.mxu1 }
 0x11e   : > { %v2365_v8 = vpack.c.bf16 %v1583_v46, %v1582_v9  ;;  %v1552_v17 = vadd.f32 %v2908_v37, %v1513_v41  ;;  %v2250_v32 = vpack.c.bf16 %v1299_v59, %v1298_v13  ;;  %v1498_v22 = vmul.f32 %v2891_v24, %v1299_v59 }
 0x11f   : > { %v2290_v42 = vpack.c.bf16 %v1315_v12, %v1314_v3  ;;  %2419 = vst [vmem:[%s2958_s26 + $0x18] sm:$0xff] %v2325_v50   ;;  %v1514_v23 = vmul.f32 %v2891_v24, %v1315_v12  ;;  %v1300_v43 = vadd.f32 %v2185_v54, %v1204_v51  ;;  %v1316_v6 = vadd.f32 %v2217_v56, %v1220_v5  ;;  %v2485_v49 = vpop.f32.mrf.mxu0  ;;  %v2533_v10 = vpop.f32.mrf.mxu1 }
 0x120   : > { %2427 = vst [vmem:[%s2958_s26 + $0x58] sm:$0xff] %v2365_v8   ;;  %v2483_v9 = vadd.f32 %v2482_v48, %v2481_v28  ;;  %2405 = vst [vmem:[%s2933_s23 + $0x20] sm:$0xff] %v2250_v32   ;;  %v1537_v29 = vadd.f32 %v2908_v37, %v1498_v22  ;;  %v2531_v13 = vadd.f32 %v2530_v60, %v2529_v15  ;;  %v1584_v14 = vmax.f32 %v1552_v17, 0.0 }
 0x121   : > { %2413 = vst [vmem:[%s2933_s23 + $0x60] sm:$0xff] %v2290_v42   ;;  %v2486_v11 = vadd.f32 %v2485_v49, %v2484_v61  ;;  %v2534_v30 = vadd.f32 %v2533_v10, %v2532_v62  ;;  %v1553_v18 = vadd.f32 %v2908_v37, %v1514_v23  ;;  %v1499_v4 = vmul.f32 %v2891_v24, %v1300_v43  ;;  %v2487_v25 = vpop.f32.mrf.mxu0  ;;  %v2535_v56 = vpop.f32.mrf.mxu1 }
 0x122   : > { %v1515_v3 = vmul.f32 %v2891_v24, %v1316_v6  ;;  %v1166_v54 = vmul.f32 %v2483_v9, %v2847_v55  ;;  %v1569_v27 = vmax.f32 %v1537_v29, 0.0  ;;  %v1182_v40 = vmul.f32 %v2531_v13, %v2847_v55 }
 0x123   : > { %v1167_v47 = vmul.f32 %v2486_v11, %v2847_v55  ;;  %v1183_v0 = vmul.f32 %v2534_v30, %v2847_v55  ;;  %v1585_v28 = vmax.f32 %v1553_v18, 0.0  ;;  %v2488_v38 = vpop.f32.mrf.mxu0  ;;  %v2536_v41 = vpop.f32.mrf.mxu1  ;;  %v2194_v31 = vunpack.c.h.bf16 %v3020_v33 }
 0x124   : > { %v1205_v15 = vadd.f32 %v2860_v63, %v1166_v54  ;;  %v2330_v34 = vpack.c.bf16 %v1569_v27, %v1568_v7  ;;  %v1221_v45 = vadd.f32 %v2860_v63, %v1182_v40  ;;  %v1538_v48 = vadd.f32 %v2908_v37, %v1499_v4 }
 0x125   : > { %v1206_v46 = vadd.f32 %v2860_v63, %v1167_v47  ;;  %v1222_v39 = vadd.f32 %v2860_v63, %v1183_v0  ;;  %v2370_v44 = vpack.c.bf16 %v1585_v28, %v1584_v14  ;;  %v1554_v60 = vadd.f32 %v2908_v37, %v1515_v3  ;;  %v2490_v12 = vpop.f32.mrf.mxu0  ;;  %v2538_v50 = vpop.f32.mrf.mxu1 }
 0x126   : > { %v1301_v59 = vadd.f32 %v2186_v1, %v1205_v15  ;;  %2420 = vst [vmem:[%s2958_s26 + $0x20] sm:$0xff] %v2330_v34   ;;  %v1317_v7 = vadd.f32 %v2218_v19, %v1221_v45  ;;  %v2489_v5 = vadd.f32 %v2488_v38, %v2487_v25  ;;  %v2537_v35 = vadd.f32 %v2536_v41, %v2535_v56 }
 0x127   : > { %v1302_v8 = vadd.f32 %v2189_v20, %v1206_v46  ;;  %v1318_v51 = vadd.f32 %v2221_v21, %v1222_v39  ;;  %2428 = vst [vmem:[%s2958_s26 + $0x60] sm:$0xff] %v2370_v44   ;;  %v2491_v1 = vpop.f32.mrf.mxu0  ;;  %v2539_v17 = vpop.f32.mrf.mxu1  ;;  %v2226_v32 = vunpack.c.h.bf16 %v3052_v26  ;;  %v1570_v10 = vmax.f32 %v1538_v48, 0.0 }
 0x128   : > { %v2255_v61 = vpack.c.bf16 %v1301_v59, %v1300_v43  ;;  %v1500_v62 = vmul.f32 %v2891_v24, %v1301_v59  ;;  %v2295_v36 = vpack.c.bf16 %v1317_v7, %v1316_v6  ;;  %v1516_v19 = vmul.f32 %v2891_v24, %v1317_v7 }
 0x129   : > { %v1501_v22 = vmul.f32 %v2891_v24, %v1302_v8  ;;  %v1517_v20 = vmul.f32 %v2891_v24, %v1318_v51  ;;  %v1168_v42 = vmul.f32 %v2489_v5, %v2847_v55  ;;  %v1184_v23 = vmul.f32 %v2537_v35, %v2847_v55  ;;  %v2493_v9 = vpop.f32.mrf.mxu0  ;;  %v2541_v49 = vpop.f32.mrf.mxu1 }
 0x12a   : > { %2406 = vst [vmem:[%s2933_s23 + $0x28] sm:$0xff] %v2255_v61   ;;  %v1539_v21 = vadd.f32 %v2908_v37, %v1500_v62  ;;  %v2492_v43 = vadd.f32 %v2491_v1, %v2490_v12  ;;  %v1586_v29 = vmax.f32 %v1554_v60, 0.0  ;;  %2414 = vst [vmem:[%s2933_s23 + $0x68] sm:$0xff] %v2295_v36   ;;  %v1555_v6 = vadd.f32 %v2908_v37, %v1516_v19 }
 0x12b   : > { %v2540_v13 = vadd.f32 %v2539_v17, %v2538_v50  ;;  %v1207_v30 = vadd.f32 %v2860_v63, %v1168_v42  ;;  %v1223_v18 = vadd.f32 %v2860_v63, %v1184_v23  ;;  %v2494_v3 = vpop.f32.mrf.mxu0  ;;  %v2542_v54 = vpop.f32.mrf.mxu1  ;;  %v1540_v56 = vadd.f32 %v2908_v37, %v1501_v22 }
 0x12c   : > { %v1571_v11 = vmax.f32 %v1539_v21, 0.0  ;;  %v1169_v4 = vmul.f32 %v2492_v43, %v2847_v55  ;;  %v1587_v25 = vmax.f32 %v1555_v6, 0.0  ;;  %v1556_v27 = vadd.f32 %v2908_v37, %v1517_v20 }
 0x12d   : > { %v1185_v40 = vmul.f32 %v2540_v13, %v2847_v55  ;;  %v1303_v0 = vadd.f32 %v2190_v16, %v1207_v30  ;;  %v1319_v14 = vadd.f32 %v2222_v52, %v1223_v18  ;;  %v2495_v41 = vadd.f32 %v2494_v3, %v2493_v9 }
 0x12e   : > { %v2335_v47 = vpack.c.bf16 %v1571_v11, %v1570_v10  ;;  %v1208_v28 = vadd.f32 %v2860_v63, %v1169_v4  ;;  %v2375_v15 = vpack.c.bf16 %v1587_v25, %v1586_v29  ;;  %v2543_v34 = vadd.f32 %v2542_v54, %v2541_v49 }
 0x12f   : > { %v1224_v38 = vadd.f32 %v2860_v63, %v1185_v40  ;;  %v2260_v45 = vpack.c.bf16 %v1303_v0, %v1302_v8  ;;  %v1502_v46 = vmul.f32 %v2891_v24, %v1303_v0  ;;  %v2300_v39 = vpack.c.bf16 %v1319_v14, %v1318_v51 }
 0x130   : > { %2421 = vst [vmem:[%s2958_s26 + $0x28] sm:$0xff] %v2335_v47   ;;  %v1518_v57 = vmul.f32 %v2891_v24, %v1319_v14  ;;  %2429 = vst [vmem:[%s2958_s26 + $0x68] sm:$0xff] %v2375_v15   ;;  %v1304_v58 = vadd.f32 %v2193_v53, %v1208_v28  ;;  %v1170_v52 = vmul.f32 %v2495_v41, %v2847_v55  ;;  %v1572_v59 = vmax.f32 %v1540_v56, 0.0 }
 0x131   : > { %v1320_v16 = vadd.f32 %v2225_v2, %v1224_v38  ;;  %v1186_v44 = vmul.f32 %v2543_v34, %v2847_v55  ;;  %2407 = vst [vmem:[%s2933_s23 + $0x30] sm:$0xff] %v2260_v45   ;;  %v1541_v48 = vadd.f32 %v2908_v37, %v1502_v46  ;;  %2415 = vst [vmem:[%s2933_s23 + $0x70] sm:$0xff] %v2300_v39   ;;  %v1588_v2 = vmax.f32 %v1556_v27, 0.0 }
 0x132   : > { %v1557_v60 = vadd.f32 %v2908_v37, %v1518_v57  ;;  %v1503_v12 = vmul.f32 %v2891_v24, %v1304_v58  ;;  %v1209_v53 = vadd.f32 %v2860_v63, %v1170_v52 }
 0x133   : > { %v1225_v26 = vadd.f32 %v2860_v63, %v1186_v44  ;;  %v1573_v50 = vmax.f32 %v1541_v48, 0.0  ;;  %v1519_v55 = vmul.f32 %v2891_v24, %v1320_v16 }
 0x134   : > { %v1589_v7 = vmax.f32 %v1557_v60, 0.0  ;;  %v1305_v8 = vadd.f32 %v2194_v31, %v1209_v53  ;;  %v1542_v62 = vadd.f32 %v2908_v37, %v1503_v12 }
 0x135   : > { %v1321_v51 = vadd.f32 %v2226_v32, %v1225_v26  ;;  %v2340_v5 = vpack.c.bf16 %v1573_v50, %v1572_v59  ;;  %v1558_v63 = vadd.f32 %v2908_v37, %v1519_v55 }
 0x136   : > { %v2380_v61 = vpack.c.bf16 %v1589_v7, %v1588_v2  ;;  %v2265_v35 = vpack.c.bf16 %v1305_v8, %v1304_v58  ;;  %v1504_v1 = vmul.f32 %v2891_v24, %v1305_v8  ;;  %v1574_v32 = vmax.f32 %v1542_v62, 0.0 }
 0x137   : > { %2422 = vst [vmem:[%s2958_s26 + $0x30] sm:$0xff] %v2340_v5   ;;  %v2305_v17 = vpack.c.bf16 %v1321_v51, %v1320_v16  ;;  %v1520_v36 = vmul.f32 %v2891_v24, %v1321_v51  ;;  %v1590_v22 = vmax.f32 %v1558_v63, 0.0 }
 0x138   : > { %2430 = vst [vmem:[%s2958_s26 + $0x70] sm:$0xff] %v2380_v61   ;;  %2408 = vst [vmem:[%s2933_s23 + $0x38] sm:$0xff] %v2265_v35   ;;  %v1543_v33 = vadd.f32 %v2908_v37, %v1504_v1 }
 0x139   : > { %2416 = vst [vmem:[%s2933_s23 + $0x78] sm:$0xff] %v2305_v17   ;;  %v1559_v31 = vadd.f32 %v2908_v37, %v1520_v36 }
 0x13a   : > { %v1575_v19 = vmax.f32 %v1543_v33, 0.0 }
 0x13b   : > { %v1591_v20 = vmax.f32 %v1559_v31, 0.0 }
 0x13c   : > { %v2345_v21 = vpack.c.bf16 %v1575_v19, %v1574_v32 }
 0x13d   : > { %v2385_v42 = vpack.c.bf16 %v1591_v20, %v1590_v22 }
 0x13e   : > { %2423 = vst [vmem:[%s2958_s26 + $0x38] sm:$0xff] %v2345_v21  }
 0x13f   : > { %2431 = vst [vmem:[%s2958_s26 + $0x78] sm:$0xff] %v2385_v42  }
 0x140 PF: > { %s19_s29 = sadd.s32 1, %s2670_s29   ;;  %s3176_s27 = smov %s2666_s28 }
 0x141   : > { %p16_p5 = scmp.ge.s32.totalorder %s19_s29, 4   ;;  %s3177_s28 = smov %s3179_s30 }
 0x143   :  { %18 = sbr.rel (!%p16_p5) target bundleno = 2 (0x2), region = 116 }

// kernel: wideresnet_forward.13
= control target key start
LH: loop header
LB: loop body
LE: loop exit
PB: predicated region body
PF: predicated region fallthrough
CT: control target
= control target key end

     0   :  { %s992_s1 = inlined_call_operand.vmem [shape: bf16[256,128], index: 1, kind: input, shape index: {}]   ;;  %s993_s0 = inlined_call_operand.vmem [shape: bf16[128,256], index: 0, kind: input, shape index: {}]   ;;  %s994_s2 = inlined_call_operand.vmem [shape: f32[1,128], index: 2, kind: input, shape index: {}]   ;;  %s995_s3 = inlined_call_operand.vmem [shape: f32[1,128], index: 3, kind: input, shape index: {}]   ;;  %s996_s4 = inlined_call_operand.vmem [shape: bf16[128,128], index: 4, kind: output, shape index: {}]  }
   0x1   :  { %v765_v0 = vld [vmem:[%s992_s1 + $0x78] sm:$0xff]   ;;  %v767_v2 = vld [vmem:[%s992_s1 + $0x70] sm:$0xff]   ;;  %v769_v4 = vld [vmem:[%s992_s1 + $0x68] sm:$0xff]  }
   0x2   :  { %v766_v1 = vld [vmem:[%s992_s1 + $0x38] sm:$0xff]   ;;  %685 = vmatprep.subr.bf16.mxu0 %v765_v0  ;;  %749 = vmatprep.subr.bf16.mxu1 %v765_v0  ;;  %v768_v3 = vld [vmem:[%s992_s1 + $0x30] sm:$0xff]   ;;  %v770_v5 = vld [vmem:[%s992_s1 + $0x28] sm:$0xff]  }
   0x3   :  { %686 = vmatpush3.bf16.msra.mxu0 %v766_v1  ;;  %757 = vmatpush3.bf16.msra.mxu1 %v766_v1  ;;  %v771_v6 = vld [vmem:[%s992_s1 + $0x60] sm:$0xff]   ;;  %v773_v8 = vld [vmem:[%s992_s1 + $0x58] sm:$0xff]   ;;  %v775_v10 = vld [vmem:[%s992_s1 + $0x50] sm:$0xff]  }
   0x4   :  { %687 = vmatprep.subr.bf16.mxu0 %v767_v2  ;;  %750 = vmatprep.subr.bf16.mxu1 %v767_v2  ;;  %v772_v7 = vld [vmem:[%s992_s1 + $0x20] sm:$0xff]   ;;  %v774_v9 = vld [vmem:[%s992_s1 + $0x18] sm:$0xff]   ;;  %v776_v13 = vld [vmem:[%s992_s1 + $0x10] sm:$0xff]  }
   0x5   :  { %v783_v11 = vld [vmem:[%s993_s0 + $0x4] ss:$8 sps:$4 sm:$0xff]   ;;  %v781_v18 = vld [vmem:[%s993_s0] ss:$8 sps:$4 sm:$0xff]   ;;  %v787_v20 = vld [vmem:[%s993_s0 + $0x14] ss:$8 sps:$4 sm:$0xff]  }
   0x6   :  { %v786_v12 = vld [vmem:[%s993_s0 + $0x44] ss:$8 sps:$4 sm:$0xff]   ;;  %310 = vmatprep.mubr.bf16.mxu0 %v783_v11  ;;  %v784_v19 = vld [vmem:[%s993_s0 + $0x40] ss:$8 sps:$4 sm:$0xff]   ;;  %v789_v21 = vld [vmem:[%s993_s0 + $0x54] ss:$8 sps:$4 sm:$0xff]  }
   0x7   :  { %688 = vmatpush3.bf16.msra.mxu0 %v768_v3  ;;  %758 = vmatpush3.bf16.msra.mxu1 %v768_v3  ;;  %v777_v14 = vld [vmem:[%s992_s1 + $0x48] sm:$0xff]   ;;  %v779_v16 = vld [vmem:[%s992_s1 + $0x40] sm:$0xff]   ;;  %v791_v22 = vld [vmem:[%s993_s0 + $0x10] ss:$8 sps:$4 sm:$0xff]  }
   0x8   :  { %689 = vmatprep.subr.bf16.mxu0 %v769_v4  ;;  %751 = vmatprep.subr.bf16.mxu1 %v769_v4  ;;  %v778_v15 = vld [vmem:[%s992_s1 + $0x8] sm:$0xff]   ;;  %v780_v17 = vld [vmem:[%s992_s1] sm:$0xff]   ;;  %v792_v23 = vld [vmem:[%s993_s0 + $0x50] ss:$8 sps:$4 sm:$0xff]  }
   0x9   :  { %342 = vmatprep.mubr.bf16.mxu1 %v786_v12  ;;  %v793_v24 = vld [vmem:[%s993_s0 + $0x24] ss:$8 sps:$4 sm:$0xff]   ;;  %v797_v26 = vld [vmem:[%s993_s0 + $0x20] ss:$8 sps:$4 sm:$0xff]   ;;  %v799_v28 = vld [vmem:[%s993_s0 + $0x34] ss:$8 sps:$4 sm:$0xff]  }
   0xa   :  { %v795_v25 = vld [vmem:[%s993_s0 + $0x64] ss:$8 sps:$4 sm:$0xff]   ;;  %v798_v27 = vld [vmem:[%s993_s0 + $0x60] ss:$8 sps:$4 sm:$0xff]   ;;  %v801_v29 = vld [vmem:[%s993_s0 + $0x74] ss:$8 sps:$4 sm:$0xff]  }
   0xb   :  { %690 = vmatpush3.bf16.msra.mxu0 %v770_v5  ;;  %759 = vmatpush3.bf16.msra.mxu1 %v770_v5  ;;  %v803_v30 = vld [vmem:[%s993_s0 + $0x30] ss:$8 sps:$4 sm:$0xff]   ;;  %v929_v35 = vld [vmem:[%s994_s2] ss:$0 sm:$0xff] }
   0xc   :  { %691 = vmatprep.subr.bf16.mxu0 %v771_v6  ;;  %752 = vmatprep.subr.bf16.mxu1 %v771_v6  ;;  %v804_v31 = vld [vmem:[%s993_s0 + $0x70] ss:$8 sps:$4 sm:$0xff]   ;;  %v936_v43 = vld [vmem:[%s995_s3] ss:$0 sm:$0xff] }
   0xf   :  { %692 = vmatpush3.bf16.msra.mxu0 %v772_v7  ;;  %760 = vmatpush3.bf16.msra.mxu1 %v772_v7 }
  0x10   :  { %693 = vmatprep.subr.bf16.mxu0 %v773_v8  ;;  %753 = vmatprep.subr.bf16.mxu1 %v773_v8 }
  0x13   :  { %694 = vmatpush3.bf16.msra.mxu0 %v774_v9  ;;  %761 = vmatpush3.bf16.msra.mxu1 %v774_v9 }
  0x14   :  { %695 = vmatprep.subr.bf16.mxu0 %v775_v10  ;;  %754 = vmatprep.subr.bf16.mxu1 %v775_v10 }
  0x17   :  { %696 = vmatpush3.bf16.msra.mxu0 %v776_v13  ;;  %762 = vmatpush3.bf16.msra.mxu1 %v776_v13 }
  0x18   :  { %697 = vmatprep.subr.bf16.mxu0 %v777_v14  ;;  %755 = vmatprep.subr.bf16.mxu1 %v777_v14 }
  0x1b   :  { %698 = vmatpush3.bf16.msra.mxu0 %v778_v15  ;;  %763 = vmatpush3.bf16.msra.mxu1 %v778_v15 }
  0x1c   :  { %699 = vmatprep.subr.bf16.mxu0 %v779_v16  ;;  %756 = vmatprep.subr.bf16.mxu1 %v779_v16 }
  0x1f   :  { %700 = vmatpush3.bf16.msra.mxu0 %v780_v17  ;;  %764 = vmatpush3.bf16.msra.mxu1 %v780_v17 }
  0x22   :  { %311 = vmatmul.mubr.bf16.vlgmr.msra.gmra.mxu0 %v781_v18  ;;  %343 = vmatmul.mubr.bf16.vlgmr.msra.gmra.mxu1 %v784_v19 }
  0x23   :  { %318 = vmatprep.mubr.bf16.mxu0 %v787_v20  ;;  %350 = vmatprep.mubr.bf16.mxu1 %v789_v21 }
  0x2a   :  { %319 = vmatmul.mubr.bf16.gmra.mxu0 %v791_v22  ;;  %351 = vmatmul.mubr.bf16.gmra.mxu1 %v792_v23 }
  0x2b   :  { %326 = vmatprep.mubr.bf16.mxu0 %v793_v24  ;;  %358 = vmatprep.mubr.bf16.mxu1 %v795_v25 }
  0x32   :  { %327 = vmatmul.mubr.bf16.gmra.mxu0 %v797_v26  ;;  %359 = vmatmul.mubr.bf16.gmra.mxu1 %v798_v27 }
  0x33   :  { %334 = vmatprep.mubr.bf16.mxu0 %v799_v28  ;;  %366 = vmatprep.mubr.bf16.mxu1 %v801_v29 }
  0x3a   :  { %335 = vmatmul.mubr.bf16.gmra.mxu0 %v803_v30  ;;  %367 = vmatmul.mubr.bf16.gmra.mxu1 %v804_v31 }
  0xe2   :  { %v701_v32 = vpop.f32.mrf.mxu0  ;;  %v725_v33 = vpop.f32.mrf.mxu1 }
  0xe4   :  { %v702_v34 = vpop.f32.mrf.mxu0  ;;  %v726_v36 = vpop.f32.mrf.mxu1 }
  0xe5   :  { %v703_v37 = vadd.f32 %v702_v34, %v701_v32  ;;  %v727_v38 = vadd.f32 %v726_v36, %v725_v33 }
  0xe6   :  { %v704_v39 = vpop.f32.mrf.mxu0  ;;  %v728_v40 = vpop.f32.mrf.mxu1 }
  0xe7   :  { %v433_v41 = vmul.f32 %v703_v37, %v929_v35  ;;  %v441_v42 = vmul.f32 %v727_v38, %v929_v35 }
  0xe8   :  { %v705_v44 = vpop.f32.mrf.mxu0  ;;  %v729_v45 = vpop.f32.mrf.mxu1 }
  0xe9   :  { %v706_v46 = vadd.f32 %v705_v44, %v704_v39  ;;  %v730_v47 = vadd.f32 %v729_v45, %v728_v40  ;;  %v456_v50 = vadd.f32 %v936_v43, %v433_v41  ;;  %v464_v51 = vadd.f32 %v936_v43, %v441_v42 }
  0xea   :  { %v707_v48 = vpop.f32.mrf.mxu0  ;;  %v731_v49 = vpop.f32.mrf.mxu1 }
  0xeb   :  { %v434_v52 = vmul.f32 %v706_v46, %v929_v35  ;;  %v442_v53 = vmul.f32 %v730_v47, %v929_v35  ;;  %v472_v62 = vmax.f32 %v456_v50, 0.0  ;;  %v480_v63 = vmax.f32 %v464_v51, 0.0 }
  0xec   :  { %v708_v54 = vpop.f32.mrf.mxu0  ;;  %v732_v55 = vpop.f32.mrf.mxu1 }
  0xed   :  { %v457_v56 = vadd.f32 %v936_v43, %v434_v52  ;;  %v465_v57 = vadd.f32 %v936_v43, %v442_v53  ;;  %v709_v58 = vadd.f32 %v708_v54, %v707_v48  ;;  %v733_v59 = vadd.f32 %v732_v55, %v731_v49 }
  0xee   :  { %v710_v60 = vpop.f32.mrf.mxu0  ;;  %v734_v61 = vpop.f32.mrf.mxu1 }
  0xef   :  { %v473_v0 = vmax.f32 %v457_v56, 0.0  ;;  %v481_v1 = vmax.f32 %v465_v57, 0.0  ;;  %v435_v2 = vmul.f32 %v709_v58, %v929_v35  ;;  %v443_v3 = vmul.f32 %v733_v59, %v929_v35 }
  0xf0   :  { %v711_v4 = vpop.f32.mrf.mxu0  ;;  %v735_v5 = vpop.f32.mrf.mxu1 }
  0xf1   :  { %v641_v6 = vpack.c.bf16 %v473_v0, %v472_v62  ;;  %v661_v7 = vpack.c.bf16 %v481_v1, %v480_v63  ;;  %v712_v8 = vadd.f32 %v711_v4, %v710_v60  ;;  %v736_v9 = vadd.f32 %v735_v5, %v734_v61 }
  0xf2   :  { %v713_v10 = vpop.f32.mrf.mxu0  ;;  %v737_v11 = vpop.f32.mrf.mxu1  ;;  %v458_v12 = vadd.f32 %v936_v43, %v435_v2  ;;  %v466_v13 = vadd.f32 %v936_v43, %v443_v3 }
  0xf3   :  { %642 = vst [vmem:[%s996_s4] sm:$0xff] %v641_v6   ;;  %681 = vst [vmem:[%s996_s4 + $0x20] sm:$0xff] %v661_v7   ;;  %v436_v14 = vmul.f32 %v712_v8, %v929_v35  ;;  %v444_v15 = vmul.f32 %v736_v9, %v929_v35 }
  0xf4   :  { %v714_v16 = vpop.f32.mrf.mxu0  ;;  %v738_v17 = vpop.f32.mrf.mxu1  ;;  %v474_v26 = vmax.f32 %v458_v12, 0.0  ;;  %v482_v27 = vmax.f32 %v466_v13, 0.0 }
  0xf5   :  { %v715_v18 = vadd.f32 %v714_v16, %v713_v10  ;;  %v739_v19 = vadd.f32 %v738_v17, %v737_v11  ;;  %v459_v20 = vadd.f32 %v936_v43, %v436_v14  ;;  %v467_v21 = vadd.f32 %v936_v43, %v444_v15 }
  0xf6   :  { %v716_v22 = vpop.f32.mrf.mxu0  ;;  %v740_v23 = vpop.f32.mrf.mxu1 }
  0xf7   :  { %v437_v24 = vmul.f32 %v715_v18, %v929_v35  ;;  %v445_v25 = vmul.f32 %v739_v19, %v929_v35  ;;  %v475_v28 = vmax.f32 %v459_v20, 0.0  ;;  %v483_v29 = vmax.f32 %v467_v21, 0.0 }
  0xf8   :  { %v717_v30 = vpop.f32.mrf.mxu0  ;;  %v741_v31 = vpop.f32.mrf.mxu1 }
  0xf9   :  { %v718_v32 = vadd.f32 %v717_v30, %v716_v22  ;;  %v742_v33 = vadd.f32 %v741_v31, %v740_v23  ;;  %v646_v34 = vpack.c.bf16 %v475_v28, %v474_v26  ;;  %v666_v36 = vpack.c.bf16 %v483_v29, %v482_v27 }
  0xfa   :  { %v719_v37 = vpop.f32.mrf.mxu0  ;;  %v743_v38 = vpop.f32.mrf.mxu1  ;;  %v460_v39 = vadd.f32 %v936_v43, %v437_v24  ;;  %v468_v40 = vadd.f32 %v936_v43, %v445_v25 }
  0xfb   :  { %v438_v41 = vmul.f32 %v718_v32, %v929_v35  ;;  %v446_v42 = vmul.f32 %v742_v33, %v929_v35  ;;  %678 = vst [vmem:[%s996_s4 + $0x8] sm:$0xff] %v646_v34   ;;  %682 = vst [vmem:[%s996_s4 + $0x28] sm:$0xff] %v666_v36  }
  0xfc   :  { %v720_v44 = vpop.f32.mrf.mxu0  ;;  %v744_v45 = vpop.f32.mrf.mxu1  ;;  %v476_v52 = vmax.f32 %v460_v39, 0.0  ;;  %v484_v53 = vmax.f32 %v468_v40, 0.0 }
  0xfd   :  { %v461_v46 = vadd.f32 %v936_v43, %v438_v41  ;;  %v469_v47 = vadd.f32 %v936_v43, %v446_v42  ;;  %v721_v48 = vadd.f32 %v720_v44, %v719_v37  ;;  %v745_v49 = vadd.f32 %v744_v45, %v743_v38 }
  0xfe   :  { %v722_v50 = vpop.f32.mrf.mxu0  ;;  %v746_v51 = vpop.f32.mrf.mxu1 }
  0xff   :  { %v477_v54 = vmax.f32 %v461_v46, 0.0  ;;  %v485_v55 = vmax.f32 %v469_v47, 0.0  ;;  %v439_v56 = vmul.f32 %v721_v48, %v929_v35  ;;  %v447_v57 = vmul.f32 %v745_v49, %v929_v35 }
 0x100   :  { %v723_v58 = vpop.f32.mrf.mxu0  ;;  %v747_v59 = vpop.f32.mrf.mxu1 }
 0x101   :  { %v651_v60 = vpack.c.bf16 %v477_v54, %v476_v52  ;;  %v671_v61 = vpack.c.bf16 %v485_v55, %v484_v53  ;;  %v724_v62 = vadd.f32 %v723_v58, %v722_v50  ;;  %v748_v63 = vadd.f32 %v747_v59, %v746_v51 }
 0x102   :  { %v462_v0 = vadd.f32 %v936_v43, %v439_v56  ;;  %v470_v1 = vadd.f32 %v936_v43, %v447_v57 }
 0x103   :  { %679 = vst [vmem:[%s996_s4 + $0x10] sm:$0xff] %v651_v60   ;;  %683 = vst [vmem:[%s996_s4 + $0x30] sm:$0xff] %v671_v61   ;;  %v440_v2 = vmul.f32 %v724_v62, %v929_v35  ;;  %v448_v3 = vmul.f32 %v748_v63, %v929_v35 }
 0x104   :  { %v478_v6 = vmax.f32 %v462_v0, 0.0  ;;  %v486_v7 = vmax.f32 %v470_v1, 0.0 }
 0x105   :  { %v463_v4 = vadd.f32 %v936_v43, %v440_v2  ;;  %v471_v5 = vadd.f32 %v936_v43, %v448_v3 }
 0x107   :  { %v479_v8 = vmax.f32 %v463_v4, 0.0  ;;  %v487_v9 = vmax.f32 %v471_v5, 0.0 }
 0x109   :  { %v656_v10 = vpack.c.bf16 %v479_v8, %v478_v6  ;;  %v676_v11 = vpack.c.bf16 %v487_v9, %v486_v7 }
 0x10b   :  { %680 = vst [vmem:[%s996_s4 + $0x18] sm:$0xff] %v656_v10   ;;  %684 = vst [vmem:[%s996_s4 + $0x38] sm:$0xff] %v676_v11  }

// kernel: wideresnet_forward.14
= control target key start
LH: loop header
LB: loop body
LE: loop exit
PB: predicated region body
PF: predicated region fallthrough
CT: control target
= control target key end

     0   :  { %s740_s1 = inlined_call_operand.vmem [shape: bf16[128,128], index: 1, kind: input, shape index: {}]   ;;  %s741_s0 = inlined_call_operand.vmem [shape: bf16[128,128], index: 0, kind: input, shape index: {}]   ;;  %s742_s2 = inlined_call_operand.vmem [shape: f32[1,128], index: 2, kind: input, shape index: {}]   ;;  %s743_s3 = inlined_call_operand.vmem [shape: f32[1,128], index: 3, kind: input, shape index: {}]   ;;  %s744_s4 = inlined_call_operand.vmem [shape: bf16[128,128], index: 4, kind: output, shape index: {}]  }
   0x1   :  { %v621_v0 = vld [vmem:[%s740_s1 + $0x38] sm:$0xff]   ;;  %v622_v1 = vld [vmem:[%s740_s1 + $0x30] sm:$0xff]   ;;  %v623_v2 = vld [vmem:[%s740_s1 + $0x28] sm:$0xff]  }
   0x2   :  { %573 = vmatprep.subr.bf16.mxu0 %v621_v0  ;;  %605 = vmatprep.subr.bf16.mxu1 %v621_v0  ;;  %v624_v3 = vld [vmem:[%s740_s1 + $0x20] sm:$0xff]   ;;  %v625_v6 = vld [vmem:[%s740_s1 + $0x18] sm:$0xff]   ;;  %v626_v7 = vld [vmem:[%s740_s1 + $0x10] sm:$0xff]  }
   0x3   :  { %574 = vmatpush3.bf16.msra.mxu0 %v621_v0  ;;  %613 = vmatpush3.bf16.msra.mxu1 %v621_v0  ;;  %v629_v4 = vld [vmem:[%s741_s0] sm:$0xff]   ;;  %v627_v8 = vld [vmem:[%s740_s1 + $0x8] sm:$0xff]   ;;  %v633_v12 = vld [vmem:[%s741_s0 + $0x10] sm:$0xff]  }
   0x4   :  { %575 = vmatprep.subr.bf16.mxu0 %v622_v1  ;;  %606 = vmatprep.subr.bf16.mxu1 %v622_v1  ;;  %v630_v5 = vld [vmem:[%s741_s0 + $0x20] sm:$0xff]   ;;  %v631_v10 = vld [vmem:[%s741_s0 + $0x8] sm:$0xff]   ;;  %v634_v13 = vld [vmem:[%s741_s0 + $0x30] sm:$0xff]  }
   0x5   :  { %589 = vmatprep.mubr.bf16.mxu0 %v629_v4  ;;  %597 = vmatprep.mubr.bf16.mxu1 %v630_v5  ;;  %v628_v9 = vld [vmem:[%s740_s1] sm:$0xff]   ;;  %v632_v11 = vld [vmem:[%s741_s0 + $0x28] sm:$0xff]   ;;  %v635_v14 = vld [vmem:[%s741_s0 + $0x18] sm:$0xff]  }
   0x6   :  { %v636_v15 = vld [vmem:[%s741_s0 + $0x38] sm:$0xff]   ;;  %v476_v16 = vld [vmem:[%s742_s2] ss:$0 sm:$0xff] }
   0x7   :  { %576 = vmatpush3.bf16.msra.mxu0 %v622_v1  ;;  %614 = vmatpush3.bf16.msra.mxu1 %v622_v1  ;;  %v477_v23 = vld [vmem:[%s743_s3] ss:$0 sm:$0xff] }
   0x8   :  { %577 = vmatprep.subr.bf16.mxu0 %v623_v2  ;;  %607 = vmatprep.subr.bf16.mxu1 %v623_v2 }
   0xb   :  { %578 = vmatpush3.bf16.msra.mxu0 %v623_v2  ;;  %615 = vmatpush3.bf16.msra.mxu1 %v623_v2 }
   0xc   :  { %579 = vmatprep.subr.bf16.mxu0 %v624_v3  ;;  %608 = vmatprep.subr.bf16.mxu1 %v624_v3 }
   0xf   :  { %580 = vmatpush3.bf16.msra.mxu0 %v624_v3  ;;  %616 = vmatpush3.bf16.msra.mxu1 %v624_v3 }
  0x10   :  { %581 = vmatprep.subr.bf16.mxu0 %v625_v6  ;;  %609 = vmatprep.subr.bf16.mxu1 %v625_v6 }
  0x13   :  { %582 = vmatpush3.bf16.msra.mxu0 %v625_v6  ;;  %617 = vmatpush3.bf16.msra.mxu1 %v625_v6 }
  0x14   :  { %583 = vmatprep.subr.bf16.mxu0 %v626_v7  ;;  %610 = vmatprep.subr.bf16.mxu1 %v626_v7 }
  0x17   :  { %584 = vmatpush3.bf16.msra.mxu0 %v626_v7  ;;  %618 = vmatpush3.bf16.msra.mxu1 %v626_v7 }
  0x18   :  { %585 = vmatprep.subr.bf16.mxu0 %v627_v8  ;;  %611 = vmatprep.subr.bf16.mxu1 %v627_v8 }
  0x1b   :  { %586 = vmatpush3.bf16.msra.mxu0 %v627_v8  ;;  %619 = vmatpush3.bf16.msra.mxu1 %v627_v8 }
  0x1c   :  { %587 = vmatprep.subr.bf16.mxu0 %v628_v9  ;;  %612 = vmatprep.subr.bf16.mxu1 %v628_v9 }
  0x1f   :  { %588 = vmatpush3.bf16.msra.mxu0 %v628_v9  ;;  %620 = vmatpush3.bf16.msra.mxu1 %v628_v9 }
  0x22   :  { %590 = vmatmul.mubr.bf16.vlgmr.msra.gmra.mxu0 %v631_v10  ;;  %598 = vmatmul.mubr.bf16.vlgmr.msra.gmra.mxu1 %v632_v11 }
  0x23   :  { %593 = vmatprep.mubr.bf16.mxu0 %v633_v12  ;;  %601 = vmatprep.mubr.bf16.mxu1 %v634_v13 }
  0x2a   :  { %594 = vmatmul.mubr.bf16.gmra.mxu0 %v635_v14  ;;  %602 = vmatmul.mubr.bf16.gmra.mxu1 %v636_v15 }
  0xe2   :  { %v591_v17 = vpop.f32.mrf.mxu0  ;;  %v599_v18 = vpop.f32.mrf.mxu1 }
  0xe3   :  { %v339_v19 = vmul.f32 %v591_v17, %v476_v16  ;;  %v347_v20 = vmul.f32 %v599_v18, %v476_v16 }
  0xe4   :  { %v216_v21 = vpop.f32.mrf.mxu0  ;;  %v248_v22 = vpop.f32.mrf.mxu1 }
  0xe5   :  { %v337_v24 = vmul.f32 %v476_v16, %v216_v21  ;;  %v345_v25 = vmul.f32 %v476_v16, %v248_v22  ;;  %v362_v30 = vadd.f32 %v477_v23, %v339_v19  ;;  %v370_v31 = vadd.f32 %v477_v23, %v347_v20 }
  0xe6   :  { %v592_v26 = vpop.f32.mrf.mxu0  ;;  %v600_v27 = vpop.f32.mrf.mxu1 }
  0xe7   :  { %v340_v28 = vmul.f32 %v592_v26, %v476_v16  ;;  %v348_v29 = vmul.f32 %v600_v27, %v476_v16  ;;  %v360_v38 = vadd.f32 %v477_v23, %v337_v24  ;;  %v368_v39 = vadd.f32 %v477_v23, %v345_v25 }
  0xe8   :  { %v219_v32 = vpop.f32.mrf.mxu0  ;;  %v251_v33 = vpop.f32.mrf.mxu1 }
  0xe9   :  { %v363_v34 = vadd.f32 %v477_v23, %v340_v28  ;;  %v371_v35 = vadd.f32 %v477_v23, %v348_v29  ;;  %v338_v36 = vmul.f32 %v476_v16, %v219_v32  ;;  %v346_v37 = vmul.f32 %v476_v16, %v251_v33 }
  0xea   :  { %v595_v40 = vpop.f32.mrf.mxu0  ;;  %v603_v41 = vpop.f32.mrf.mxu1 }
  0xeb   :  { %v518_v42 = vpack.c.bf16 %v363_v34, %v362_v30  ;;  %v538_v43 = vpack.c.bf16 %v371_v35, %v370_v31  ;;  %v361_v44 = vadd.f32 %v477_v23, %v338_v36  ;;  %v369_v45 = vadd.f32 %v477_v23, %v346_v37 }
  0xec   :  { %v343_v46 = vmul.f32 %v595_v40, %v476_v16  ;;  %v351_v47 = vmul.f32 %v603_v41, %v476_v16  ;;  %v232_v48 = vpop.f32.mrf.mxu0  ;;  %v264_v49 = vpop.f32.mrf.mxu1 }
  0xed   :  { %550 = vst [vmem:[%s744_s4 + $0x8] sm:$0xff] %v518_v42   ;;  %554 = vst [vmem:[%s744_s4 + $0x28] sm:$0xff] %v538_v43   ;;  %v513_v50 = vpack.c.bf16 %v361_v44, %v360_v38  ;;  %v533_v51 = vpack.c.bf16 %v369_v45, %v368_v39  ;;  %v341_v52 = vmul.f32 %v476_v16, %v232_v48 }
  0xee   :  { %v349_v53 = vmul.f32 %v476_v16, %v264_v49  ;;  %v596_v54 = vpop.f32.mrf.mxu0  ;;  %v604_v55 = vpop.f32.mrf.mxu1  ;;  %v366_v58 = vadd.f32 %v477_v23, %v343_v46  ;;  %v374_v59 = vadd.f32 %v477_v23, %v351_v47 }
  0xef   :  { %514 = vst [vmem:[%s744_s4] sm:$0xff] %v513_v50   ;;  %553 = vst [vmem:[%s744_s4 + $0x20] sm:$0xff] %v533_v51   ;;  %v344_v56 = vmul.f32 %v596_v54, %v476_v16  ;;  %v352_v57 = vmul.f32 %v604_v55, %v476_v16  ;;  %v364_v2 = vadd.f32 %v477_v23, %v341_v52 }
  0xf0   :  { %v235_v60 = vpop.f32.mrf.mxu0  ;;  %v267_v61 = vpop.f32.mrf.mxu1  ;;  %v372_v3 = vadd.f32 %v477_v23, %v349_v53 }
  0xf1   :  { %v367_v62 = vadd.f32 %v477_v23, %v344_v56  ;;  %v375_v63 = vadd.f32 %v477_v23, %v352_v57  ;;  %v342_v0 = vmul.f32 %v476_v16, %v235_v60  ;;  %v350_v1 = vmul.f32 %v476_v16, %v267_v61 }
  0xf3   :  { %v528_v4 = vpack.c.bf16 %v367_v62, %v366_v58  ;;  %v548_v5 = vpack.c.bf16 %v375_v63, %v374_v59  ;;  %v365_v6 = vadd.f32 %v477_v23, %v342_v0  ;;  %v373_v7 = vadd.f32 %v477_v23, %v350_v1 }
  0xf5   :  { %552 = vst [vmem:[%s744_s4 + $0x18] sm:$0xff] %v528_v4   ;;  %556 = vst [vmem:[%s744_s4 + $0x38] sm:$0xff] %v548_v5   ;;  %v523_v8 = vpack.c.bf16 %v365_v6, %v364_v2  ;;  %v543_v9 = vpack.c.bf16 %v373_v7, %v372_v3 }
  0xf7   :  { %551 = vst [vmem:[%s744_s4 + $0x10] sm:$0xff] %v523_v8   ;;  %555 = vst [vmem:[%s744_s4 + $0x30] sm:$0xff] %v543_v9  }

// kernel: wideresnet_forward.15
= control target key start
LH: loop header
LB: loop body
LE: loop exit
PB: predicated region body
PF: predicated region fallthrough
CT: control target
= control target key end

     0   :  { %s1757_s1 = inlined_call_operand.vmem [shape: bf16[384,128], index: 1, kind: input, shape index: {}]   ;;  %s1758_s0 = inlined_call_operand.vmem [shape: bf16[128,384], index: 0, kind: input, shape index: {}]   ;;  %s1759_s2 = inlined_call_operand.vmem [shape: f32[1,128], index: 2, kind: input, shape index: {}]   ;;  %s1760_s6 = inlined_call_operand.vmem [shape: bf16[128,128], index: 6, kind: input, shape index: {}]   ;;  %s1761_s3 = inlined_call_operand.vmem [shape: f32[1,128], index: 3, kind: input, shape index: {}]   ;;  %s1762_s4 = inlined_call_operand.vmem [shape: f32[1,128], index: 4, kind: input, shape index: {}]   ;;  %s1763_s5 = inlined_call_operand.vmem [shape: f32[1,128], index: 5, kind: input, shape index: {}]   ;;  %s1764_s7 = inlined_call_operand.vmem [shape: bf16[128,128], index: 7, kind: output, shape index: {0}]   ;;  %s1765_s8 = inlined_call_operand.vmem [shape: bf16[128,128], index: 8, kind: output, shape index: {1}]  }
   0x1   :  { %v1347_v0 = vld [vmem:[%s1757_s1 + $0x78] sm:$0xff]   ;;  %v1350_v3 = vld [vmem:[%s1757_s1 + $0x70] sm:$0xff]   ;;  %v1353_v6 = vld [vmem:[%s1757_s1 + $0x68] sm:$0xff]  }
   0x2   :  { %v1348_v1 = vld [vmem:[%s1757_s1 + $0x38] sm:$0xff]   ;;  %1235 = vmatprep.subr.bf16.mxu0 %v1347_v0  ;;  %v1351_v4 = vld [vmem:[%s1757_s1 + $0x30] sm:$0xff]   ;;  %v1354_v7 = vld [vmem:[%s1757_s1 + $0x28] sm:$0xff]  }
   0x3   :  { %v1349_v2 = vld [vmem:[%s1757_s1 + $0xb8] sm:$0xff]   ;;  %1236 = vmatpush3.bf16.msra.mxu0 %v1348_v1  ;;  %v1352_v5 = vld [vmem:[%s1757_s1 + $0xb0] sm:$0xff]   ;;  %v1355_v8 = vld [vmem:[%s1757_s1 + $0xa8] sm:$0xff]  }
   0x4   :  { %1315 = vmatprep.subr.bf16.mxu1 %v1349_v2  ;;  %1237 = vmatprep.subr.bf16.mxu0 %v1350_v3  ;;  %v1356_v9 = vld [vmem:[%s1757_s1 + $0x60] sm:$0xff]   ;;  %v1359_v12 = vld [vmem:[%s1757_s1 + $0x58] sm:$0xff]   ;;  %v1362_v15 = vld [vmem:[%s1757_s1 + $0x50] sm:$0xff]  }
   0x5   :  { %1316 = vmatpush3.bf16.msra.mxu1 %v1349_v2  ;;  %v1357_v10 = vld [vmem:[%s1757_s1 + $0x20] sm:$0xff]   ;;  %v1361_v13 = vld [vmem:[%s1757_s1 + $0x98] sm:$0xff]   ;;  %v1364_v16 = vld [vmem:[%s1757_s1 + $0x90] sm:$0xff]  }
   0x6   :  { %1317 = vmatprep.subr.bf16.mxu1 %v1352_v5  ;;  %v1358_v11 = vld [vmem:[%s1757_s1 + $0xa0] sm:$0xff]   ;;  %v1360_v14 = vld [vmem:[%s1757_s1 + $0x18] sm:$0xff]   ;;  %v1363_v17 = vld [vmem:[%s1757_s1 + $0x10] sm:$0xff]  }
   0x7   :  { %1238 = vmatpush3.bf16.msra.mxu0 %v1351_v4  ;;  %v1365_v18 = vld [vmem:[%s1757_s1 + $0x48] sm:$0xff]   ;;  %v1368_v21 = vld [vmem:[%s1757_s1 + $0x40] sm:$0xff]   ;;  %v1383_v32 = vld [vmem:[%s1758_s0 + $0x50] ss:$12 sps:$4 sm:$0xff]  }
   0x8   :  { %1239 = vmatprep.subr.bf16.mxu0 %v1353_v6  ;;  %v1366_v19 = vld [vmem:[%s1757_s1 + $0x8] sm:$0xff]   ;;  %v1370_v22 = vld [vmem:[%s1757_s1 + $0x80] sm:$0xff]   ;;  %v1381_v34 = vld [vmem:[%s1758_s0 + $0x30] ss:$12 sps:$4 sm:$0xff]  }
   0x9   :  { %1318 = vmatpush3.bf16.msra.mxu1 %v1352_v5  ;;  %v1367_v20 = vld [vmem:[%s1757_s1 + $0x88] sm:$0xff]   ;;  %v1373_v23 = vld [vmem:[%s1758_s0 + $0x4] ss:$12 sps:$4 sm:$0xff]   ;;  %v1379_v31 = vld [vmem:[%s1758_s0 + $0x34] ss:$12 sps:$4 sm:$0xff]  }
   0xa   :  { %1319 = vmatprep.subr.bf16.mxu1 %v1355_v8  ;;  %v1374_v24 = vld [vmem:[%s1758_s0 + $0x8] ss:$12 sps:$4 sm:$0xff]   ;;  %v1369_v25 = vld [vmem:[%s1757_s1] sm:$0xff]   ;;  %449 = vmatprep.mubr.bf16.mxu0 %v1373_v23  ;;  %v1384_v35 = vld [vmem:[%s1758_s0 + $0x4c] ss:$12 sps:$4 sm:$0xff]  }
   0xb   :  { %1240 = vmatpush3.bf16.msra.mxu0 %v1354_v7  ;;  %1331 = vmatprep.mubr.bf16.mxu1 %v1374_v24  ;;  %v1371_v26 = vld [vmem:[%s1758_s0] ss:$12 sps:$4 sm:$0xff]   ;;  %v1376_v27 = vld [vmem:[%s1758_s0 + $0x1c] ss:$12 sps:$4 sm:$0xff]   ;;  %v1382_v29 = vld [vmem:[%s1758_s0 + $0x38] ss:$12 sps:$4 sm:$0xff]  }
   0xc   :  { %1241 = vmatprep.subr.bf16.mxu0 %v1356_v9  ;;  %v1375_v28 = vld [vmem:[%s1758_s0 + $0x20] ss:$12 sps:$4 sm:$0xff]   ;;  %v1378_v30 = vld [vmem:[%s1758_s0 + $0x18] ss:$12 sps:$4 sm:$0xff]   ;;  %v1390_v33 = vld [vmem:[%s1758_s0 + $0x68] ss:$12 sps:$4 sm:$0xff]  }
   0xd   :  { %1320 = vmatpush3.bf16.msra.mxu1 %v1355_v8  ;;  %v1391_v36 = vld [vmem:[%s1758_s0 + $0x80] ss:$12 sps:$4 sm:$0xff]   ;;  %v1398_v37 = vld [vmem:[%s1758_s0 + $0x98] ss:$12 sps:$4 sm:$0xff]   ;;  %v1386_v38 = vld [vmem:[%s1758_s0 + $0x48] ss:$12 sps:$4 sm:$0xff]  }
   0xe   :  { %1321 = vmatprep.subr.bf16.mxu1 %v1358_v11  ;;  %v1387_v39 = vld [vmem:[%s1758_s0 + $0x64] ss:$12 sps:$4 sm:$0xff]   ;;  %v1389_v41 = vld [vmem:[%s1758_s0 + $0x60] ss:$12 sps:$4 sm:$0xff]   ;;  %v1392_v42 = vld [vmem:[%s1758_s0 + $0x7c] ss:$12 sps:$4 sm:$0xff]  }
   0xf   :  { %1242 = vmatpush3.bf16.msra.mxu0 %v1357_v10  ;;  %v1399_v40 = vld [vmem:[%s1758_s0 + $0xb0] ss:$12 sps:$4 sm:$0xff]   ;;  %v1394_v43 = vld [vmem:[%s1758_s0 + $0x78] ss:$12 sps:$4 sm:$0xff]   ;;  %v1395_v44 = vld [vmem:[%s1758_s0 + $0x94] ss:$12 sps:$4 sm:$0xff]  }
  0x10   :  { %1243 = vmatprep.subr.bf16.mxu0 %v1359_v12  ;;  %v1397_v45 = vld [vmem:[%s1758_s0 + $0x90] ss:$12 sps:$4 sm:$0xff]   ;;  %v1400_v46 = vld [vmem:[%s1758_s0 + $0xac] ss:$12 sps:$4 sm:$0xff]   ;;  %v1402_v47 = vld [vmem:[%s1758_s0 + $0xa8] ss:$12 sps:$4 sm:$0xff]  }
  0x11   :  { %1322 = vmatpush3.bf16.msra.mxu1 %v1358_v11  ;;  %v1595_v54 = vld [vmem:[%s1759_s2] ss:$0 sm:$0xff]  ;;  %v1214_v10 = vld [vmem:[%s1760_s6 + $0x8] sm:$0xff]  }
  0x12   :  { %1323 = vmatprep.subr.bf16.mxu1 %v1361_v13  ;;  %v1103_v55 = vld [vmem:[%s1760_s6] sm:$0xff]  }
  0x13   :  { %1244 = vmatpush3.bf16.msra.mxu0 %v1360_v14  ;;  %v1603_v57 = vld [vmem:[%s1761_s3] ss:$0 sm:$0xff]  ;;  %v1104_v61 = vunpack.c.l.bf16 %v1103_v55  ;;  %v1105_v8 = vunpack.c.h.bf16 %v1103_v55 }
  0x14   :  { %1245 = vmatprep.subr.bf16.mxu0 %v1362_v15  ;;  %v1610_v3 = vld [vmem:[%s1762_s4] ss:$0 sm:$0xff] }
  0x15   :  { %1324 = vmatpush3.bf16.msra.mxu1 %v1361_v13  ;;  %v1623_v15 = vld [vmem:[%s1763_s5] ss:$0 sm:$0xff] }
  0x16   :  { %1325 = vmatprep.subr.bf16.mxu1 %v1364_v16 }
  0x17   :  { %1246 = vmatpush3.bf16.msra.mxu0 %v1363_v17 }
  0x18   :  { %1247 = vmatprep.subr.bf16.mxu0 %v1365_v18 }
  0x19   :  { %1326 = vmatpush3.bf16.msra.mxu1 %v1364_v16 }
  0x1a   :  { %1327 = vmatprep.subr.bf16.mxu1 %v1367_v20 }
  0x1b   :  { %1248 = vmatpush3.bf16.msra.mxu0 %v1366_v19 }
  0x1c   :  { %1249 = vmatprep.subr.bf16.mxu0 %v1368_v21 }
  0x1d   :  { %1328 = vmatpush3.bf16.msra.mxu1 %v1367_v20  ;;  %v1108_v20 = vunpack.c.l.bf16 %v1214_v10 }
  0x1e   :  { %1329 = vmatprep.subr.bf16.mxu1 %v1370_v22 }
  0x1f   :  { %1250 = vmatpush3.bf16.msra.mxu0 %v1369_v25 }
  0x21   :  { %1330 = vmatpush3.bf16.msra.mxu1 %v1370_v22 }
  0x22   :  { %450 = vmatmul.mubr.bf16.vlgmr.msra.gmra.mxu0 %v1371_v26 }
  0x23   :  { %457 = vmatprep.mubr.bf16.mxu0 %v1376_v27 }
  0x24   :  { %1332 = vmatmul.mubr.bf16.vlgmr.msra.gmra.mxu1 %v1375_v28 }
  0x25   :  { %1335 = vmatprep.mubr.bf16.mxu1 %v1382_v29 }
  0x2a   :  { %458 = vmatmul.mubr.bf16.gmra.mxu0 %v1378_v30 }
  0x2b   :  { %465 = vmatprep.mubr.bf16.mxu0 %v1379_v31 }
  0x2c   :  { %1336 = vmatmul.mubr.bf16.gmra.mxu1 %v1383_v32 }
  0x2d   :  { %1339 = vmatprep.mubr.bf16.mxu1 %v1390_v33 }
  0x32   :  { %466 = vmatmul.mubr.bf16.gmra.mxu0 %v1381_v34  ;;  %v1109_v34 = vunpack.c.h.bf16 %v1214_v10 }
  0x33   :  { %473 = vmatprep.mubr.bf16.mxu0 %v1384_v35 }
  0x34   :  { %1340 = vmatmul.mubr.bf16.gmra.mxu1 %v1391_v36  ;;  %v1215_v36 = vld [vmem:[%s1760_s6 + $0x10] sm:$0xff]  }
  0x35   :  { %1343 = vmatprep.mubr.bf16.mxu1 %v1398_v37 }
  0x3a   :  { %474 = vmatmul.mubr.bf16.gmra.mxu0 %v1386_v38 }
  0x3b   :  { %481 = vmatprep.mubr.bf16.mxu0 %v1387_v39 }
  0x3c   :  { %1344 = vmatmul.mubr.bf16.gmra.mxu1 %v1399_v40 }
  0x42   :  { %482 = vmatmul.mubr.bf16.gmra.mxu0 %v1389_v41 }
  0x43   :  { %489 = vmatprep.mubr.bf16.mxu0 %v1392_v42 }
  0x4a   :  { %490 = vmatmul.mubr.bf16.gmra.mxu0 %v1394_v43 }
  0x4b   :  { %497 = vmatprep.mubr.bf16.mxu0 %v1395_v44 }
  0x52   :  { %498 = vmatmul.mubr.bf16.gmra.mxu0 %v1397_v45 }
  0x53   :  { %505 = vmatprep.mubr.bf16.mxu0 %v1400_v46  ;;  %v1112_v46 = vunpack.c.l.bf16 %v1215_v36 }
  0x5a   :  { %506 = vmatmul.mubr.bf16.gmra.mxu0 %v1402_v47 }
  0xe2   :  { %v1251_v48 = vpop.f32.mrf.mxu0 }
  0xe4   :  { %v1252_v49 = vpop.f32.mrf.mxu0  ;;  %v1333_v50 = vpop.f32.mrf.mxu1 }
  0xe5   :  { %v1253_v51 = vadd.f32 %v1252_v49, %v1251_v48 }
  0xe6   :  { %v1254_v52 = vpop.f32.mrf.mxu0  ;;  %v548_v53 = vpop.f32.mrf.mxu1 }
  0xe7   :  { %v549_v56 = vadd.f32 %v1253_v51, %v548_v53 }
  0xe8   :  { %v1255_v58 = vpop.f32.mrf.mxu0  ;;  %v1334_v59 = vpop.f32.mrf.mxu1 }
  0xe9   :  { %v669_v60 = vmul.f32 %v1595_v54, %v549_v56  ;;  %v1256_v62 = vadd.f32 %v1255_v58, %v1254_v52 }
  0xea   :  { %v1257_v63 = vpop.f32.mrf.mxu0  ;;  %v551_v0 = vpop.f32.mrf.mxu1 }
  0xeb   :  { %v692_v1 = vadd.f32 %v1603_v57, %v669_v60  ;;  %v552_v2 = vadd.f32 %v1256_v62, %v551_v0  ;;  %v1216_v0 = vld [vmem:[%s1760_s6 + $0x18] sm:$0xff]  }
  0xec   :  { %v1258_v4 = vpop.f32.mrf.mxu0  ;;  %v1612_v5 = vpop.f32.mrf.mxu1 }
  0xed   :  { %v740_v6 = vadd.f32 %v1104_v61, %v692_v1  ;;  %v670_v7 = vmul.f32 %v1595_v54, %v552_v2  ;;  %v1259_v9 = vadd.f32 %v1258_v4, %v1257_v63  ;;  %v1113_v61 = vunpack.c.h.bf16 %v1215_v36 }
  0xee   :  { %v1260_v11 = vpop.f32.mrf.mxu0  ;;  %v564_v17 = vpop.f32.mrf.mxu1 }
  0xef   :  { %v843_v12 = vmul.f32 %v1610_v3, %v740_v6  ;;  %v693_v13 = vadd.f32 %v1603_v57, %v670_v7  ;;  %v557_v14 = vadd.f32 %v1333_v50, %v1259_v9 }
  0xf0   :  { %v1261_v16 = vpop.f32.mrf.mxu0  ;;  %v1338_v29 = vpop.f32.mrf.mxu1 }
  0xf1   :  { %v741_v18 = vadd.f32 %v1105_v8, %v693_v13  ;;  %v671_v19 = vmul.f32 %v1595_v54, %v557_v14  ;;  %v1262_v21 = vadd.f32 %v1261_v16, %v1260_v11  ;;  %v866_v23 = vadd.f32 %v1623_v15, %v843_v12 }
  0xf2   :  { %v1263_v22 = vpop.f32.mrf.mxu0  ;;  %v567_v43 = vpop.f32.mrf.mxu1  ;;  %v1116_v13 = vunpack.c.l.bf16 %v1216_v0 }
  0xf3   :  { %v1137_v24 = vpack.c.bf16 %v741_v18, %v740_v6  ;;  %v844_v25 = vmul.f32 %v1610_v3, %v741_v18  ;;  %v694_v26 = vadd.f32 %v1603_v57, %v671_v19  ;;  %v560_v27 = vadd.f32 %v1334_v59, %v1262_v21 }
  0xf4   :  { %v1264_v28 = vpop.f32.mrf.mxu0  ;;  %v882_v37 = vmax.f32 %v866_v23, 0.0  ;;  %v1646_v58 = vpop.f32.mrf.mxu1 }
  0xf5   :  { %1138 = vst [vmem:[%s1764_s7] sm:$0xff] %v1137_v24   ;;  %v867_v30 = vadd.f32 %v1623_v15, %v844_v25  ;;  %v742_v31 = vadd.f32 %v1108_v20, %v694_v26  ;;  %v1265_v32 = vadd.f32 %v1264_v28, %v1263_v22  ;;  %v672_v33 = vmul.f32 %v1595_v54, %v560_v27 }
  0xf6   :  { %v1266_v35 = vpop.f32.mrf.mxu0  ;;  %v580_v10 = vpop.f32.mrf.mxu1  ;;  %v1117_v28 = vunpack.c.h.bf16 %v1216_v0 }
  0xf7   :  { %v883_v38 = vmax.f32 %v867_v30, 0.0  ;;  %v565_v39 = vadd.f32 %v1265_v32, %v564_v17  ;;  %v845_v40 = vmul.f32 %v1610_v3, %v742_v31  ;;  %v695_v41 = vadd.f32 %v1603_v57, %v672_v33 }
  0xf8   :  { %v1267_v42 = vpop.f32.mrf.mxu0  ;;  %v1342_v23 = vpop.f32.mrf.mxu1 }
  0xf9   :  { %v1177_v44 = vpack.c.bf16 %v883_v38, %v882_v37  ;;  %v673_v45 = vmul.f32 %v1595_v54, %v565_v39  ;;  %v1268_v47 = vadd.f32 %v1267_v42, %v1266_v35  ;;  %v743_v48 = vadd.f32 %v1109_v34, %v695_v41 }
  0xfa   :  { %v1269_v49 = vpop.f32.mrf.mxu0  ;;  %v868_v52 = vadd.f32 %v1623_v15, %v845_v40  ;;  %v583_v37 = vpop.f32.mrf.mxu1 }
  0xfb   :  { %1178 = vst [vmem:[%s1765_s8] sm:$0xff] %v1177_v44   ;;  %v696_v50 = vadd.f32 %v1603_v57, %v673_v45  ;;  %v568_v51 = vadd.f32 %v1268_v47, %v567_v43  ;;  %v1142_v53 = vpack.c.bf16 %v743_v48, %v742_v31  ;;  %v846_v55 = vmul.f32 %v1610_v3, %v743_v48  ;;  %v1217_v31 = vld [vmem:[%s1760_s6 + $0x20] sm:$0xff]  }
  0xfc   :  { %v1270_v56 = vpop.f32.mrf.mxu0  ;;  %v884_v7 = vmax.f32 %v868_v52, 0.0  ;;  %v1120_v40 = vunpack.c.l.bf16 %v1217_v31 }
  0xfd   :  { %v744_v59 = vadd.f32 %v1112_v46, %v696_v50  ;;  %v674_v60 = vmul.f32 %v1595_v54, %v568_v51  ;;  %v1271_v62 = vadd.f32 %v1270_v56, %v1269_v49  ;;  %1221 = vst [vmem:[%s1764_s7 + $0x8] sm:$0xff] %v1142_v53   ;;  %v869_v63 = vadd.f32 %v1623_v15, %v846_v55  ;;  %v1683_v50 = vpop.f32.mrf.mxu1 }
  0xfe   :  { %v1272_v1 = vpop.f32.mrf.mxu0  ;;  %v1121_v53 = vunpack.c.h.bf16 %v1217_v31 }
  0xff   :  { %v847_v2 = vmul.f32 %v1610_v3, %v744_v59  ;;  %v697_v4 = vadd.f32 %v1603_v57, %v674_v60  ;;  %v573_v6 = vadd.f32 %v1612_v5, %v1271_v62  ;;  %v885_v8 = vmax.f32 %v869_v63, 0.0 }
 0x100   :  { %v1273_v9 = vpop.f32.mrf.mxu0 }
 0x101   :  { %v745_v11 = vadd.f32 %v1113_v61, %v697_v4  ;;  %v675_v12 = vmul.f32 %v1595_v54, %v573_v6  ;;  %v1274_v14 = vadd.f32 %v1273_v9, %v1272_v1  ;;  %v1182_v16 = vpack.c.bf16 %v885_v8, %v884_v7  ;;  %v596_v4 = vpop.f32.mrf.mxu1 }
 0x102   :  { %v1275_v17 = vpop.f32.mrf.mxu0  ;;  %v870_v18 = vadd.f32 %v1623_v15, %v847_v2 }
 0x103   :  { %v1147_v19 = vpack.c.bf16 %v745_v11, %v744_v59  ;;  %v848_v20 = vmul.f32 %v1610_v3, %v745_v11  ;;  %v698_v21 = vadd.f32 %v1603_v57, %v675_v12  ;;  %1228 = vst [vmem:[%s1765_s8 + $0x8] sm:$0xff] %v1182_v16   ;;  %v576_v5 = vadd.f32 %v1338_v29, %v1274_v14  ;;  %v1218_v59 = vld [vmem:[%s1760_s6 + $0x28] sm:$0xff]  }
 0x104   :  { %v1276_v22 = vpop.f32.mrf.mxu0  ;;  %v886_v32 = vmax.f32 %v870_v18, 0.0  ;;  %v1124_v8 = vunpack.c.l.bf16 %v1218_v59  ;;  %v1346_v18 = vpop.f32.mrf.mxu1 }
 0x105   :  { %1222 = vst [vmem:[%s1764_s7 + $0x10] sm:$0xff] %v1147_v19   ;;  %v871_v24 = vadd.f32 %v1623_v15, %v848_v20  ;;  %v746_v25 = vadd.f32 %v1116_v13, %v698_v21  ;;  %v1277_v26 = vadd.f32 %v1276_v22, %v1275_v17  ;;  %v676_v27 = vmul.f32 %v1595_v54, %v576_v5 }
 0x106   :  { %v1278_v30 = vpop.f32.mrf.mxu0  ;;  %v1125_v22 = vunpack.c.h.bf16 %v1218_v59 }
 0x107   :  { %v887_v29 = vmax.f32 %v871_v24, 0.0  ;;  %v581_v33 = vadd.f32 %v1277_v26, %v580_v10  ;;  %v849_v34 = vmul.f32 %v1610_v3, %v746_v25  ;;  %v699_v35 = vadd.f32 %v1603_v57, %v676_v27 }
 0x108   :  { %v1279_v36 = vpop.f32.mrf.mxu0 }
 0x109   :  { %v1187_v38 = vpack.c.bf16 %v887_v29, %v886_v32  ;;  %v677_v39 = vmul.f32 %v1595_v54, %v581_v33  ;;  %v1280_v41 = vadd.f32 %v1279_v36, %v1278_v30  ;;  %v747_v42 = vadd.f32 %v1117_v28, %v699_v35  ;;  %v599_v32 = vpop.f32.mrf.mxu1 }
 0x10a   :  { %v1281_v43 = vpop.f32.mrf.mxu0  ;;  %v872_v46 = vadd.f32 %v1623_v15, %v849_v34 }
 0x10b   :  { %1229 = vst [vmem:[%s1765_s8 + $0x10] sm:$0xff] %v1187_v38   ;;  %v700_v44 = vadd.f32 %v1603_v57, %v677_v39  ;;  %v584_v45 = vadd.f32 %v1280_v41, %v583_v37  ;;  %v1152_v47 = vpack.c.bf16 %v747_v42, %v746_v25  ;;  %v850_v48 = vmul.f32 %v1610_v3, %v747_v42  ;;  %v1219_v25 = vld [vmem:[%s1760_s6 + $0x30] sm:$0xff]  }
 0x10c   :  { %v1282_v49 = vpop.f32.mrf.mxu0  ;;  %v888_v0 = vmax.f32 %v872_v46, 0.0  ;;  %v1128_v34 = vunpack.c.l.bf16 %v1219_v25  ;;  %v1129_v46 = vunpack.c.h.bf16 %v1219_v25 }
 0x10d   :  { %v748_v51 = vadd.f32 %v1120_v40, %v700_v44  ;;  %v678_v52 = vmul.f32 %v1595_v54, %v584_v45  ;;  %v1283_v55 = vadd.f32 %v1282_v49, %v1281_v43  ;;  %1223 = vst [vmem:[%s1764_s7 + $0x18] sm:$0xff] %v1152_v47   ;;  %v873_v56 = vadd.f32 %v1623_v15, %v850_v48  ;;  %v1220_v49 = vld [vmem:[%s1760_s6 + $0x38] sm:$0xff]  }
 0x10e   :  { %v1284_v60 = vpop.f32.mrf.mxu0 }
 0x10f   :  { %v851_v61 = vmul.f32 %v1610_v3, %v748_v51  ;;  %v701_v62 = vadd.f32 %v1603_v57, %v678_v52  ;;  %v589_v63 = vadd.f32 %v1646_v58, %v1283_v55  ;;  %v889_v1 = vmax.f32 %v873_v56, 0.0 }
 0x110   :  { %v1285_v2 = vpop.f32.mrf.mxu0 }
 0x111   :  { %v749_v6 = vadd.f32 %v1121_v53, %v701_v62  ;;  %v679_v7 = vmul.f32 %v1595_v54, %v589_v63  ;;  %v1286_v9 = vadd.f32 %v1285_v2, %v1284_v60  ;;  %v1192_v10 = vpack.c.bf16 %v889_v1, %v888_v0 }
 0x112   :  { %v1287_v11 = vpop.f32.mrf.mxu0  ;;  %v874_v12 = vadd.f32 %v1623_v15, %v851_v61  ;;  %v1132_v63 = vunpack.c.l.bf16 %v1220_v49 }
 0x113   :  { %v1157_v13 = vpack.c.bf16 %v749_v6, %v748_v51  ;;  %v852_v14 = vmul.f32 %v1610_v3, %v749_v6  ;;  %v702_v16 = vadd.f32 %v1603_v57, %v679_v7  ;;  %1230 = vst [vmem:[%s1765_s8 + $0x18] sm:$0xff] %v1192_v10   ;;  %v592_v58 = vadd.f32 %v1342_v23, %v1286_v9 }
 0x114   :  { %v1288_v17 = vpop.f32.mrf.mxu0  ;;  %v890_v26 = vmax.f32 %v874_v12, 0.0 }
 0x115   :  { %1224 = vst [vmem:[%s1764_s7 + $0x20] sm:$0xff] %v1157_v13   ;;  %v875_v19 = vadd.f32 %v1623_v15, %v852_v14  ;;  %v750_v20 = vadd.f32 %v1124_v8, %v702_v16  ;;  %v1289_v21 = vadd.f32 %v1288_v17, %v1287_v11  ;;  %v680_v5 = vmul.f32 %v1595_v54, %v592_v58 }
 0x116   :  { %v1290_v24 = vpop.f32.mrf.mxu0  ;;  %v1133_v11 = vunpack.c.h.bf16 %v1220_v49 }
 0x117   :  { %v891_v23 = vmax.f32 %v875_v19, 0.0  ;;  %v597_v27 = vadd.f32 %v1289_v21, %v596_v4  ;;  %v853_v28 = vmul.f32 %v1610_v3, %v750_v20  ;;  %v703_v30 = vadd.f32 %v1603_v57, %v680_v5 }
 0x118   :  { %v1291_v31 = vpop.f32.mrf.mxu0 }
 0x119   :  { %v1197_v29 = vpack.c.bf16 %v891_v23, %v890_v26  ;;  %v681_v33 = vmul.f32 %v1595_v54, %v597_v27  ;;  %v1292_v35 = vadd.f32 %v1291_v31, %v1290_v24  ;;  %v751_v36 = vadd.f32 %v1125_v22, %v703_v30 }
 0x11a   :  { %v1293_v37 = vpop.f32.mrf.mxu0  ;;  %v876_v40 = vadd.f32 %v1623_v15, %v853_v28 }
 0x11b   :  { %1231 = vst [vmem:[%s1765_s8 + $0x20] sm:$0xff] %v1197_v29   ;;  %v704_v38 = vadd.f32 %v1603_v57, %v681_v33  ;;  %v600_v39 = vadd.f32 %v1292_v35, %v599_v32  ;;  %v1162_v41 = vpack.c.bf16 %v751_v36, %v750_v20  ;;  %v854_v42 = vmul.f32 %v1610_v3, %v751_v36 }
 0x11c   :  { %v1294_v43 = vpop.f32.mrf.mxu0  ;;  %v892_v56 = vmax.f32 %v876_v40, 0.0 }
 0x11d   :  { %v752_v44 = vadd.f32 %v1128_v34, %v704_v38  ;;  %v682_v45 = vmul.f32 %v1595_v54, %v600_v39  ;;  %v1295_v47 = vadd.f32 %v1294_v43, %v1293_v37  ;;  %1225 = vst [vmem:[%s1764_s7 + $0x28] sm:$0xff] %v1162_v41   ;;  %v877_v48 = vadd.f32 %v1623_v15, %v854_v42 }
 0x11e   :  { %v1296_v51 = vpop.f32.mrf.mxu0 }
 0x11f   :  { %v855_v52 = vmul.f32 %v1610_v3, %v752_v44  ;;  %v705_v53 = vadd.f32 %v1603_v57, %v682_v45  ;;  %v605_v55 = vadd.f32 %v1683_v50, %v1295_v47  ;;  %v893_v59 = vmax.f32 %v877_v48, 0.0 }
 0x120   :  { %v1297_v60 = vpop.f32.mrf.mxu0 }
 0x121   :  { %v753_v61 = vadd.f32 %v1129_v46, %v705_v53  ;;  %v683_v62 = vmul.f32 %v1595_v54, %v605_v55  ;;  %v1298_v0 = vadd.f32 %v1297_v60, %v1296_v51  ;;  %v1202_v1 = vpack.c.bf16 %v893_v59, %v892_v56 }
 0x122   :  { %v878_v2 = vadd.f32 %v1623_v15, %v855_v52 }
 0x123   :  { %v1167_v4 = vpack.c.bf16 %v753_v61, %v752_v44  ;;  %v856_v6 = vmul.f32 %v1610_v3, %v753_v61  ;;  %v706_v7 = vadd.f32 %v1603_v57, %v683_v62  ;;  %1232 = vst [vmem:[%s1765_s8 + $0x28] sm:$0xff] %v1202_v1   ;;  %v608_v50 = vadd.f32 %v1346_v18, %v1298_v0 }
 0x124   :  { %v894_v12 = vmax.f32 %v878_v2, 0.0 }
 0x125   :  { %1226 = vst [vmem:[%s1764_s7 + $0x30] sm:$0xff] %v1167_v4   ;;  %v879_v8 = vadd.f32 %v1623_v15, %v856_v6  ;;  %v754_v9 = vadd.f32 %v1132_v63, %v706_v7  ;;  %v684_v10 = vmul.f32 %v1595_v54, %v608_v50 }
 0x127   :  { %v895_v13 = vmax.f32 %v879_v8, 0.0  ;;  %v857_v14 = vmul.f32 %v1610_v3, %v754_v9  ;;  %v707_v16 = vadd.f32 %v1603_v57, %v684_v10 }
 0x129   :  { %v1207_v58 = vpack.c.bf16 %v895_v13, %v894_v12  ;;  %v755_v17 = vadd.f32 %v1133_v11, %v707_v16  ;;  %v880_v18 = vadd.f32 %v1623_v15, %v857_v14 }
 0x12b   :  { %1233 = vst [vmem:[%s1765_s8 + $0x30] sm:$0xff] %v1207_v58   ;;  %v1172_v19 = vpack.c.bf16 %v755_v17, %v754_v9  ;;  %v858_v20 = vmul.f32 %v1610_v3, %v755_v17  ;;  %v896_v21 = vmax.f32 %v880_v18, 0.0 }
 0x12d   :  { %1227 = vst [vmem:[%s1764_s7 + $0x38] sm:$0xff] %v1172_v19   ;;  %v881_v54 = vadd.f32 %v1623_v15, %v858_v20 }
 0x12f   :  { %v897_v5 = vmax.f32 %v881_v54, 0.0 }
 0x131   :  { %v1212_v57 = vpack.c.bf16 %v897_v5, %v896_v21 }
 0x133   :  { %1234 = vst [vmem:[%s1765_s8 + $0x38] sm:$0xff] %v1212_v57  }

// kernel: wideresnet_forward.16
= control target key start
LH: loop header
LB: loop body
LE: loop exit
PB: predicated region body
PF: predicated region fallthrough
CT: control target
= control target key end

     0   :  { %s693_s1 = inlined_call_operand.vmem [shape: bf16[384,128], index: 1, kind: input, shape index: {}]   ;;  %s694_s0 = inlined_call_operand.vmem [shape: bf16[32,384], index: 0, kind: input, shape index: {}]   ;;  %s695_s2 = inlined_call_operand.vmem [shape: f32[1,128], index: 2, kind: input, shape index: {}]   ;;  %s696_s3 = inlined_call_operand.vmem [shape: f32[1,128], index: 3, kind: input, shape index: {}]   ;;  %s697_s4 = inlined_call_operand.vmem [shape: bf16[32,128], index: 4, kind: output, shape index: {}]  }
   0x1   :  { %v534_v0 = vld [vmem:[%s693_s1 + $0x78] sm:$0xff]   ;;  %v537_v3 = vld [vmem:[%s693_s1 + $0x70] sm:$0xff]   ;;  %v540_v6 = vld [vmem:[%s693_s1 + $0x68] sm:$0xff]  }
   0x2   :  { %v535_v1 = vld [vmem:[%s693_s1 + $0x38] sm:$0xff]   ;;  %476 = vmatprep.subr.bf16.mxu0 %v534_v0  ;;  %v538_v4 = vld [vmem:[%s693_s1 + $0x30] sm:$0xff]   ;;  %v541_v7 = vld [vmem:[%s693_s1 + $0x28] sm:$0xff]  }
   0x3   :  { %v536_v2 = vld [vmem:[%s693_s1 + $0xb8] sm:$0xff]   ;;  %477 = vmatpush3.bf16.msra.mxu0 %v535_v1  ;;  %v539_v5 = vld [vmem:[%s693_s1 + $0xb0] sm:$0xff]   ;;  %v542_v8 = vld [vmem:[%s693_s1 + $0xa8] sm:$0xff]  }
   0x4   :  { %514 = vmatprep.subr.bf16.mxu1 %v536_v2  ;;  %478 = vmatprep.subr.bf16.mxu0 %v537_v3  ;;  %v543_v9 = vld [vmem:[%s693_s1 + $0x60] sm:$0xff]   ;;  %v546_v12 = vld [vmem:[%s693_s1 + $0x58] sm:$0xff]   ;;  %v549_v15 = vld [vmem:[%s693_s1 + $0x50] sm:$0xff]  }
   0x5   :  { %515 = vmatpush3.bf16.msra.mxu1 %v536_v2  ;;  %v544_v10 = vld [vmem:[%s693_s1 + $0x20] sm:$0xff]   ;;  %v548_v13 = vld [vmem:[%s693_s1 + $0x98] sm:$0xff]   ;;  %v551_v16 = vld [vmem:[%s693_s1 + $0x90] sm:$0xff]  }
   0x6   :  { %516 = vmatprep.subr.bf16.mxu1 %v539_v5  ;;  %v545_v11 = vld [vmem:[%s693_s1 + $0xa0] sm:$0xff]   ;;  %v547_v14 = vld [vmem:[%s693_s1 + $0x18] sm:$0xff]   ;;  %v550_v17 = vld [vmem:[%s693_s1 + $0x10] sm:$0xff]  }
   0x7   :  { %479 = vmatpush3.bf16.msra.mxu0 %v538_v4  ;;  %v552_v18 = vld [vmem:[%s693_s1 + $0x48] sm:$0xff]   ;;  %v555_v21 = vld [vmem:[%s693_s1 + $0x40] sm:$0xff]  }
   0x8   :  { %480 = vmatprep.subr.bf16.mxu0 %v540_v6  ;;  %v553_v19 = vld [vmem:[%s693_s1 + $0x8] sm:$0xff]   ;;  %v557_v22 = vld [vmem:[%s693_s1 + $0x80] sm:$0xff]  }
   0x9   :  { %517 = vmatpush3.bf16.msra.mxu1 %v539_v5  ;;  %v554_v20 = vld [vmem:[%s693_s1 + $0x88] sm:$0xff]   ;;  %v560_v23 = vld [vmem:[%s694_s0 + $0x4] ss:$12 sps:$4 sm:$0xff]   ;;  %v455_v36 = vld [vmem:[%s695_s2] ss:$0 sm:$0xff] }
   0xa   :  { %518 = vmatprep.subr.bf16.mxu1 %v542_v8  ;;  %v561_v24 = vld [vmem:[%s694_s0 + $0x8] ss:$12 sps:$4 sm:$0xff]   ;;  %v556_v25 = vld [vmem:[%s693_s1] sm:$0xff]   ;;  %294 = vmatprep.mubr.bf16.mxu0 %v560_v23 }
   0xb   :  { %481 = vmatpush3.bf16.msra.mxu0 %v541_v7  ;;  %530 = vmatprep.mubr.bf16.mxu1 %v561_v24  ;;  %v558_v26 = vld [vmem:[%s694_s0] ss:$12 sps:$4 sm:$0xff]   ;;  %v563_v27 = vld [vmem:[%s694_s0 + $0x1c] ss:$12 sps:$4 sm:$0xff]   ;;  %v565_v29 = vld [vmem:[%s694_s0 + $0x18] ss:$12 sps:$4 sm:$0xff]  }
   0xc   :  { %482 = vmatprep.subr.bf16.mxu0 %v543_v9  ;;  %v562_v28 = vld [vmem:[%s694_s0 + $0x20] ss:$12 sps:$4 sm:$0xff]  }
   0xd   :  { %519 = vmatpush3.bf16.msra.mxu1 %v542_v8  ;;  %v456_v42 = vld [vmem:[%s696_s3] ss:$0 sm:$0xff] }
   0xe   :  { %520 = vmatprep.subr.bf16.mxu1 %v545_v11 }
   0xf   :  { %483 = vmatpush3.bf16.msra.mxu0 %v544_v10 }
  0x10   :  { %484 = vmatprep.subr.bf16.mxu0 %v546_v12 }
  0x11   :  { %521 = vmatpush3.bf16.msra.mxu1 %v545_v11 }
  0x12   :  { %522 = vmatprep.subr.bf16.mxu1 %v548_v13 }
  0x13   :  { %485 = vmatpush3.bf16.msra.mxu0 %v547_v14 }
  0x14   :  { %486 = vmatprep.subr.bf16.mxu0 %v549_v15 }
  0x15   :  { %523 = vmatpush3.bf16.msra.mxu1 %v548_v13 }
  0x16   :  { %524 = vmatprep.subr.bf16.mxu1 %v551_v16 }
  0x17   :  { %487 = vmatpush3.bf16.msra.mxu0 %v550_v17 }
  0x18   :  { %488 = vmatprep.subr.bf16.mxu0 %v552_v18 }
  0x19   :  { %525 = vmatpush3.bf16.msra.mxu1 %v551_v16 }
  0x1a   :  { %526 = vmatprep.subr.bf16.mxu1 %v554_v20 }
  0x1b   :  { %489 = vmatpush3.bf16.msra.mxu0 %v553_v19 }
  0x1c   :  { %490 = vmatprep.subr.bf16.mxu0 %v555_v21 }
  0x1d   :  { %527 = vmatpush3.bf16.msra.mxu1 %v554_v20 }
  0x1e   :  { %528 = vmatprep.subr.bf16.mxu1 %v557_v22 }
  0x1f   :  { %491 = vmatpush3.bf16.msra.mxu0 %v556_v25 }
  0x21   :  { %529 = vmatpush3.bf16.msra.mxu1 %v557_v22 }
  0x22   :  { %295 = vmatmul.mubr.bf16.vlgmr.msra.gmra.mxu0 %v558_v26 }
  0x23   :  { %302 = vmatprep.mubr.bf16.mxu0 %v563_v27 }
  0x24   :  { %531 = vmatmul.mubr.bf16.vlgmr.msra.gmra.mxu1 %v562_v28 }
  0x2a   :  { %303 = vmatmul.mubr.bf16.gmra.mxu0 %v565_v29 }
  0xe2   :  { %v492_v30 = vpop.f32.mrf.mxu0 }
  0xe4   :  { %v493_v31 = vpop.f32.mrf.mxu0  ;;  %v532_v32 = vpop.f32.mrf.mxu1 }
  0xe5   :  { %v494_v33 = vadd.f32 %v493_v31, %v492_v30 }
  0xe6   :  { %v495_v34 = vpop.f32.mrf.mxu0  ;;  %v345_v35 = vpop.f32.mrf.mxu1 }
  0xe7   :  { %v346_v37 = vadd.f32 %v494_v33, %v345_v35 }
  0xe8   :  { %v496_v38 = vpop.f32.mrf.mxu0  ;;  %v533_v39 = vpop.f32.mrf.mxu1 }
  0xe9   :  { %v382_v40 = vmul.f32 %v455_v36, %v346_v37  ;;  %v497_v41 = vadd.f32 %v496_v38, %v495_v34 }
  0xea   :  { %v498_v43 = vpop.f32.mrf.mxu0  ;;  %v348_v44 = vpop.f32.mrf.mxu1 }
  0xeb   :  { %v349_v45 = vadd.f32 %v497_v41, %v348_v44  ;;  %v393_v47 = vadd.f32 %v456_v42, %v382_v40 }
  0xec   :  { %v499_v46 = vpop.f32.mrf.mxu0 }
  0xed   :  { %v383_v48 = vmul.f32 %v455_v36, %v349_v45  ;;  %v500_v49 = vadd.f32 %v499_v46, %v498_v43  ;;  %v397_v54 = vmax.f32 %v393_v47, 0.0 }
  0xee   :  { %v501_v50 = vpop.f32.mrf.mxu0 }
  0xef   :  { %v394_v51 = vadd.f32 %v456_v42, %v383_v48  ;;  %v354_v52 = vadd.f32 %v532_v32, %v500_v49 }
  0xf0   :  { %v502_v53 = vpop.f32.mrf.mxu0 }
  0xf1   :  { %v398_v55 = vmax.f32 %v394_v51, 0.0  ;;  %v384_v56 = vmul.f32 %v455_v36, %v354_v52  ;;  %v503_v57 = vadd.f32 %v502_v53, %v501_v50 }
  0xf3   :  { %v468_v58 = vpack.c.bf16 %v398_v55, %v397_v54  ;;  %v357_v59 = vadd.f32 %v533_v39, %v503_v57  ;;  %v395_v60 = vadd.f32 %v456_v42, %v384_v56 }
  0xf5   :  { %469 = vst [vmem:[%s697_s4] sm:$0xff] %v468_v58   ;;  %v385_v61 = vmul.f32 %v455_v36, %v357_v59  ;;  %v399_v63 = vmax.f32 %v395_v60, 0.0 }
  0xf7   :  { %v396_v62 = vadd.f32 %v456_v42, %v385_v61 }
  0xf9   :  { %v400_v0 = vmax.f32 %v396_v62, 0.0 }
  0xfb   :  { %v473_v1 = vpack.c.bf16 %v400_v0, %v399_v63 }
  0xfd   :  { %475 = vst [vmem:[%s697_s4 + $0x8] sm:$0xff] %v473_v1  }

// kernel: wideresnet_forward.17
= control target key start
LH: loop header
LB: loop body
LE: loop exit
PB: predicated region body
PF: predicated region fallthrough
CT: control target
= control target key end

     0   :  { %s358_s1 = inlined_call_operand.vmem [shape: bf16[128,128], index: 1, kind: input, shape index: {}]   ;;  %s359_s0 = inlined_call_operand.vmem [shape: bf16[32,128], index: 0, kind: input, shape index: {}]   ;;  %s360_s2 = inlined_call_operand.vmem [shape: f32[1,128], index: 2, kind: input, shape index: {}]   ;;  %s361_s3 = inlined_call_operand.vmem [shape: f32[1,128], index: 3, kind: input, shape index: {}]   ;;  %s362_s4 = inlined_call_operand.vmem [shape: bf16[32,128], index: 4, kind: output, shape index: {}]  }
   0x1   :  { %v281_v0 = vld [vmem:[%s358_s1 + $0x38] sm:$0xff]   ;;  %v282_v1 = vld [vmem:[%s358_s1 + $0x30] sm:$0xff]   ;;  %v283_v2 = vld [vmem:[%s358_s1 + $0x28] sm:$0xff]  }
   0x2   :  { %261 = vmatprep.subr.bf16.mxu0 %v281_v0  ;;  %v284_v3 = vld [vmem:[%s358_s1 + $0x20] sm:$0xff]   ;;  %v285_v5 = vld [vmem:[%s358_s1 + $0x18] sm:$0xff]   ;;  %v286_v6 = vld [vmem:[%s358_s1 + $0x10] sm:$0xff]  }
   0x3   :  { %262 = vmatpush3.bf16.msra.mxu0 %v281_v0  ;;  %v289_v4 = vld [vmem:[%s359_s0] sm:$0xff]   ;;  %v287_v7 = vld [vmem:[%s358_s1 + $0x8] sm:$0xff]  }
   0x4   :  { %263 = vmatprep.subr.bf16.mxu0 %v282_v1  ;;  %277 = vmatprep.mubr.bf16.mxu0 %v289_v4  ;;  %v288_v8 = vld [vmem:[%s358_s1] sm:$0xff]   ;;  %v290_v9 = vld [vmem:[%s359_s0 + $0x8] sm:$0xff]  }
   0x5   :  { %v230_v11 = vld [vmem:[%s360_s2] ss:$0 sm:$0xff] }
   0x6   :  { %v231_v14 = vld [vmem:[%s361_s3] ss:$0 sm:$0xff] }
   0x7   :  { %264 = vmatpush3.bf16.msra.mxu0 %v282_v1 }
   0x8   :  { %265 = vmatprep.subr.bf16.mxu0 %v283_v2 }
   0xb   :  { %266 = vmatpush3.bf16.msra.mxu0 %v283_v2 }
   0xc   :  { %267 = vmatprep.subr.bf16.mxu0 %v284_v3 }
   0xf   :  { %268 = vmatpush3.bf16.msra.mxu0 %v284_v3 }
  0x10   :  { %269 = vmatprep.subr.bf16.mxu0 %v285_v5 }
  0x13   :  { %270 = vmatpush3.bf16.msra.mxu0 %v285_v5 }
  0x14   :  { %271 = vmatprep.subr.bf16.mxu0 %v286_v6 }
  0x17   :  { %272 = vmatpush3.bf16.msra.mxu0 %v286_v6 }
  0x18   :  { %273 = vmatprep.subr.bf16.mxu0 %v287_v7 }
  0x1b   :  { %274 = vmatpush3.bf16.msra.mxu0 %v287_v7 }
  0x1c   :  { %275 = vmatprep.subr.bf16.mxu0 %v288_v8 }
  0x1f   :  { %276 = vmatpush3.bf16.msra.mxu0 %v288_v8 }
  0x22   :  { %278 = vmatmul.mubr.bf16.vlgmr.msra.gmra.mxu0 %v290_v9 }
  0xe2   :  { %v279_v10 = vpop.f32.mrf.mxu0 }
  0xe3   :  { %v183_v13 = vmul.f32 %v279_v10, %v230_v11 }
  0xe4   :  { %v144_v12 = vpop.f32.mrf.mxu0 }
  0xe5   :  { %v181_v16 = vmul.f32 %v230_v11, %v144_v12  ;;  %v194_v19 = vadd.f32 %v231_v14, %v183_v13 }
  0xe6   :  { %v280_v15 = vpop.f32.mrf.mxu0 }
  0xe7   :  { %v184_v17 = vmul.f32 %v280_v15, %v230_v11  ;;  %v192_v22 = vadd.f32 %v231_v14, %v181_v16 }
  0xe8   :  { %v147_v18 = vpop.f32.mrf.mxu0 }
  0xe9   :  { %v195_v20 = vadd.f32 %v231_v14, %v184_v17  ;;  %v182_v21 = vmul.f32 %v230_v11, %v147_v18 }
  0xeb   :  { %v248_v23 = vpack.c.bf16 %v195_v20, %v194_v19  ;;  %v193_v24 = vadd.f32 %v231_v14, %v182_v21 }
  0xed   :  { %250 = vst [vmem:[%s362_s4 + $0x8] sm:$0xff] %v248_v23   ;;  %v243_v25 = vpack.c.bf16 %v193_v24, %v192_v22 }
  0xef   :  { %244 = vst [vmem:[%s362_s4] sm:$0xff] %v243_v25  }

// kernel: wideresnet_forward.19
= control target key start
LH: loop header
LB: loop body
LE: loop exit
PB: predicated region body
PF: predicated region fallthrough
CT: control target
= control target key end

     0   :  { %v250_v1 = vmov 0.0   ;;  %vm251_vm0 = vmmov 0   ;;  %s351_s0 = inlined_call_operand.vmem [shape: bf16[2,16,128], index: 0, kind: input, shape index: {}]   ;;  %s352_s1 = inlined_call_operand.vmem [shape: f32[128,128], index: 1, kind: input, shape index: {}]   ;;  %s353_s2 = inlined_call_operand.vmem [shape: f32[1,128], index: 2, kind: input, shape index: {}]   ;;  %s354_s3 = inlined_call_operand.hbm [shape: f32[2,128], index: 3, kind: output, shape index: {}]  }
   0x1   :  { %v70_v0 = vld [vmem:[%s352_s1 + $0x78] sm:$0xff]  ;;  %190 = vmatprep.subr.mxu0 %v250_v1  ;;  %19 = vst [vmem:[#allocation2] sm:$0x3] %v250_v1  ;;  %v69_v2 = vld [vmem:[%s352_s1 + $0x70] sm:$0xff]  ;;  %222 = vmatprep.mubr.msk.f32.mxu0 %vm251_vm0, %v250_v1  ;;  %v68_v3 = vld [vmem:[%s352_s1 + $0x68] sm:$0xff] }
   0x2   :  { %191 = vmatpush3.msra.mxu0 %v70_v0  ;;  %v67_v4 = vld [vmem:[%s352_s1 + $0x60] sm:$0xff]  ;;  %v172_v6 = vld [vmem:[%s351_s0 + $0x8] sm:$0xff]  }
   0x3   :  { %192 = vmatprep.subr.mxu0 %v250_v1  ;;  %v165_v5 = vld [vmem:[%s351_s0] sm:$0xff]   ;;  %v170_v9 = vunpack.c.l.bf16 %v172_v6  ;;  %v171_v10 = vunpack.c.h.bf16 %v172_v6 }
   0x4   :  { %193 = vmatpush3.msra.mxu0 %v69_v2  ;;  %v166_v7 = vunpack.c.l.bf16 %v165_v5  ;;  %v167_v8 = vunpack.c.h.bf16 %v165_v5 }
   0x5   :  { %194 = vmatprep.subr.mxu0 %v250_v1 }
   0x6   :  { %195 = vmatpush3.msra.mxu0 %v68_v3 }
   0x7   :  { %8 = vsyncpa [#allocation4], 0  ;;  %196 = vmatprep.subr.mxu0 %v250_v1  ;;  %v66_v11 = vld [vmem:[%s352_s1 + $0x58] sm:$0xff]  ;;  %v29_v12 = vadd.f32 %v167_v8, %v166_v7  ;;  %v36_v13 = vadd.f32 %v171_v10, %v170_v9  ;;  %v65_v14 = vld [vmem:[%s352_s1 + $0x50] sm:$0xff]  ;;  %vm45_vm1 = vcmask 1041409   ;;  %s252_s22 = smov [#allocation3]  }
   0x8   :  { %197 = vmatpush3.msra.mxu0 %v67_v4  ;;  %v64_v17 = vld [vmem:[%s352_s1 + $0x48] sm:$0xff]  ;;  %v63_v20 = vld [vmem:[%s352_s1 + $0x40] sm:$0xff]  ;;  %v62_v23 = vld [vmem:[%s352_s1 + $0x38] sm:$0xff]  ;;  %s155_s23 = sshll.u32 %s252_s22, 4  ;;  %s156_s23 = int_to_ptr.vmem [resolvable:$true] %s155_s23 }
   0x9   :  { %198 = vmatprep.subr.mxu0 %v250_v1  ;;  %v30_v15 = vrot.slane %v29_v12, 4  ;;  %v37_v16 = vrot.slane %v36_v13, 4  ;;  %v61_v26 = vld [vmem:[%s352_s1 + $0x30] sm:$0xff]  ;;  %v60_v29 = vld [vmem:[%s352_s1 + $0x28] sm:$0xff]  ;;  %v20_v30 = vld [vmem:[#allocation2] sm:$0x3]  ;;  %p233_p1 = scmp.lt.s32.totalorder %s156_s23, %s156_s23 }
   0xa   :  { %199 = vmatpush3.msra.mxu0 %v66_v11  ;;  %v59_v33 = vld [vmem:[%s352_s1 + $0x20] sm:$0xff]  ;;  %v58_v35 = vld [vmem:[%s352_s1 + $0x18] sm:$0xff]  ;;  %v57_v37 = vld [vmem:[%s352_s1 + $0x10] sm:$0xff]  ;;  %s228_s24 = scalar_lea.vmem %s156_s23, 32 }
   0xb   :  { %200 = vmatprep.subr.mxu0 %v250_v1  ;;  %v31_v18 = vadd.f32 %v30_v15, %v29_v12  ;;  %v38_v19 = vadd.f32 %v37_v16, %v36_v13  ;;  %v56_v38 = vld [vmem:[%s352_s1 + $0x8] sm:$0xff]  ;;  %v55_v39 = vld [vmem:[%s352_s1] sm:$0xff]  ;;  %p229_p0 = scmp.ne.s32.totalorder %s156_s23, %s228_s24  ;;  %p234_p2 = scmp.lt.s32.totalorder %s228_s24, %s228_s24 }
   0xc   :  { %201 = vmatpush3.msra.mxu0 %v65_v14  ;;  %v163_v42 = vld [vmem:[%s353_s2] ss:$0 sm:$0xff] }
   0xd   :  { %202 = vmatprep.subr.mxu0 %v250_v1  ;;  %v32_v21 = vrot.slane %v31_v18, 2  ;;  %v39_v22 = vrot.slane %v38_v19, 2  ;;  %p235_p3 = por %p234_p2, %p233_p1 }
   0xe   :  { %203 = vmatpush3.msra.mxu0 %v64_v17 }
   0xf   :  { %204 = vmatprep.subr.mxu0 %v250_v1  ;;  %v33_v24 = vadd.f32 %v32_v21, %v31_v18  ;;  %v40_v25 = vadd.f32 %v39_v22, %v38_v19  ;;  %p236_p4 = pnand %p235_p3, %p229_p0 }
  0x10   :  { %205 = vmatpush3.msra.mxu0 %v63_v20 }
  0x11   :  { %206 = vmatprep.subr.mxu0 %v250_v1  ;;  %v34_v27 = vrot.slane %v33_v24, 1  ;;  %v41_v28 = vrot.slane %v40_v25, 1 }
  0x12   :  { %207 = vmatpush3.msra.mxu0 %v62_v23 }
  0x13   :  { %208 = vmatprep.subr.mxu0 %v250_v1  ;;  %v35_v31 = vadd.f32 %v34_v27, %v33_v24  ;;  %v42_v32 = vadd.f32 %v41_v28, %v40_v25 }
  0x14   :  { %209 = vmatpush3.msra.mxu0 %v61_v26 }
  0x15   :  { %210 = vmatprep.subr.mxu0 %v250_v1  ;;  %v46_v34 = vsel %vm45_vm1, %v42_v32, %v35_v31 }
  0x16   :  { %211 = vmatpush3.msra.mxu0 %v60_v29  ;;  %v48_v36 = vadd.f32 %v46_v34, %v20_v30 }
  0x17   :  { %212 = vmatprep.subr.mxu0 %v250_v1 }
  0x18   :  { %213 = vmatpush3.msra.mxu0 %v59_v33  ;;  %49 = vst [vmem:[#allocation2] sm:$0x3] %v48_v36 }
  0x19   :  { %214 = vmatprep.subr.mxu0 %v250_v1 }
  0x1a   :  { %215 = vmatpush3.msra.mxu0 %v58_v35 }
  0x1b   :  { %216 = vmatprep.subr.mxu0 %v250_v1 }
  0x1c   :  { %217 = vmatpush3.msra.mxu0 %v57_v37 }
  0x1d   :  { %218 = vmatprep.subr.mxu0 %v250_v1 }
  0x1e   :  { %219 = vmatpush3.msra.mxu0 %v56_v38 }
  0x1f   :  { %220 = vmatprep.subr.mxu0 %v250_v1  ;;  %v53_v40 = vld [vmem:[#allocation2] sm:$0x3] }
  0x20   :  { %221 = vmatpush3.msra.mxu0 %v55_v39  ;;  %v54_v41 = vmul.f32 0.0625, %v53_v40 }
  0x22   :  { %223 = vmatmul.mubr.f32.vlgmr.msra.gmra.mxu0 %v54_v41 }
  0xe2   :  { %v144_v43 = vpop.f32.mrf.mxu0 }
  0xe3   :  { %v145_v44 = vadd.f32 %v163_v42, %v144_v43 }
  0xe4   :  { %v224_v45 = vpop.f32.mrf.mxu0 }
  0xe5   :  { %148 = vst [vmem:[#allocation3] sm:$0x3] %v145_v44 }
  0xe6   :  { %239 = shalt.err (!%p236_p4)
}
  0xe7   :  { %158 = dma.vmem_to_hbm [thread:$0]  %s156_s23, 32, %s354_s3, [#allocation4]  }
  0xe8   :  { %248 = dma.done.wait [#allocation4], 32  }
  0xe9   :  { %249 = vsyncadd [#allocation4], 4294967264 }
  0xea   :  { %162 = vsyncpa [#allocation4], 1 }

// kernel: wideresnet_forward.18
= control target key start
LH: loop header
LB: loop body
LE: loop exit
PB: predicated region body
PF: predicated region fallthrough
CT: control target
= control target key end

     0   :  { %s1199_s0 = inlined_call_operand.vmem [shape: bf16[32,640], index: 0, kind: input, shape index: {}]   ;;  %s1200_s1 = inlined_call_operand.vmem [shape: bf16[640,128], index: 1, kind: input, shape index: {}]   ;;  %s1201_s2 = inlined_call_operand.vmem [shape: f32[1,128], index: 2, kind: input, shape index: {}]   ;;  %s1202_s3 = inlined_call_operand.vmem [shape: f32[1,128], index: 3, kind: input, shape index: {}]   ;;  %s1203_s4 = inlined_call_operand.vmem [shape: f32[1,128], index: 4, kind: input, shape index: {}]   ;;  %s1204_s5 = inlined_call_operand.vmem [shape: f32[1,128], index: 5, kind: input, shape index: {}]   ;;  %s1205_s6 = inlined_call_operand.vmem [shape: bf16[32,128], index: 6, kind: input, shape index: {}]   ;;  %s1206_s7 = inlined_call_operand.hbm [shape: bf16[32,128], index: 7, kind: output, shape index: {0}]   ;;  %s1207_s8 = inlined_call_operand.vmem [shape: bf16[32,128], index: 8, kind: output, shape index: {1}]  }
   0x1   :  { %v898_v0 = vld [vmem:[%s1200_s1 + $0x78] sm:$0xff]   ;;  %v902_v4 = vld [vmem:[%s1200_s1 + $0x70] sm:$0xff]   ;;  %v906_v8 = vld [vmem:[%s1200_s1 + $0x68] sm:$0xff]  }
   0x2   :  { %v899_v1 = vld [vmem:[%s1200_s1 + $0xf8] sm:$0xff]   ;;  %809 = vmatprep.subr.bf16.mxu0 %v898_v0  ;;  %v903_v5 = vld [vmem:[%s1200_s1 + $0xf0] sm:$0xff]   ;;  %v907_v9 = vld [vmem:[%s1200_s1 + $0xe8] sm:$0xff]  }
   0x3   :  { %v900_v2 = vld [vmem:[%s1200_s1 + $0x38] sm:$0xff]   ;;  %837 = vmatprep.subr.bf16.mxu1 %v899_v1  ;;  %v904_v6 = vld [vmem:[%s1200_s1 + $0x30] sm:$0xff]   ;;  %v908_v10 = vld [vmem:[%s1200_s1 + $0x28] sm:$0xff]  }
   0x4   :  { %v901_v3 = vld [vmem:[%s1200_s1 + $0xb8] sm:$0xff]   ;;  %810 = vmatpush3.bf16.msra.mxu0 %v900_v2  ;;  %v905_v7 = vld [vmem:[%s1200_s1 + $0xb0] sm:$0xff]   ;;  %v909_v11 = vld [vmem:[%s1200_s1 + $0xa8] sm:$0xff]  }
   0x5   :  { %838 = vmatpush3.bf16.msra.mxu1 %v901_v3  ;;  %811 = vmatprep.subr.bf16.mxu0 %v902_v4  ;;  %v910_v12 = vld [vmem:[%s1200_s1 + $0x60] sm:$0xff]   ;;  %v914_v16 = vld [vmem:[%s1200_s1 + $0x58] sm:$0xff]   ;;  %v918_v20 = vld [vmem:[%s1200_s1 + $0x50] sm:$0xff]  }
   0x6   :  { %839 = vmatprep.subr.bf16.mxu1 %v903_v5  ;;  %v911_v13 = vld [vmem:[%s1200_s1 + $0xe0] sm:$0xff]   ;;  %v915_v17 = vld [vmem:[%s1200_s1 + $0xd8] sm:$0xff]   ;;  %v919_v21 = vld [vmem:[%s1200_s1 + $0xd0] sm:$0xff]  }
   0x7   :  { %v912_v14 = vld [vmem:[%s1200_s1 + $0x20] sm:$0xff]   ;;  %v916_v18 = vld [vmem:[%s1200_s1 + $0x18] sm:$0xff]   ;;  %v920_v22 = vld [vmem:[%s1200_s1 + $0x10] sm:$0xff]  }
   0x8   :  { %812 = vmatpush3.bf16.msra.mxu0 %v904_v6  ;;  %v913_v15 = vld [vmem:[%s1200_s1 + $0xa0] sm:$0xff]   ;;  %v917_v19 = vld [vmem:[%s1200_s1 + $0x98] sm:$0xff]   ;;  %v921_v23 = vld [vmem:[%s1200_s1 + $0x90] sm:$0xff]  }
   0x9   :  { %840 = vmatpush3.bf16.msra.mxu1 %v905_v7  ;;  %813 = vmatprep.subr.bf16.mxu0 %v906_v8  ;;  %v922_v24 = vld [vmem:[%s1200_s1 + $0x48] sm:$0xff]   ;;  %v926_v28 = vld [vmem:[%s1200_s1 + $0x40] sm:$0xff]   ;;  %v936_v36 = vld [vmem:[%s1200_s1 + $0x138] sm:$0xff]  }
   0xa   :  { %841 = vmatprep.subr.bf16.mxu1 %v907_v9  ;;  %v923_v25 = vld [vmem:[%s1200_s1 + $0xc8] sm:$0xff]   ;;  %v927_v29 = vld [vmem:[%s1200_s1 + $0xc0] sm:$0xff]   ;;  %v937_v37 = vld [vmem:[%s1200_s1 + $0x130] sm:$0xff]  }
   0xb   :  { %v924_v26 = vld [vmem:[%s1200_s1 + $0x8] sm:$0xff]   ;;  %v928_v30 = vld [vmem:[%s1200_s1] sm:$0xff]   ;;  %v940_v45 = vld [vmem:[%s1200_s1 + $0x118] sm:$0xff]  }
   0xc   :  { %814 = vmatpush3.bf16.msra.mxu0 %v908_v10  ;;  %v925_v27 = vld [vmem:[%s1200_s1 + $0x88] sm:$0xff]   ;;  %v929_v31 = vld [vmem:[%s1200_s1 + $0x80] sm:$0xff]  }
   0xd   :  { %842 = vmatpush3.bf16.msra.mxu1 %v909_v11  ;;  %815 = vmatprep.subr.bf16.mxu0 %v910_v12  ;;  %v930_v32 = vld [vmem:[%s1199_s0] ss:$20 sps:$4 sm:$0xff]   ;;  %v932_v33 = vld [vmem:[%s1199_s0 + $0x4] ss:$20 sps:$4 sm:$0xff]   ;;  %v933_v34 = vld [vmem:[%s1199_s0 + $0x8] ss:$20 sps:$4 sm:$0xff]  }
   0xe   :  { %843 = vmatprep.subr.bf16.mxu1 %v911_v13  ;;  %v935_v35 = vld [vmem:[%s1199_s0 + $0xc] ss:$20 sps:$4 sm:$0xff]   ;;  %458 = vmatprep.mubr.bf16.mxu0 %v932_v33  ;;  %v943_v40 = vld [vmem:[%s1199_s0 + $0x34] ss:$20 sps:$4 sm:$0xff]   ;;  %v946_v42 = vld [vmem:[%s1199_s0 + $0x30] ss:$20 sps:$4 sm:$0xff]  }
   0xf   :  { %507 = vmatprep.mubr.bf16.mxu1 %v935_v35  ;;  %v938_v38 = vld [vmem:[%s1200_s1 + $0x128] sm:$0xff]   ;;  %v939_v43 = vld [vmem:[%s1200_s1 + $0x120] sm:$0xff]  }
  0x10   :  { %816 = vmatpush3.bf16.msra.mxu0 %v912_v14  ;;  %v941_v39 = vld [vmem:[%s1199_s0 + $0x2c] ss:$20 sps:$4 sm:$0xff]   ;;  %v945_v41 = vld [vmem:[%s1199_s0 + $0x28] ss:$20 sps:$4 sm:$0xff]   ;;  %v950_v44 = vld [vmem:[%s1199_s0 + $0x10] ss:$20 sps:$4 sm:$0xff]  }
  0x11   :  { %844 = vmatpush3.bf16.msra.mxu1 %v913_v15  ;;  %817 = vmatprep.subr.bf16.mxu0 %v914_v16 }
  0x12   :  { %845 = vmatprep.subr.bf16.mxu1 %v915_v17 }
  0x14   :  { %818 = vmatpush3.bf16.msra.mxu0 %v916_v18 }
  0x15   :  { %846 = vmatpush3.bf16.msra.mxu1 %v917_v19  ;;  %819 = vmatprep.subr.bf16.mxu0 %v918_v20 }
  0x16   :  { %847 = vmatprep.subr.bf16.mxu1 %v919_v21 }
  0x18   :  { %820 = vmatpush3.bf16.msra.mxu0 %v920_v22 }
  0x19   :  { %848 = vmatpush3.bf16.msra.mxu1 %v921_v23  ;;  %821 = vmatprep.subr.bf16.mxu0 %v922_v24 }
  0x1a   :  { %849 = vmatprep.subr.bf16.mxu1 %v923_v25 }
  0x1c   :  { %822 = vmatpush3.bf16.msra.mxu0 %v924_v26 }
  0x1d   :  { %850 = vmatpush3.bf16.msra.mxu1 %v925_v27  ;;  %823 = vmatprep.subr.bf16.mxu0 %v926_v28 }
  0x1e   :  { %851 = vmatprep.subr.bf16.mxu1 %v927_v29 }
  0x20   :  { %824 = vmatpush3.bf16.msra.mxu0 %v928_v30 }
  0x21   :  { %852 = vmatpush3.bf16.msra.mxu1 %v929_v31  ;;  %875 = vmatprep.subr.bf16.mxu0 %v936_v36 }
  0x23   :  { %459 = vmatmul.mubr.bf16.vlgmr.msra.gmra.mxu0 %v930_v32 }
  0x24   :  { %508 = vmatmul.mubr.bf16.vlgmr.msra.gmra.mxu1 %v933_v34  ;;  %876 = vmatpush3.bf16.msra.mxu0 %v936_v36 }
  0x25   :  { %877 = vmatprep.subr.bf16.mxu0 %v937_v37  ;;  %466 = vmatprep.mubr.bf16.mxu0 %v941_v39 }
  0x26   :  { %515 = vmatprep.mubr.bf16.mxu1 %v943_v40 }
  0x28   :  { %878 = vmatpush3.bf16.msra.mxu0 %v937_v37 }
  0x29   :  { %879 = vmatprep.subr.bf16.mxu0 %v938_v38 }
  0x2b   :  { %467 = vmatmul.mubr.bf16.gmra.mxu0 %v945_v41 }
  0x2c   :  { %516 = vmatmul.mubr.bf16.gmra.mxu1 %v946_v42  ;;  %880 = vmatpush3.bf16.msra.mxu0 %v938_v38 }
  0x2d   :  { %881 = vmatprep.subr.bf16.mxu0 %v939_v43 }
  0x2e   :  { %14 = vsyncpa [#allocation4], 0  ;;  %891 = vmatprep.mubr.bf16.mxu0 %v950_v44  ;;  %v947_v46 = vld [vmem:[%s1200_s1 + $0x110] sm:$0xff]   ;;  %v948_v47 = vld [vmem:[%s1200_s1 + $0x108] sm:$0xff]   ;;  %s974_s24 = smov [#allocation3]  }
  0x2f   :  { %v949_v48 = vld [vmem:[%s1200_s1 + $0x100] sm:$0xff]   ;;  %v951_v49 = vld [vmem:[%s1199_s0 + $0x38] ss:$20 sps:$4 sm:$0xff]  }
  0x30   :  { %882 = vmatpush3.bf16.msra.mxu0 %v939_v43  ;;  %v758_v10 = vld [vmem:[%s1201_s2] ss:$0 sm:$0xff]  ;;  %v806_v11 = vld [vmem:[%s1205_s6 + $0x8] sm:$0xff]  }
  0x31   :  { %883 = vmatprep.subr.bf16.mxu0 %v940_v45  ;;  %v779_v16 = vld [vmem:[%s1205_s6] sm:$0xff]   ;;  %v784_v20 = vunpack.c.l.bf16 %v806_v11  ;;  %v785_v30 = vunpack.c.h.bf16 %v806_v11 }
  0x32   :  { %v759_v17 = vld [vmem:[%s1202_s3] ss:$0 sm:$0xff]  ;;  %v780_v23 = vunpack.c.l.bf16 %v779_v16  ;;  %v781_v41 = vunpack.c.h.bf16 %v779_v16 }
  0x33   :  { %v764_v29 = vld [vmem:[%s1203_s4] ss:$0 sm:$0xff]  ;;  %s693_s4 = sshll.u32 %s974_s24, 4  ;;  %s694_s4 = int_to_ptr.vmem [resolvable:$true] %s693_s4 }
  0x34   :  { %884 = vmatpush3.bf16.msra.mxu0 %v940_v45  ;;  %v765_v40 = vld [vmem:[%s1204_s5] ss:$0 sm:$0xff]  ;;  %s952_s5 = scalar_lea.vmem %s694_s4, 256  ;;  %p957_p1 = scmp.lt.s32.totalorder %s694_s4, %s694_s4 }
  0x35   :  { %885 = vmatprep.subr.bf16.mxu0 %v947_v46  ;;  %p953_p0 = scmp.ne.s32.totalorder %s694_s4, %s952_s5  ;;  %p958_p2 = scmp.lt.s32.totalorder %s952_s5, %s952_s5 }
  0x37   :  { %p959_p3 = por %p958_p2, %p957_p1 }
  0x38   :  { %886 = vmatpush3.bf16.msra.mxu0 %v947_v46 }
  0x39   :  { %887 = vmatprep.subr.bf16.mxu0 %v948_v47  ;;  %p960_p4 = pnand %p959_p3, %p953_p0 }
  0x3c   :  { %888 = vmatpush3.bf16.msra.mxu0 %v948_v47 }
  0x3d   :  { %889 = vmatprep.subr.bf16.mxu0 %v949_v48 }
  0x40   :  { %890 = vmatpush3.bf16.msra.mxu0 %v949_v48 }
  0x43   :  { %892 = vmatmul.mubr.bf16.vlgmr.msra.gmra.mxu0 %v951_v49 }
  0xe3   :  { %v825_v50 = vpop.f32.mrf.mxu0 }
  0xe4   :  { %v853_v51 = vpop.f32.mrf.mxu1 }
  0xe5   :  { %v826_v52 = vpop.f32.mrf.mxu0 }
  0xe6   :  { %v854_v53 = vpop.f32.mrf.mxu1  ;;  %v827_v4 = vadd.f32 %v826_v52, %v825_v50 }
  0xe7   :  { %v828_v54 = vpop.f32.mrf.mxu0  ;;  %v855_v5 = vadd.f32 %v854_v53, %v853_v51 }
  0xe8   :  { %v856_v55 = vpop.f32.mrf.mxu1 }
  0xe9   :  { %v829_v56 = vpop.f32.mrf.mxu0  ;;  %v510_v15 = vadd.f32 %v855_v5, %v827_v4 }
  0xea   :  { %v857_v57 = vpop.f32.mrf.mxu1  ;;  %v830_v12 = vadd.f32 %v829_v56, %v828_v54 }
  0xeb   :  { %v831_v58 = vpop.f32.mrf.mxu0  ;;  %v858_v13 = vadd.f32 %v857_v57, %v856_v55 }
  0xec   :  { %v859_v59 = vpop.f32.mrf.mxu1 }
  0xed   :  { %v832_v60 = vpop.f32.mrf.mxu0  ;;  %v513_v28 = vadd.f32 %v858_v13, %v830_v12 }
  0xee   :  { %v860_v61 = vpop.f32.mrf.mxu1  ;;  %v833_v0 = vadd.f32 %v832_v60, %v831_v58 }
  0xef   :  { %v834_v62 = vpop.f32.mrf.mxu0  ;;  %v861_v1 = vadd.f32 %v860_v61, %v859_v59 }
  0xf0   :  { %v862_v63 = vpop.f32.mrf.mxu1 }
  0xf1   :  { %v835_v2 = vpop.f32.mrf.mxu0  ;;  %v518_v8 = vadd.f32 %v861_v1, %v833_v0 }
  0xf2   :  { %v863_v3 = vpop.f32.mrf.mxu1  ;;  %v836_v6 = vadd.f32 %v835_v2, %v834_v62 }
  0xf3   :  { %v864_v7 = vadd.f32 %v863_v3, %v862_v63 }
  0xf5   :  { %v521_v22 = vadd.f32 %v864_v7, %v836_v6 }
 0x103   :  { %v893_v9 = vpop.f32.mrf.mxu0 }
 0x104   :  { %v567_v14 = vadd.f32 %v893_v9, %v518_v8 }
 0x105   :  { %v558_v18 = vpop.f32.mrf.mxu0 }
 0x106   :  { %v597_v19 = vmul.f32 %v758_v10, %v567_v14  ;;  %v559_v21 = vadd.f32 %v558_v18, %v510_v15 }
 0x107   :  { %v894_v24 = vpop.f32.mrf.mxu0 }
 0x108   :  { %v608_v25 = vadd.f32 %v759_v17, %v597_v19  ;;  %v595_v26 = vmul.f32 %v758_v10, %v559_v21  ;;  %v570_v27 = vadd.f32 %v894_v24, %v521_v22 }
 0x109   :  { %v561_v31 = vpop.f32.mrf.mxu0 }
 0x10a   :  { %v620_v32 = vadd.f32 %v784_v20, %v608_v25  ;;  %v606_v33 = vadd.f32 %v759_v17, %v595_v26  ;;  %v598_v34 = vmul.f32 %v758_v10, %v570_v27  ;;  %v562_v35 = vadd.f32 %v561_v31, %v513_v28 }
 0x10c   :  { %v651_v36 = vmul.f32 %v764_v29, %v620_v32  ;;  %v618_v37 = vadd.f32 %v780_v23, %v606_v33  ;;  %v609_v38 = vadd.f32 %v759_v17, %v598_v34  ;;  %v596_v39 = vmul.f32 %v758_v10, %v562_v35 }
 0x10e   :  { %v621_v42 = vadd.f32 %v785_v30, %v609_v38  ;;  %v607_v43 = vadd.f32 %v759_v17, %v596_v39  ;;  %v649_v44 = vmul.f32 %v764_v29, %v618_v37  ;;  %v662_v45 = vadd.f32 %v765_v40, %v651_v36 }
 0x110   :  { %v794_v46 = vpack.c.bf16 %v621_v42, %v620_v32  ;;  %v652_v47 = vmul.f32 %v764_v29, %v621_v42  ;;  %v619_v48 = vadd.f32 %v781_v41, %v607_v43  ;;  %v660_v50 = vadd.f32 %v765_v40, %v649_v44 }
 0x111   :  { %v666_v53 = vmax.f32 %v662_v45, 0.0 }
 0x112   :  { %v663_v49 = vadd.f32 %v765_v40, %v652_v47  ;;  %807 = vst [vmem:[#allocation3 + $0x8] sm:$0xff] %v794_v46   ;;  %v789_v51 = vpack.c.bf16 %v619_v48, %v618_v37  ;;  %v650_v52 = vmul.f32 %v764_v29, %v619_v48 }
 0x114   :  { %v667_v54 = vmax.f32 %v663_v49, 0.0  ;;  %v661_v55 = vadd.f32 %v765_v40, %v650_v52  ;;  %790 = vst [vmem:[#allocation3] sm:$0xff] %v789_v51  }
 0x116   :  { %v804_v56 = vpack.c.bf16 %v667_v54, %v666_v53 }
 0x117   :  { %963 = shalt.err (!%p960_p4)
}
 0x118   :  { %s975_s25 = smov 64   ;;  %s976_s26 = smov 4   ;;  %v664_v57 = vmax.f32 %v660_v50, 0.0  ;;  %v665_v58 = vmax.f32 %v661_v55, 0.0  ;;  %808 = vst [vmem:[%s1207_s8 + $0x8] sm:$0xff] %v804_v56  }
 0x119   :  { %699 = dma.vmem_to_hbm [thread:$0]  %s694_s4, 256, %s1206_s7, [#allocation4], %s975_s25, %s975_s25, %s976_s26  }
 0x11a   :  { %v799_v59 = vpack.c.bf16 %v665_v58, %v664_v57 }
 0x11c   :  { %800 = vst [vmem:[%s1207_s8] sm:$0xff] %v799_v59  }
 0x11d   :  { %972 = dma.done.wait [#allocation4], 256  }
 0x11e   :  { %973 = vsyncadd [#allocation4], 4294967040 }
 0x11f   :  { %707 = vsyncpa [#allocation4], 1 }

</bundles_post_ra>
